<compile_context>
chip_gen: v5e
topology: v5e:2x2
jax: 0.10.0
libtpu: 0.0.40
codegen_flags: <defaults>
</compile_context>

<pallas_src>
import functools

import jax
import jax.numpy as jnp
from jax.experimental import pallas as pl
from jax.experimental.pallas import tpu as pltpu


_LARGE_C_THRESHOLD = 128  # >= this: accumulated per-tap matmuls, no im2col concat


def _zero_halo_border(xpad_ref, H, W):
    """Zero ONLY the 1-px pad=1 border of the halo scratch.

    The interior [1:H+1, 1:W+1, :] is fully overwritten afterwards, so a
    full-buffer memset would be redundant vector stores.  Columns beyond
    W+1 (alignment padding) are never read, so they stay uninitialized.
    """
    Wp = xpad_ref.shape[1]
    c = xpad_ref.shape[2]
    zrow = jnp.zeros((1, Wp, c), xpad_ref.dtype)
    xpad_ref[0:1, :, :] = zrow                    # top halo row
    xpad_ref[H + 1:H + 2, :, :] = zrow            # bottom halo row
    zcol = jnp.zeros((H, 1, c), xpad_ref.dtype)
    xpad_ref[1:H + 1, 0:1, :] = zcol              # left halo col
    xpad_ref[1:H + 1, W + 1:W + 2, :] = zcol      # right halo col


def _conv_bn_relu(xpad_ref, w_ref, b_ref, *, H, W, c):
    """3x3 conv (pad=1) + folded-BN bias + ReLU on a halo'd VMEM scratch.

    xpad_ref: (H+2, Wp, c)  f32 halo'd activations (Wp >= W+2, 8-aligned)
    w_ref:    (9*c, n_out)  bf16 weights, BN scale folded, (dy, dx, cin) order
    b_ref:    (1, n_out)    f32 folded BN bias
    returns:  (H*W, n_out)  f32
    """
    n_out = w_ref.shape[-1]
    if c >= _LARGE_C_THRESHOLD:
        # Accumulated per-tap matmuls: full-width K per tap, no 9x-size im2col
        # buffer (the dominant VMEM consumer at production channel counts).
        acc = jnp.zeros((H * W, n_out), jnp.float32)
        t = 0
        for dy in range(3):
            for dx in range(3):
                tap = xpad_ref[dy:dy + H, dx:dx + W, :].reshape(H * W, c)
                acc = acc + jnp.dot(tap.astype(jnp.bfloat16),
                                    w_ref[t * c:(t + 1) * c, :],
                                    preferred_element_type=jnp.float32)
                t += 1
        y = acc
    else:
        # Small-C stage: one (H*W, 9*c) x (9*c, n_out) MXU matmul.
        taps = [xpad_ref[dy:dy + H, dx:dx + W, :]
                for dy in range(3) for dx in range(3)]
        patches = jnp.concatenate(taps, axis=-1).reshape(H * W, 9 * c)
        y = jnp.dot(patches.astype(jnp.bfloat16), w_ref[...],
                    preferred_element_type=jnp.float32)
    y = y + b_ref[...]            # folded eval-BN bias (f32)
    return jnp.maximum(y, 0.0)    # ReLU (f32)


def _double_conv_kernel(x_ref, w1_ref, b1_ref, w2_ref, b2_ref, o_ref,
                        xpad1_ref, xpad2_ref, *, H, W):
    """Fused [conv3x3 + BN(folded) + ReLU] x 2 for one batch element.

    x_ref:     (1, H, W, Cin)        unpadded input tile (f32)
    w1_ref:    (9*Cin,  Cmid) bf16   conv1 weights, BN scale folded in
    b1_ref:    (1, Cmid)      f32    conv1 folded BN bias
    w2_ref:    (9*Cmid, Cout) bf16   conv2 weights, BN scale folded in
    b2_ref:    (1, Cout)      f32    conv2 folded BN bias
    o_ref:     (1, Cout, H*W) f32    channel-major, lane-dense output slab
    xpad1_ref: (H+2, Wp, Cin)  VMEM  halo scratch for conv1
    xpad2_ref: (H+2, Wp, Cmid) VMEM  halo scratch for conv2
    """
    cin = xpad1_ref.shape[-1]
    cmid = xpad2_ref.shape[-1]

    # Border-only halo zeroing, done every grid step (each TensorCore owns
    # its own scratch instance under the "parallel" grid split).
    _zero_halo_border(xpad1_ref, H, W)
    _zero_halo_border(xpad2_ref, H, W)

    # conv1: build pad=1 halo from the input tile (stays in VMEM).
    xpad1_ref[1:H + 1, 1:W + 1, :] = x_ref[0]
    act1 = _conv_bn_relu(xpad1_ref, w1_ref, b1_ref, H=H, W=W, c=cin)

    # conv2: fed directly from VMEM (the intermediate never touches HBM).
    xpad2_ref[1:H + 1, 1:W + 1, :] = act1.reshape(H, W, cmid)
    act2 = _conv_bn_relu(xpad2_ref, w2_ref, b2_ref, H=H, W=W, c=cmid)

    # Channel-major store: lane axis is H*W (>=128, unmasked vst), no Cout
    # padding; the XLU transpose slot is otherwise idle here.
    o_ref[0] = act2.T.astype(o_ref.dtype)


def double_conv(x_nchw, params):
    """Forward pass of DoubleConv. Input/output are NCHW like PyTorch."""
    N, Cin, H, W = x_nchw.shape
    p1, p2 = params["conv1"], params["conv2"]
    Cmid = p1["w"].shape[-1]
    Cout = p2["w"].shape[-1]
    Wp = ((W + 2 + 7) // 8) * 8    # sublane-aligned halo-scratch width

    x_nhwc = jnp.transpose(x_nchw, (0, 2, 3, 1)).astype(jnp.float32)

    # Fold eval-mode BN scale into the conv weights and cast to bf16 for the
    # MXU; (3,3,Cin,Cout) -> (9*Cin, Cout) matches the (dy, dx, cin) tap order.
    w1 = (p1["w"] * p1["scale"]).reshape(9 * Cin, Cmid).astype(jnp.bfloat16)
    b1 = p1["bias"].reshape(1, Cmid).astype(jnp.float32)
    w2 = (p2["w"] * p2["scale"]).reshape(9 * Cmid, Cout).astype(jnp.bfloat16)
    b2 = p2["bias"].reshape(1, Cout).astype(jnp.float32)

    kernel = functools.partial(_double_conv_kernel, H=H, W=W)

    # Explicit VMEM budget: double-buffered in/out tiles + weights + halo
    # scratches + matmul temporaries, 2x headroom, clamped to ~3/4 physical.
    f32b, bf16b = 4, 2
    in_tile = H * W * Cin * f32b
    out_tile = Cout * H * W * f32b
    scratch = (H + 2) * Wp * (Cin + Cmid) * f32b
    weights = (9 * Cin * Cmid + 9 * Cmid * Cout) * bf16b + (Cmid + Cout) * f32b
    temps = H * W * (9 * Cin * (f32b + bf16b) + 9 * Cmid * (f32b + bf16b)
                     + 2 * (Cmid + Cout) * f32b)
    est = 2 * (in_tile + out_tile) + scratch + weights + temps
    try:
        phys_vmem = pltpu.get_tpu_info().vmem_capacity_bytes
    except Exception:  # conservative fallback (v7x-safe)
        phys_vmem = 64 << 20
    vmem_limit = int(min(max(2 * est, 32 << 20), (phys_vmem * 3) // 4))

    flops = 2 * N * H * W * 9 * (Cin * Cmid + Cmid * Cout)
    bytes_accessed = (x_nhwc.size * f32b + N * Cout * H * W * f32b
                      + w1.size * bf16b + w2.size * bf16b
                      + (Cmid + Cout) * f32b)

    out = pl.pallas_call(
        kernel,
        out_shape=jax.ShapeDtypeStruct((N, Cout, H * W), jnp.float32),
        grid_spec=pltpu.PrefetchScalarGridSpec(
            num_scalar_prefetch=0,
            grid=(N,),
            in_specs=[
                pl.BlockSpec((1, H, W, Cin), lambda b: (b, 0, 0, 0)),
                pl.BlockSpec((9 * Cin, Cmid), lambda b: (0, 0)),
                pl.BlockSpec((1, Cmid), lambda b: (0, 0)),
                pl.BlockSpec((9 * Cmid, Cout), lambda b: (0, 0)),
                pl.BlockSpec((1, Cout), lambda b: (0, 0)),
            ],
            out_specs=pl.BlockSpec((1, Cout, H * W), lambda b: (b, 0, 0)),
            scratch_shapes=[
                pltpu.VMEM((H + 2, Wp, Cin), jnp.float32),
                pltpu.VMEM((H + 2, Wp, Cmid), jnp.float32),
            ],
        ),
        compiler_params=pltpu.CompilerParams(
            dimension_semantics=("parallel",),
            vmem_limit_bytes=vmem_limit),
        cost_estimate=pl.CostEstimate(
            flops=flops, transcendentals=0, bytes_accessed=bytes_accessed),
    )(x_nhwc, w1, b1, w2, b2)

    # Channel-major output maps straight to NCHW with a reshape (no transpose,
    # no slice: there is no channel padding to strip).
    return out.reshape(N, Cout, H, W)


def make_params(key, in_ch, out_ch, expansion=1.0):
    """Deterministic synthetic parameters matching DoubleConv.__init__ shapes."""
    expansion_out = int(round(out_ch * expansion))
    eps = 1e-5

    def layer(k, cin, cout):
        kw, kg, kb, km, kv = jax.random.split(k, 5)
        w = jax.random.normal(kw, (3, 3, cin, cout), jnp.float32) * 0.1
        gamma = 1.0 + 0.1 * jax.random.normal(kg, (cout,), jnp.float32)
        beta = 0.1 * jax.random.normal(kb, (cout,), jnp.float32)
        run_mean = 0.1 * jax.random.normal(km, (cout,), jnp.float32)
        run_var = jnp.abs(jax.random.normal(kv, (cout,), jnp.float32)) + 0.5
        # Fold eval-mode BatchNorm2d into per-channel scale/bias.
        scale = gamma / jnp.sqrt(run_var + eps)
        bias = beta - run_mean * scale
        return dict(w=w, scale=scale, bias=bias)

    k1, k2 = jax.random.split(key)
    return dict(conv1=layer(k1, in_ch, expansion_out),
                conv2=layer(k2, expansion_out, out_ch))


def _reference(x_nchw, params):
    """Pure-JAX f32 reference (lax conv) for correctness checking."""
    x = x_nchw
    for name in ("conv1", "conv2"):
        p = params[name]
        w_oihw = jnp.transpose(p["w"], (3, 2, 0, 1))             # HWIO -> OIHW
        y = jax.lax.conv_general_dilated(
            x, w_oihw, window_strides=(1, 1), padding=((1, 1), (1, 1)),
            dimension_numbers=("NCHW", "OIHW", "NCHW"))
        y = y * p["scale"][None, :, None, None] + p["bias"][None, :, None, None]
        x = jnp.maximum(y, 0.0)
    return x


if __name__ == "__main__":
    key = jax.random.PRNGKey(0)
    kx, kp = jax.random.split(key)

    N, C_in, H, W = 2, 4, 16, 16
    C_out = 8

    x = jax.random.normal(kx, (N, C_in, H, W), jnp.float32)
    params = make_params(kp, C_in, C_out)

    out = jax.block_until_ready(double_conv(x, params))
    ref = jax.block_until_ready(_reference(x, params))

    assert out.shape == (N, C_out, H, W), out.shape
    # bf16 MXU inputs (f32 accumulation) => slightly looser tolerance vs f32 ref.
    assert jnp.allclose(out, ref, atol=3e-2, rtol=3e-2), "mismatch vs reference"
    print("KERNEL_OK")
</pallas_src>

<mosaic_0001>
module attributes {stable_mosaic.version = 11 : i64} {
  func.func @_double_conv_kernel(%arg0: i32, %arg1: memref<1x16x16x4xf32, #tpu.memory_space<vmem>>, %arg2: memref<36x8xbf16, #tpu.memory_space<vmem>>, %arg3: memref<1x8xf32, #tpu.memory_space<vmem>>, %arg4: memref<72x8xbf16, #tpu.memory_space<vmem>>, %arg5: memref<1x8xf32, #tpu.memory_space<vmem>>, %arg6: memref<1x8x256xf32, #tpu.memory_space<vmem>>, %arg7: memref<18x24x4xf32, #tpu.memory_space<vmem>>, %arg8: memref<18x24x8xf32, #tpu.memory_space<vmem>>) attributes {dimension_semantics = [#tpu.dimension_semantics<parallel>], iteration_bounds = array<i64: 2>, scalar_prefetch = 0 : i64, scratch_operands = 2 : i64, tpu.core_type = #tpu.core_type<tc>, window_params = [{transform_indices = @transform_0, window_bounds = array<i64: 1, 16, 16, 4>}, {pipeline_mode = #tpu.pipeline_mode<synchronous>, transform_indices = @transform_1, window_bounds = array<i64: 36, 8>}, {pipeline_mode = #tpu.pipeline_mode<synchronous>, transform_indices = @transform_2, window_bounds = array<i64: 1, 8>}, {pipeline_mode = #tpu.pipeline_mode<synchronous>, transform_indices = @transform_3, window_bounds = array<i64: 72, 8>}, {pipeline_mode = #tpu.pipeline_mode<synchronous>, transform_indices = @transform_4, window_bounds = array<i64: 1, 8>}, {transform_indices = @transform_5, window_bounds = array<i64: 1, 8, 256>}]} {
    %cst = arith.constant 0.000000e+00 : f32
    %0 = vector.broadcast %cst : f32 to vector<1x24x4xf32>
    %c0 = arith.constant 0 : index
    %c0_0 = arith.constant 0 : index
    %c0_1 = arith.constant 0 : index
    %1 = vector.load %arg7[%c0, %c0_0, %c0_1] : memref<18x24x4xf32, #tpu.memory_space<vmem>>, vector<1x24x4xf32>
    tpu.vector_store %arg7[%c0, %c0_0, %c0_1], %0 {strides = array<i32>} : memref<18x24x4xf32, #tpu.memory_space<vmem>>, vector<1x24x4xf32>,
    %c17 = arith.constant 17 : index
    %c0_2 = arith.constant 0 : index
    %c0_3 = arith.constant 0 : index
    %2 = vector.load %arg7[%c17, %c0_2, %c0_3] : memref<18x24x4xf32, #tpu.memory_space<vmem>>, vector<1x24x4xf32>
    tpu.vector_store %arg7[%c17, %c0_2, %c0_3], %0 {strides = array<i32>} : memref<18x24x4xf32, #tpu.memory_space<vmem>>, vector<1x24x4xf32>,
    %cst_4 = arith.constant 0.000000e+00 : f32
    %3 = vector.broadcast %cst_4 : f32 to vector<16x1x4xf32>
    %c1 = arith.constant 1 : index
    %c0_5 = arith.constant 0 : index
    %c0_6 = arith.constant 0 : index
    %4 = vector.load %arg7[%c1, %c0_5, %c0_6] : memref<18x24x4xf32, #tpu.memory_space<vmem>>, vector<16x1x4xf32>
    tpu.vector_store %arg7[%c1, %c0_5, %c0_6], %3 {strides = array<i32>} : memref<18x24x4xf32, #tpu.memory_space<vmem>>, vector<16x1x4xf32>,
    %c1_7 = arith.constant 1 : index
    %c17_8 = arith.constant 17 : index
    %c0_9 = arith.constant 0 : index
    %5 = vector.load %arg7[%c1_7, %c17_8, %c0_9] : memref<18x24x4xf32, #tpu.memory_space<vmem>>, vector<16x1x4xf32>
    tpu.vector_store %arg7[%c1_7, %c17_8, %c0_9], %3 {strides = array<i32>} : memref<18x24x4xf32, #tpu.memory_space<vmem>>, vector<16x1x4xf32>,
    %cst_10 = arith.constant 0.000000e+00 : f32
    %6 = vector.broadcast %cst_10 : f32 to vector<1x24x8xf32>
    %c0_11 = arith.constant 0 : index
    %c0_12 = arith.constant 0 : index
    %c0_13 = arith.constant 0 : index
    %7 = vector.load %arg8[%c0_11, %c0_12, %c0_13] : memref<18x24x8xf32, #tpu.memory_space<vmem>>, vector<1x24x8xf32>
    tpu.vector_store %arg8[%c0_11, %c0_12, %c0_13], %6 {strides = array<i32>} : memref<18x24x8xf32, #tpu.memory_space<vmem>>, vector<1x24x8xf32>,
    %c17_14 = arith.constant 17 : index
    %c0_15 = arith.constant 0 : index
    %c0_16 = arith.constant 0 : index
    %8 = vector.load %arg8[%c17_14, %c0_15, %c0_16] : memref<18x24x8xf32, #tpu.memory_space<vmem>>, vector<1x24x8xf32>
    tpu.vector_store %arg8[%c17_14, %c0_15, %c0_16], %6 {strides = array<i32>} : memref<18x24x8xf32, #tpu.memory_space<vmem>>, vector<1x24x8xf32>,
    %cst_17 = arith.constant 0.000000e+00 : f32
    %9 = vector.broadcast %cst_17 : f32 to vector<16x1x8xf32>
    %c1_18 = arith.constant 1 : index
    %c0_19 = arith.constant 0 : index
    %c0_20 = arith.constant 0 : index
    %10 = vector.load %arg8[%c1_18, %c0_19, %c0_20] : memref<18x24x8xf32, #tpu.memory_space<vmem>>, vector<16x1x8xf32>
    tpu.vector_store %arg8[%c1_18, %c0_19, %c0_20], %9 {strides = array<i32>} : memref<18x24x8xf32, #tpu.memory_space<vmem>>, vector<16x1x8xf32>,
    %c1_21 = arith.constant 1 : index
    %c17_22 = arith.constant 17 : index
    %c0_23 = arith.constant 0 : index
    %11 = vector.load %arg8[%c1_21, %c17_22, %c0_23] : memref<18x24x8xf32, #tpu.memory_space<vmem>>, vector<16x1x8xf32>
    tpu.vector_store %arg8[%c1_21, %c17_22, %c0_23], %9 {strides = array<i32>} : memref<18x24x8xf32, #tpu.memory_space<vmem>>, vector<16x1x8xf32>,
    %c0_24 = arith.constant 0 : index
    %c0_25 = arith.constant 0 : index
    %c0_26 = arith.constant 0 : index
    %c0_27 = arith.constant 0 : index
    %12 = vector.load %arg1[%c0_24, %c0_25, %c0_26, %c0_27] : memref<1x16x16x4xf32, #tpu.memory_space<vmem>>, vector<1x16x16x4xf32>
    %13 = vector.shape_cast %12 : vector<1x16x16x4xf32> to vector<16x16x4xf32>
    %c1_28 = arith.constant 1 : index
    %c1_29 = arith.constant 1 : index
    %c0_30 = arith.constant 0 : index
    %14 = vector.load %arg7[%c1_28, %c1_29, %c0_30] : memref<18x24x4xf32, #tpu.memory_space<vmem>>, vector<16x16x4xf32>
    tpu.vector_store %arg7[%c1_28, %c1_29, %c0_30], %13 {strides = array<i32>} : memref<18x24x4xf32, #tpu.memory_space<vmem>>, vector<16x16x4xf32>,
    %c0_31 = arith.constant 0 : index
    %c0_32 = arith.constant 0 : index
    %c0_33 = arith.constant 0 : index
    %15 = vector.load %arg7[%c0_31, %c0_32, %c0_33] : memref<18x24x4xf32, #tpu.memory_space<vmem>>, vector<16x16x4xf32>
    %c0_34 = arith.constant 0 : index
    %c1_35 = arith.constant 1 : index
    %c0_36 = arith.constant 0 : index
    %16 = vector.load %arg7[%c0_34, %c1_35, %c0_36] : memref<18x24x4xf32, #tpu.memory_space<vmem>>, vector<16x16x4xf32>
    %c0_37 = arith.constant 0 : index
    %c2 = arith.constant 2 : index
    %c0_38 = arith.constant 0 : index
    %17 = vector.load %arg7[%c0_37, %c2, %c0_38] : memref<18x24x4xf32, #tpu.memory_space<vmem>>, vector<16x16x4xf32>
    %c1_39 = arith.constant 1 : index
    %c0_40 = arith.constant 0 : index
    %c0_41 = arith.constant 0 : index
    %18 = vector.load %arg7[%c1_39, %c0_40, %c0_41] : memref<18x24x4xf32, #tpu.memory_space<vmem>>, vector<16x16x4xf32>
    %c1_42 = arith.constant 1 : index
    %c1_43 = arith.constant 1 : index
    %c0_44 = arith.constant 0 : index
    %19 = vector.load %arg7[%c1_42, %c1_43, %c0_44] : memref<18x24x4xf32, #tpu.memory_space<vmem>>, vector<16x16x4xf32>
    %c1_45 = arith.constant 1 : index
    %c2_46 = arith.constant 2 : index
    %c0_47 = arith.constant 0 : index
    %20 = vector.load %arg7[%c1_45, %c2_46, %c0_47] : memref<18x24x4xf32, #tpu.memory_space<vmem>>, vector<16x16x4xf32>
    %c2_48 = arith.constant 2 : index
    %c0_49 = arith.constant 0 : index
    %c0_50 = arith.constant 0 : index
    %21 = vector.load %arg7[%c2_48, %c0_49, %c0_50] : memref<18x24x4xf32, #tpu.memory_space<vmem>>, vector<16x16x4xf32>
    %c2_51 = arith.constant 2 : index
    %c1_52 = arith.constant 1 : index
    %c0_53 = arith.constant 0 : index
    %22 = vector.load %arg7[%c2_51, %c1_52, %c0_53] : memref<18x24x4xf32, #tpu.memory_space<vmem>>, vector<16x16x4xf32>
    %c2_54 = arith.constant 2 : index
    %c2_55 = arith.constant 2 : index
    %c0_56 = arith.constant 0 : index
    %23 = vector.load %arg7[%c2_54, %c2_55, %c0_56] : memref<18x24x4xf32, #tpu.memory_space<vmem>>, vector<16x16x4xf32>
    %24 = tpu.concatenate %15, %16, %17, %18, %19, %20, %21, %22, %23 in 2 : vector<16x16x4xf32>, vector<16x16x4xf32>, vector<16x16x4xf32>, vector<16x16x4xf32>, vector<16x16x4xf32>, vector<16x16x4xf32>, vector<16x16x4xf32>, vector<16x16x4xf32>, vector<16x16x4xf32> -> vector<16x16x36xf32>
    %25 = vector.shape_cast %24 : vector<16x16x36xf32> to vector<256x36xf32>
    %26 = arith.truncf %25 : vector<256x36xf32> to vector<256x36xbf16>
    %c0_57 = arith.constant 0 : index
    %c0_58 = arith.constant 0 : index
    %27 = vector.load %arg2[%c0_57, %c0_58] : memref<36x8xbf16, #tpu.memory_space<vmem>>, vector<36x8xbf16>
    %cst_59 = arith.constant dense<0.000000e+00> : vector<256x8xf32>
    %28 = tpu.matmul %26, %27, %cst_59 {dimension_numbers = #tpu.dot_dimension_numbers<[1], [0], [0], [1], [0, 0, 1, 1], [], []>} : vector<256x36xbf16>, vector<36x8xbf16>, vector<256x8xf32> -> vector<256x8xf32>
    %c0_60 = arith.constant 0 : index
    %c0_61 = arith.constant 0 : index
    %29 = vector.load %arg3[%c0_60, %c0_61] : memref<1x8xf32, #tpu.memory_space<vmem>>, vector<1x8xf32>
    %30 = vector.broadcast %29 : vector<1x8xf32> to vector<256x8xf32>
    %31 = arith.addf %28, %30 : vector<256x8xf32>
    %cst_62 = arith.constant 0.000000e+00 : f32
    %32 = vector.broadcast %cst_62 : f32 to vector<256x8xf32>
    %33 = arith.maximumf %31, %32 : vector<256x8xf32>
    %34 = vector.shape_cast %33 : vector<256x8xf32> to vector<16x16x8xf32>
    %c1_63 = arith.constant 1 : index
    %c1_64 = arith.constant 1 : index
    %c0_65 = arith.constant 0 : index
    %35 = vector.load %arg8[%c1_63, %c1_64, %c0_65] : memref<18x24x8xf32, #tpu.memory_space<vmem>>, vector<16x16x8xf32>
    tpu.vector_store %arg8[%c1_63, %c1_64, %c0_65], %34 {strides = array<i32>} : memref<18x24x8xf32, #tpu.memory_space<vmem>>, vector<16x16x8xf32>,
    %c0_66 = arith.constant 0 : index
    %c0_67 = arith.constant 0 : index
    %c0_68 = arith.constant 0 : index
    %36 = vector.load %arg8[%c0_66, %c0_67, %c0_68] : memref<18x24x8xf32, #tpu.memory_space<vmem>>, vector<16x16x8xf32>
    %c0_69 = arith.constant 0 : index
    %c1_70 = arith.constant 1 : index
    %c0_71 = arith.constant 0 : index
    %37 = vector.load %arg8[%c0_69, %c1_70, %c0_71] : memref<18x24x8xf32, #tpu.memory_space<vmem>>, vector<16x16x8xf32>
    %c0_72 = arith.constant 0 : index
    %c2_73 = arith.constant 2 : index
    %c0_74 = arith.constant 0 : index
    %38 = vector.load %arg8[%c0_72, %c2_73, %c0_74] : memref<18x24x8xf32, #tpu.memory_space<vmem>>, vector<16x16x8xf32>
    %c1_75 = arith.constant 1 : index
    %c0_76 = arith.constant 0 : index
    %c0_77 = arith.constant 0 : index
    %39 = vector.load %arg8[%c1_75, %c0_76, %c0_77] : memref<18x24x8xf32, #tpu.memory_space<vmem>>, vector<16x16x8xf32>
    %c1_78 = arith.constant 1 : index
    %c1_79 = arith.constant 1 : index
    %c0_80 = arith.constant 0 : index
    %40 = vector.load %arg8[%c1_78, %c1_79, %c0_80] : memref<18x24x8xf32, #tpu.memory_space<vmem>>, vector<16x16x8xf32>
    %c1_81 = arith.constant 1 : index
    %c2_82 = arith.constant 2 : index
    %c0_83 = arith.constant 0 : index
    %41 = vector.load %arg8[%c1_81, %c2_82, %c0_83] : memref<18x24x8xf32, #tpu.memory_space<vmem>>, vector<16x16x8xf32>
    %c2_84 = arith.constant 2 : index
    %c0_85 = arith.constant 0 : index
    %c0_86 = arith.constant 0 : index
    %42 = vector.load %arg8[%c2_84, %c0_85, %c0_86] : memref<18x24x8xf32, #tpu.memory_space<vmem>>, vector<16x16x8xf32>
    %c2_87 = arith.constant 2 : index
    %c1_88 = arith.constant 1 : index
    %c0_89 = arith.constant 0 : index
    %43 = vector.load %arg8[%c2_87, %c1_88, %c0_89] : memref<18x24x8xf32, #tpu.memory_space<vmem>>, vector<16x16x8xf32>
    %c2_90 = arith.constant 2 : index
    %c2_91 = arith.constant 2 : index
    %c0_92 = arith.constant 0 : index
    %44 = vector.load %arg8[%c2_90, %c2_91, %c0_92] : memref<18x24x8xf32, #tpu.memory_space<vmem>>, vector<16x16x8xf32>
    %45 = tpu.concatenate %36, %37, %38, %39, %40, %41, %42, %43, %44 in 2 : vector<16x16x8xf32>, vector<16x16x8xf32>, vector<16x16x8xf32>, vector<16x16x8xf32>, vector<16x16x8xf32>, vector<16x16x8xf32>, vector<16x16x8xf32>, vector<16x16x8xf32>, vector<16x16x8xf32> -> vector<16x16x72xf32>
    %46 = vector.shape_cast %45 : vector<16x16x72xf32> to vector<256x72xf32>
    %47 = arith.truncf %46 : vector<256x72xf32> to vector<256x72xbf16>
    %c0_93 = arith.constant 0 : index
    %c0_94 = arith.constant 0 : index
    %48 = vector.load %arg4[%c0_93, %c0_94] : memref<72x8xbf16, #tpu.memory_space<vmem>>, vector<72x8xbf16>
    %cst_95 = arith.constant dense<0.000000e+00> : vector<256x8xf32>
    %49 = tpu.matmul %47, %48, %cst_95 {dimension_numbers = #tpu.dot_dimension_numbers<[1], [0], [0], [1], [0, 0, 1, 1], [], []>} : vector<256x72xbf16>, vector<72x8xbf16>, vector<256x8xf32> -> vector<256x8xf32>
    %c0_96 = arith.constant 0 : index
    %c0_97 = arith.constant 0 : index
    %50 = vector.load %arg5[%c0_96, %c0_97] : memref<1x8xf32, #tpu.memory_space<vmem>>, vector<1x8xf32>
    %51 = vector.broadcast %50 : vector<1x8xf32> to vector<256x8xf32>
    %52 = arith.addf %49, %51 : vector<256x8xf32>
    %cst_98 = arith.constant 0.000000e+00 : f32
    %53 = vector.broadcast %cst_98 : f32 to vector<256x8xf32>
    %54 = arith.maximumf %52, %53 : vector<256x8xf32>
    %55 = tpu.transpose %54, [1, 0] : vector<256x8xf32> -> vector<8x256xf32>
    %c0_99 = arith.constant 0 : index
    %c0_100 = arith.constant 0 : index
    %c0_101 = arith.constant 0 : index
    %56 = vector.load %arg6[%c0_99, %c0_100, %c0_101] : memref<1x8x256xf32, #tpu.memory_space<vmem>>, vector<1x8x256xf32>
    %57 = vector.shape_cast %56 : vector<1x8x256xf32> to vector<8x256xf32>
    %58 = vector.shape_cast %55 : vector<8x256xf32> to vector<1x8x256xf32>
    tpu.vector_store %arg6[%c0_99, %c0_100, %c0_101], %58 {strides = array<i32>} : memref<1x8x256xf32, #tpu.memory_space<vmem>>, vector<1x8x256xf32>,
    return
  }
  func.func @transform_0(%arg0: i32) -> (i32, i32, i32, i32) {
    %c0_i32 = arith.constant 0 : i32
    %c0_i32_0 = arith.constant 0 : i32
    %c0_i32_1 = arith.constant 0 : i32
    %c0_i32_2 = arith.constant 0 : i32
    return %arg0, %c0_i32, %c0_i32_0, %c0_i32_1 : i32, i32, i32, i32
  }
  func.func @transform_1(%arg0: i32) -> (i32, i32) {
    %c0_i32 = arith.constant 0 : i32
    %c0_i32_0 = arith.constant 0 : i32
    %c0_i32_1 = arith.constant 0 : i32
    return %c0_i32, %c0_i32_0 : i32, i32
  }
  func.func @transform_2(%arg0: i32) -> (i32, i32) {
    %c0_i32 = arith.constant 0 : i32
    %c0_i32_0 = arith.constant 0 : i32
    %c0_i32_1 = arith.constant 0 : i32
    return %c0_i32, %c0_i32_0 : i32, i32
  }
  func.func @transform_3(%arg0: i32) -> (i32, i32) {
    %c0_i32 = arith.constant 0 : i32
    %c0_i32_0 = arith.constant 0 : i32
    %c0_i32_1 = arith.constant 0 : i32
    return %c0_i32, %c0_i32_0 : i32, i32
  }
  func.func @transform_4(%arg0: i32) -> (i32, i32) {
    %c0_i32 = arith.constant 0 : i32
    %c0_i32_0 = arith.constant 0 : i32
    %c0_i32_1 = arith.constant 0 : i32
    return %c0_i32, %c0_i32_0 : i32, i32
  }
  func.func @transform_5(%arg0: i32) -> (i32, i32, i32) {
    %c0_i32 = arith.constant 0 : i32
    %c0_i32_0 = arith.constant 0 : i32
    %c0_i32_1 = arith.constant 0 : i32
    return %arg0, %c0_i32, %c0_i32_0 : i32, i32, i32
  }
}

</mosaic_0001>

<bundles_post_ra>
// kernel: tpu_custom_call.1
= control target key start
LH: loop header
LB: loop body
LE: loop exit
PB: predicated region body
PF: predicated region fallthrough
CT: control target
= control target key end

     0   :  { %10 = vsyncpa [#allocation5], 0  ;;  %s8707_s0 = inlined_call_operand.vmem [shape: f32[2,16,16,4], index: 0, kind: input, shape index: {}]   ;;  %s8708_s1 = inlined_call_operand.vmem [shape: bf16[36,8], index: 1, kind: input, shape index: {}]   ;;  %s8709_s2 = inlined_call_operand.vmem [shape: f32[1,8], index: 2, kind: input, shape index: {}]   ;;  %s8710_s3 = inlined_call_operand.vmem [shape: bf16[72,8], index: 3, kind: input, shape index: {}]   ;;  %s8711_s4 = inlined_call_operand.vmem [shape: f32[1,8], index: 4, kind: input, shape index: {}]   ;;  %s8712_s5 = inlined_call_operand.hbm [shape: f32[2,8,256], index: 5, kind: output, shape index: {}]  }
   0x1   :  { %12 = vsyncpa [#allocation5 + $0x1], 0  ;;  %s5665_s18 = smov 0   ;;  %s5667_s19 = smov 0  }
   0x2   :  { %s5669_s20 = smov 0   ;;  %s5671_s21 = smov 0  }
   0x3 LB: > { %s5686_s22 = sadd.s32 4294967295, %s5620_s21   ;;  %s4138_s23 = sadd.s32 4294967294, %s5620_s21   ;;  %s5620_s21 = sphi %s5671_s21, %s9049_s21   ;;  %s5616_s20 = sphi %s5669_s20, %s9048_s20   ;;  %s5612_s19 = sphi %s5667_s19, %s9047_s19   ;;  %s5608_s18 = sphi %s5665_s18, %s9046_s18  }
   0x4   : > { %s5690_s24 = sadd.s32 1, %s5620_s21   ;;  %s135_s25 = sadd.s32 1, %s5616_s20 }
   0x5   : > { %s132_s26 = ssub.s32 %s5620_s21, %s5690_s24  ;;  %p145_p0 = scmp.ne.s32.totalorder %s5616_s20, %s5612_s19 }
   0x6   : > { %p133_p1 = scmp.eq.s32.totalorder %s132_s26, 0  ;;  %p146_p2 = scmp.eq.s32.totalorder %s5686_s22, 1 }
   0x7   : > { %p151_p3 = scmp.ne.s32.totalorder %s5612_s19, %s5608_s18  ;;  %p152_p4 = scmp.eq.s32.totalorder %s4138_s23, 1 }
   0x8   : > { %s5701_s27 = scalar_select %p133_p1, %s5616_s20, %s135_s25  }
   0x9   : > { %p5703_p5 = por %p146_p2, %p145_p0  ;;  %p5707_p6 = por %p152_p4, %p151_p3 }
   0xa   : > { %p4141_p7 = scmp.ge.s32.totalorder %s5620_s21, 1  ;;  %p190_p8 = scmp.lt.s32.totalorder %s5620_s21, 3 }
   0xc   : > { %p191_p9 = pnand %p4141_p7, %p190_p8 }
   0xe   : > { %194 = sbr.rel (%p191_p9) target bundleno = 1340 (0x53c), region = 40 }
  0x13   : > { %vm224_vm0 = vcmask 31744   ;;  %p218_p10 = scmp.lt.s32.totalorder %s5686_s22, 1  ;;  %v8724_v0 = vmov 0.0   ;;  %s5623_s10 = smov 4   ;;  %vm233_vm1 = vcmask 24576   ;;  %vm266_vm2 = vcmask 64512  }
  0x14   : > { %225 = vst.msk [vmem:[#allocation2] sm:$0xff] %vm224_vm0, %v8724_v0  ;;  %s5624_s11 = smov 8   ;;  %s5625_s12 = smov 12   ;;  %vm1749_vm3 = vcmask 97280   ;;  %vm1782_vm4 = vcmask 130048   ;;  %vm1815_vm5 = vcmask 162816  }
  0x15   : > { %226 = vst.msk [vmem:[#allocation2 + $0x8] sm:$0xff] %vm224_vm0, %v8724_v0  ;;  %s219_s30 = scalar_select %p218_p10, %s5686_s22, 1  ;;  %vm1848_vm6 = vcmask 195584   ;;  %vm1881_vm7 = vcmask 228352   ;;  %vm2036_vm8 = vcmask 1041408   ;;  %vm1914_vm9 = vcmask 261120  }
  0x16   : > { %227 = vst.msk [vmem:[#allocation2 + $0x10] sm:$0xff] %vm224_vm0, %v8724_v0  ;;  %s5626_s13 = smov 16   ;;  %s5627_s14 = smov 20   ;;  %vm1987_vm10 = vcmask 293888   ;;  %vm275_vm11 = vcmask 57344   ;;  %vm3634_vm12 = vcmask 326656  }
  0x17   : > { %229 = vst.msk [vmem:[#allocation2 + $0x198] sm:$0xff] %vm224_vm0, %v8724_v0  ;;  %s4206_s6 = sshll.u32 %s219_s30, 8  ;;  %s5628_s15 = smov 24   ;;  %vm3871_vm13 = vcmask 1043456   ;;  %vm3667_vm14 = vcmask 392192   ;;  %vm3700_vm15 = vcmask 457728  }
  0x18   : > { %230 = vst.msk [vmem:[#allocation2 + $0x1a0] sm:$0xff] %vm224_vm0, %v8724_v0  ;;  %s5728_s9 = scalar_lea.vmem %s8707_s0, %s4206_s6  ;;  %s5629_s16 = smov 28  }
  0x19   : > { %231 = vst.msk [vmem:[#allocation2 + $0x1a8] sm:$0xff] %vm224_vm0, %v8724_v0  ;;  %v314_v1 = vld [vmem:[%s5728_s9 + $0x30] sm:$0xff]  ;;  %v315_v2 = vld [vmem:[%s5728_s9 + $0x38] sm:$0xff]  ;;  %v308_v5 = vld [vmem:[%s5728_s9] sm:$0xff]  ;;  %s5630_s17 = smov 32   ;;  %s5578_s7 = scalar_lea.hbm %s8712_s5, 32 }
  0x1a   : > { %v310_v3 = vld [vmem:[%s5728_s9 + $0x10] sm:$0xff]  ;;  %346 = vst.msk [vmem:[#allocation2 + $0x61] sm:$0xff] %vm224_vm0, %v314_v1  ;;  %v311_v4 = vld [vmem:[%s5728_s9 + $0x18] sm:$0xff]  ;;  %v309_v7 = vld [vmem:[%s5728_s9 + $0x8] sm:$0xff] }
  0x1b   : > { %347 = vst.msk [vmem:[#allocation2 + $0x69] sm:$0xff] %vm224_vm0, %v315_v2  ;;  %v316_v9 = vld [vmem:[%s5728_s9 + $0x40] sm:$0xff]  ;;  %v317_v11 = vld [vmem:[%s5728_s9 + $0x48] sm:$0xff]  ;;  %v318_v15 = vld [vmem:[%s5728_s9 + $0x50] sm:$0xff] }
  0x1c   : > { %v404_v6 = vld [vmem:[#allocation2 + $0x1] sm:$0xff]  ;;  %342 = vst.msk [vmem:[#allocation2 + $0x31] sm:$0xff] %vm224_vm0, %v310_v3  ;;  %v319_v17 = vld [vmem:[%s5728_s9 + $0x58] sm:$0xff]  ;;  %v322_v20 = vld [vmem:[%s5728_s9 + $0x70] sm:$0xff] }
  0x1d   : > { %v405_v8 = vld [vmem:[#allocation2 + $0x9] sm:$0xff]  ;;  %343 = vst.msk [vmem:[#allocation2 + $0x39] sm:$0xff] %vm224_vm0, %v311_v4  ;;  %v312_v12 = vld [vmem:[%s5728_s9 + $0x20] sm:$0xff]  ;;  %v323_v22 = vld [vmem:[%s5728_s9 + $0x78] sm:$0xff] }
  0x1e   : > { %v4274_v10 = vpack.i.bf16 %v405_v8, %v404_v6  ;;  %340 = vst.msk [vmem:[#allocation2 + $0x19] sm:$0xff] %vm224_vm0, %v308_v5  ;;  %v313_v13 = vld [vmem:[%s5728_s9 + $0x28] sm:$0xff]  ;;  %v320_v25 = vld [vmem:[%s5728_s9 + $0x60] sm:$0xff]  ;;  %v326_v40 = vld [vmem:[%s5728_s9 + $0x90] sm:$0xff] }
  0x1f   : > { %341 = vst.msk [vmem:[#allocation2 + $0x21] sm:$0xff] %vm224_vm0, %v309_v7  ;;  %v321_v27 = vld [vmem:[%s5728_s9 + $0x68] sm:$0xff]  ;;  %v324_v30 = vld [vmem:[%s5728_s9 + $0x80] sm:$0xff]  ;;  %v327_v42 = vld [vmem:[%s5728_s9 + $0x98] sm:$0xff] }
  0x20   : > { %4275 = vrot.lane.b32.xlu0 %v4274_v10, %s5623_s10  ;;  %348 = vst.msk [vmem:[#allocation2 + $0x79] sm:$0xff] %vm224_vm0, %v316_v9  ;;  %v325_v32 = vld [vmem:[%s5728_s9 + $0x88] sm:$0xff]  ;;  %v328_v35 = vld [vmem:[%s5728_s9 + $0xa0] sm:$0xff]  ;;  %v330_v44 = vld [vmem:[%s5728_s9 + $0xb0] sm:$0xff] }
  0x21   : > { %v412_v14 = vld [vmem:[#allocation2 + $0x61] sm:$0xff]  ;;  %349 = vst.msk [vmem:[#allocation2 + $0x81] sm:$0xff] %vm224_vm0, %v317_v11  ;;  %v331_v47 = vld [vmem:[%s5728_s9 + $0xb8] sm:$0xff]  ;;  %v334_v48 = vld [vmem:[%s5728_s9 + $0xd0] sm:$0xff] }
  0x22   : > { %v413_v16 = vld [vmem:[#allocation2 + $0x69] sm:$0xff]  ;;  %344 = vst.msk [vmem:[#allocation2 + $0x49] sm:$0xff] %vm224_vm0, %v312_v12  ;;  %v335_v51 = vld [vmem:[%s5728_s9 + $0xd8] sm:$0xff]  ;;  %v332_v53 = vld [vmem:[%s5728_s9 + $0xc0] sm:$0xff] }
  0x23   : > { %v5754_v18 = vpack.i.bf16 %v413_v16, %v412_v14  ;;  %v408_v19 = vld [vmem:[#allocation2 + $0x31] sm:$0xff]  ;;  %345 = vst.msk [vmem:[#allocation2 + $0x51] sm:$0xff] %vm224_vm0, %v313_v13  ;;  %v329_v37 = vld [vmem:[%s5728_s9 + $0xa8] sm:$0xff]  ;;  %v336_v58 = vld [vmem:[%s5728_s9 + $0xe0] sm:$0xff] }
  0x24   : > { %v409_v21 = vld [vmem:[#allocation2 + $0x39] sm:$0xff]  ;;  %350 = vst.msk [vmem:[#allocation2 + $0x91] sm:$0xff] %vm224_vm0, %v318_v15  ;;  %v333_v56 = vld [vmem:[%s5728_s9 + $0xc8] sm:$0xff] }
  0x25   : > { %4295 = vrot.lane.b32.xlu2 %v5754_v18, %s5623_s10  ;;  %v5762_v23 = vpack.i.bf16 %v409_v21, %v408_v19  ;;  %v406_v24 = vld [vmem:[#allocation2 + $0x19] sm:$0xff]  ;;  %351 = vst.msk [vmem:[#allocation2 + $0x99] sm:$0xff] %vm224_vm0, %v319_v17  ;;  %v337_v59 = vld [vmem:[%s5728_s9 + $0xe8] sm:$0xff] }
  0x26   : > { %v407_v26 = vld [vmem:[#allocation2 + $0x21] sm:$0xff]  ;;  %354 = vst.msk [vmem:[#allocation2 + $0xc1] sm:$0xff] %vm224_vm0, %v322_v20  ;;  %v437_v20 = vld [vmem:[#allocation2 + $0xa] sm:$0xff] }
  0x27   : > { %4285 = vrot.lane.b32.xlu1 %v5762_v23, %s5623_s10  ;;  %v5770_v28 = vpack.i.bf16 %v407_v26, %v406_v24  ;;  %v414_v29 = vld [vmem:[#allocation2 + $0x79] sm:$0xff]  ;;  %355 = vst.msk [vmem:[#allocation2 + $0xc9] sm:$0xff] %vm224_vm0, %v323_v22  ;;  %v436_v19 = vld [vmem:[#allocation2 + $0x2] sm:$0xff] }
  0x28   : > { %v415_v31 = vld [vmem:[#allocation2 + $0x81] sm:$0xff]  ;;  %352 = vst.msk [vmem:[#allocation2 + $0xa9] sm:$0xff] %vm224_vm0, %v320_v25  ;;  %v4354_v22 = vpack.i.bf16 %v437_v20, %v436_v19  ;;  %v440_v24 = vld [vmem:[#allocation2 + $0x32] sm:$0xff] }
  0x29   : > { %4280 = vrot.lane.b32.xlu0 %v5770_v28, %s5623_s10  ;;  %v5778_v33 = vpack.i.bf16 %v415_v31, %v414_v29  ;;  %v410_v34 = vld [vmem:[#allocation2 + $0x49] sm:$0xff]  ;;  %353 = vst.msk [vmem:[#allocation2 + $0xb1] sm:$0xff] %vm224_vm0, %v321_v27  ;;  %v438_v16 = vld [vmem:[#allocation2 + $0x1a] sm:$0xff] }
  0x2a   : > { %v411_v36 = vld [vmem:[#allocation2 + $0x51] sm:$0xff]  ;;  %356 = vst.msk [vmem:[#allocation2 + $0xd9] sm:$0xff] %vm224_vm0, %v324_v30  ;;  %v444_v27 = vld [vmem:[#allocation2 + $0x62] sm:$0xff] }
  0x2b   : > { %v5784_v38 = vpack.i.bf16 %v411_v36, %v410_v34  ;;  %v416_v39 = vld [vmem:[#allocation2 + $0x91] sm:$0xff]  ;;  %357 = vst.msk [vmem:[#allocation2 + $0xe1] sm:$0xff] %vm224_vm0, %v325_v32 }
  0x2c   : > { %v417_v41 = vld [vmem:[#allocation2 + $0x99] sm:$0xff]  ;;  %360 = vst.msk [vmem:[#allocation2 + $0x109] sm:$0xff] %vm224_vm0, %v328_v35  ;;  %v442_v26 = vld [vmem:[#allocation2 + $0x4a] sm:$0xff] }
  0x2d   : > { %4300 = vrot.lane.b32.xlu2 %v5778_v33, %s5623_s10  ;;  %v5792_v43 = vpack.i.bf16 %v417_v41, %v416_v39  ;;  %361 = vst.msk [vmem:[#allocation2 + $0x111] sm:$0xff] %vm224_vm0, %v329_v37  ;;  %v420_v45 = vld [vmem:[#allocation2 + $0xc1] sm:$0xff]  ;;  %v448_v41 = vld [vmem:[#allocation2 + $0x92] sm:$0xff] }
  0x2e   : > { %v421_v46 = vld [vmem:[#allocation2 + $0xc9] sm:$0xff]  ;;  %358 = vst.msk [vmem:[#allocation2 + $0xf1] sm:$0xff] %vm224_vm0, %v326_v40  ;;  %v446_v35 = vld [vmem:[#allocation2 + $0x7a] sm:$0xff] }
  0x2f   : > { %4290 = vrot.lane.b32.xlu1 %v5784_v38, %s5623_s10  ;;  %359 = vst.msk [vmem:[#allocation2 + $0xf9] sm:$0xff] %vm224_vm0, %v327_v42  ;;  %v418_v49 = vld [vmem:[#allocation2 + $0xa9] sm:$0xff]  ;;  %v5806_v52 = vpack.i.bf16 %v421_v46, %v420_v45 }
  0x30   : > { %v419_v50 = vld [vmem:[#allocation2 + $0xb1] sm:$0xff]  ;;  %362 = vst.msk [vmem:[#allocation2 + $0x121] sm:$0xff] %vm224_vm0, %v330_v44  ;;  %v452_v46 = vld [vmem:[#allocation2 + $0xc2] sm:$0xff] }
  0x31   : > { %4305 = vrot.lane.b32.xlu0 %v5792_v43, %s5623_s10  ;;  %363 = vst.msk [vmem:[#allocation2 + $0x129] sm:$0xff] %vm224_vm0, %v331_v47  ;;  %v422_v54 = vld [vmem:[#allocation2 + $0xd9] sm:$0xff]  ;;  %v5812_v57 = vpack.i.bf16 %v419_v50, %v418_v49  ;;  %v450_v37 = vld [vmem:[#allocation2 + $0xaa] sm:$0xff] }
  0x32   : > { %v423_v55 = vld [vmem:[#allocation2 + $0xe1] sm:$0xff]  ;;  %366 = vst.msk [vmem:[#allocation2 + $0x151] sm:$0xff] %vm224_vm0, %v334_v48 }
  0x33   : > { %367 = vst.msk [vmem:[#allocation2 + $0x159] sm:$0xff] %vm224_vm0, %v335_v51  ;;  %v5820_v60 = vpack.i.bf16 %v423_v55, %v422_v54  ;;  %v426_v61 = vld [vmem:[#allocation2 + $0x109] sm:$0xff]  ;;  %v454_v51 = vld [vmem:[#allocation2 + $0xda] sm:$0xff] }
  0x34   : > { %364 = vst.msk [vmem:[#allocation2 + $0x139] sm:$0xff] %vm224_vm0, %v332_v53  ;;  %v427_v62 = vld [vmem:[#allocation2 + $0x111] sm:$0xff] }
  0x35   : > { %4315 = vrot.lane.b32.xlu2 %v5806_v52, %s5623_s10  ;;  %365 = vst.msk [vmem:[#allocation2 + $0x141] sm:$0xff] %vm224_vm0, %v333_v56  ;;  %v424_v63 = vld [vmem:[#allocation2 + $0xf1] sm:$0xff]  ;;  %v5831_v2 = vpack.i.bf16 %v427_v62, %v426_v61 }
  0x36   : > { %368 = vst.msk [vmem:[#allocation2 + $0x169] sm:$0xff] %vm224_vm0, %v336_v58  ;;  %v425_v1 = vld [vmem:[#allocation2 + $0xf9] sm:$0xff]  ;;  %v458_v56 = vld [vmem:[#allocation2 + $0x10a] sm:$0xff] }
  0x37   : > { %4310 = vrot.lane.b32.xlu1 %v5812_v57, %s5623_s10  ;;  %369 = vst.msk [vmem:[#allocation2 + $0x171] sm:$0xff] %vm224_vm0, %v337_v59  ;;  %v428_v3 = vld [vmem:[#allocation2 + $0x121] sm:$0xff]  ;;  %v5837_v5 = vpack.i.bf16 %v425_v1, %v424_v63  ;;  %v456_v48 = vld [vmem:[#allocation2 + $0xf2] sm:$0xff] }
  0x38   : > { %250 = vst.msk [vmem:[#allocation2 + $0x29] sm:$0x1] %vm233_vm1, %v8724_v0  ;;  %v429_v4 = vld [vmem:[#allocation2 + $0x129] sm:$0xff] }
  0x39   : > { %4320 = vrot.lane.b32.xlu0 %v5820_v60, %s5623_s10  ;;  %234 = vst.msk [vmem:[#allocation2 + $0x18] sm:$0x1] %vm233_vm1, %v8724_v0  ;;  %v5845_v6 = vpack.i.bf16 %v429_v4, %v428_v3  ;;  %v432_v7 = vld [vmem:[#allocation2 + $0x151] sm:$0xff]  ;;  %v460_v63 = vld [vmem:[#allocation2 + $0x122] sm:$0xff] }
  0x3a   : > { %235 = vst.msk [vmem:[#allocation2 + $0x30] sm:$0x1] %vm233_vm1, %v8724_v0  ;;  %v433_v8 = vld [vmem:[#allocation2 + $0x159] sm:$0xff] }
  0x3b   : > { %236 = vst.msk [vmem:[#allocation2 + $0x48] sm:$0x1] %vm233_vm1, %v8724_v0  ;;  %v430_v9 = vld [vmem:[#allocation2 + $0x139] sm:$0xff]  ;;  %v5859_v11 = vpack.i.bf16 %v433_v8, %v432_v7 }
  0x3c   : > { %237 = vst.msk [vmem:[#allocation2 + $0x60] sm:$0x1] %vm233_vm1, %v8724_v0  ;;  %v431_v10 = vld [vmem:[#allocation2 + $0x141] sm:$0xff]  ;;  %v464_v7 = vld [vmem:[#allocation2 + $0x152] sm:$0xff] }
  0x3d   : > { %4330 = vrot.lane.b32.xlu2 %v5831_v2, %s5623_s10  ;;  %238 = vst.msk [vmem:[#allocation2 + $0x78] sm:$0x1] %vm233_vm1, %v8724_v0  ;;  %v434_v12 = vld [vmem:[#allocation2 + $0x169] sm:$0xff]  ;;  %v5865_v14 = vpack.i.bf16 %v431_v10, %v430_v9  ;;  %v462_v59 = vld [vmem:[#allocation2 + $0x13a] sm:$0xff] }
  0x3e   : > { %239 = vst.msk [vmem:[#allocation2 + $0x90] sm:$0x1] %vm233_vm1, %v8724_v0  ;;  %v435_v13 = vld [vmem:[#allocation2 + $0x171] sm:$0xff]  ;;  %v5970_v10 = vld [vmem:[#allocation2 + $0x20] sm:$0xff] }
  0x3f   : > { %4325 = vrot.lane.b32.xlu1 %v5837_v5, %s5623_s10  ;;  %240 = vst.msk [vmem:[#allocation2 + $0xa8] sm:$0x1] %vm233_vm1, %v8724_v0  ;;  %v5873_v15 = vpack.i.bf16 %v435_v13, %v434_v12  ;;  %v439_v17 = vld [vmem:[#allocation2 + $0x22] sm:$0xff]  ;;  %v466_v13 = vld [vmem:[#allocation2 + $0x16a] sm:$0xff] }
  0x40   : > { %241 = vst.msk [vmem:[#allocation2 + $0xc0] sm:$0x1] %vm233_vm1, %v8724_v0  ;;  %v5887_v21 = vpack.i.bf16 %v439_v17, %v438_v16  ;;  %v5968_v9 = vld [vmem:[#allocation2 + $0x18] sm:$0xff] }
  0x41   : > { %4335 = vrot.lane.b32.xlu0 %v5845_v6, %s5623_s10  ;;  %242 = vst.msk [vmem:[#allocation2 + $0xd8] sm:$0x1] %vm233_vm1, %v8724_v0  ;;  %v4434_v17 = vpack.i.bf16 %v5970_v10, %v5968_v9  ;;  %v5982_v20 = vld [vmem:[#allocation2 + $0x30] sm:$0xff] }
  0x42   : > { %243 = vst.msk [vmem:[#allocation2 + $0xf0] sm:$0x1] %vm233_vm1, %v8724_v0 }
  0x43   : > { %244 = vst.msk [vmem:[#allocation2 + $0x108] sm:$0x1] %vm233_vm1, %v8724_v0 }
  0x44   : > { %245 = vst.msk [vmem:[#allocation2 + $0x120] sm:$0x1] %vm233_vm1, %v8724_v0 }
  0x45   : > { %4345 = vrot.lane.b32.xlu2 %v5859_v11, %s5623_s10  ;;  %246 = vst.msk [vmem:[#allocation2 + $0x138] sm:$0x1] %vm233_vm1, %v8724_v0 }
  0x46   : > { %247 = vst.msk [vmem:[#allocation2 + $0x150] sm:$0x1] %vm233_vm1, %v8724_v0 }
  0x47   : > { %4340 = vrot.lane.b32.xlu1 %v5865_v14, %s5623_s10  ;;  %248 = vst.msk [vmem:[#allocation2 + $0x168] sm:$0x1] %vm233_vm1, %v8724_v0 }
  0x48   : > { %249 = vst.msk [vmem:[#allocation2 + $0x180] sm:$0x1] %vm233_vm1, %v8724_v0 }
  0x49   : > { %4350 = vrot.lane.b32.xlu0 %v5873_v15, %s5623_s10  ;;  %251 = vst.msk [vmem:[#allocation2 + $0x41] sm:$0x1] %vm233_vm1, %v8724_v0  ;;  %s5631_s10 = smov 40  }
  0x4a   : > { %252 = vst.msk [vmem:[#allocation2 + $0x59] sm:$0x1] %vm233_vm1, %v8724_v0 }
  0x4b   : > { %253 = vst.msk [vmem:[#allocation2 + $0x71] sm:$0x1] %vm233_vm1, %v8724_v0 }
  0x4c   : > { %254 = vst.msk [vmem:[#allocation2 + $0x89] sm:$0x1] %vm233_vm1, %v8724_v0 }
  0x4d   : > { %4360 = vrot.lane.b32.xlu2 %v5887_v21, %s5624_s11  ;;  %255 = vst.msk [vmem:[#allocation2 + $0xa1] sm:$0x1] %vm233_vm1, %v8724_v0 }
  0x4e   : > { %256 = vst.msk [vmem:[#allocation2 + $0xb9] sm:$0x1] %vm233_vm1, %v8724_v0 }
  0x4f   : > { %4355 = vrot.lane.b32.xlu1 %v4354_v22, %s5624_s11  ;;  %257 = vst.msk [vmem:[#allocation2 + $0xd1] sm:$0x1] %vm233_vm1, %v8724_v0  ;;  %v5984_v22 = vld [vmem:[#allocation2 + $0x38] sm:$0xff] }
  0x50   : > { %258 = vst.msk [vmem:[#allocation2 + $0xe9] sm:$0x1] %vm233_vm1, %v8724_v0  ;;  %v441_v25 = vld [vmem:[#allocation2 + $0x3a] sm:$0xff] }
  0x51   : > { %259 = vst.msk [vmem:[#allocation2 + $0x101] sm:$0x1] %vm233_vm1, %v8724_v0  ;;  %v5910_v29 = vpack.i.bf16 %v441_v25, %v440_v24  ;;  %v443_v30 = vld [vmem:[#allocation2 + $0x52] sm:$0xff]  ;;  %v5987_v24 = vld [vmem:[#allocation2 + $0x60] sm:$0xff]  ;;  %v5989_v25 = vld [vmem:[#allocation2 + $0x68] sm:$0xff] }
  0x52   : > { %260 = vst.msk [vmem:[#allocation2 + $0x119] sm:$0x1] %vm233_vm1, %v8724_v0  ;;  %v445_v31 = vld [vmem:[#allocation2 + $0x6a] sm:$0xff]  ;;  %v5918_v32 = vpack.i.bf16 %v443_v30, %v442_v26  ;;  %v339_v30 = vld [vmem:[%s5728_s9 + $0xf8] sm:$0xff] }
  0x53   : > { %261 = vst.msk [vmem:[#allocation2 + $0x131] sm:$0x1] %vm233_vm1, %v8724_v0  ;;  %4365 = vrot.lane.b32.xlu0 %v5910_v29, %s5624_s11  ;;  %v5920_v34 = vpack.i.bf16 %v445_v31, %v444_v27  ;;  %v447_v36 = vld [vmem:[#allocation2 + $0x82] sm:$0xff]  ;;  %v338_v26 = vld [vmem:[%s5728_s9 + $0xf0] sm:$0xff]  ;;  %v5996_v27 = vpack.i.bf16 %v5984_v22, %v5982_v20 }
  0x54   : > { %262 = vst.msk [vmem:[#allocation2 + $0x149] sm:$0x1] %vm233_vm1, %v8724_v0  ;;  %v5934_v40 = vpack.i.bf16 %v447_v36, %v446_v35  ;;  %v449_v42 = vld [vmem:[#allocation2 + $0x9a] sm:$0xff]  ;;  %v6000_v31 = vld [vmem:[#allocation2 + $0x48] sm:$0xff]  ;;  %v6002_v35 = vld [vmem:[#allocation2 + $0x50] sm:$0xff]  ;;  %v6007_v36 = vpack.i.bf16 %v5989_v25, %v5987_v24 }
  0x55   : > { %263 = vst.msk [vmem:[#allocation2 + $0x161] sm:$0x1] %vm233_vm1, %v8724_v0  ;;  %4375 = vrot.lane.b32.xlu2 %v5920_v34, %s5624_s11  ;;  %v451_v39 = vld [vmem:[#allocation2 + $0xb2] sm:$0xff]  ;;  %v5940_v45 = vpack.i.bf16 %v449_v42, %v448_v41  ;;  %v6017_v41 = vld [vmem:[#allocation2 + $0x80] sm:$0xff]  ;;  %v6021_v42 = vld [vmem:[#allocation2 + $0xa8] sm:$0xff] }
  0x56   : > { %264 = vst.msk [vmem:[#allocation2 + $0x179] sm:$0x1] %vm233_vm1, %v8724_v0  ;;  %v5936_v44 = vpack.i.bf16 %v451_v39, %v450_v37  ;;  %v453_v47 = vld [vmem:[#allocation2 + $0xca] sm:$0xff]  ;;  %v6013_v37 = vpack.i.bf16 %v6002_v35, %v6000_v31  ;;  %v6015_v39 = vld [vmem:[#allocation2 + $0x78] sm:$0xff] }
  0x57   : > { %265 = vst.msk [vmem:[#allocation2 + $0x191] sm:$0x1] %vm233_vm1, %v8724_v0  ;;  %4370 = vrot.lane.b32.xlu1 %v5918_v32, %s5624_s11  ;;  %v5946_v50 = vpack.i.bf16 %v453_v47, %v452_v46  ;;  %v455_v53 = vld [vmem:[#allocation2 + $0xe2] sm:$0xff]  ;;  %v6023_v46 = vld [vmem:[#allocation2 + $0xb0] sm:$0xff]  ;;  %vm3822_vm1 = vcmask 588800  }
  0x58   : > { %v457_v49 = vld [vmem:[#allocation2 + $0xfa] sm:$0xff]  ;;  %v5952_v55 = vpack.i.bf16 %v455_v53, %v454_v51  ;;  %8820 = vst [vmem:[#allocation7_spill] sm:$0xff] %v5968_v9  ;;  %v6039_v53 = vpack.i.bf16 %v6023_v46, %v6021_v42 }
  0x59   : > { %v5948_v54 = vpack.i.bf16 %v457_v49, %v456_v48  ;;  %v459_v58 = vld [vmem:[#allocation2 + $0x112] sm:$0xff]  ;;  %8821 = vst [vmem:[#allocation8_spill] sm:$0xff] %v5970_v10  ;;  %v6031_v48 = vpack.i.bf16 %v6017_v41, %v6015_v39 }
  0x5a   : > { %v5958_v62 = vpack.i.bf16 %v459_v58, %v458_v56  ;;  %v461_v1 = vld [vmem:[#allocation2 + $0x12a] sm:$0xff]  ;;  %8822 = vst [vmem:[#allocation9_spill] sm:$0xff] %v5982_v20  ;;  %v6035_v51 = vld [vmem:[#allocation2 + $0x98] sm:$0xff]  ;;  %v6047_v58 = vld [vmem:[#allocation2 + $0xc0] sm:$0xff] }
  0x5b   : > { %4380 = vrot.lane.b32.xlu0 %v5934_v40, %s5624_s11  ;;  %v463_v61 = vld [vmem:[#allocation2 + $0x142] sm:$0xff]  ;;  %v5964_v4 = vpack.i.bf16 %v461_v1, %v460_v63  ;;  %8823 = vst [vmem:[#allocation10_spill] sm:$0xff] %v5984_v22  ;;  %v6033_v49 = vld [vmem:[#allocation2 + $0x90] sm:$0xff]  ;;  %v6055_v63 = vld [vmem:[#allocation2 + $0xf8] sm:$0xff] }
  0x5c   : > { %v5960_v3 = vpack.i.bf16 %v463_v61, %v462_v59  ;;  %v465_v8 = vld [vmem:[#allocation2 + $0x15a] sm:$0xff]  ;;  %370 = vst.msk [vmem:[#allocation2 + $0x181] sm:$0xff] %vm224_vm0, %v338_v26  ;;  %v6045_v56 = vpack.i.bf16 %v6035_v51, %v6033_v49  ;;  %v6049_v59 = vld [vmem:[#allocation2 + $0xc8] sm:$0xff]  ;;  %v6053_v61 = vld [vmem:[#allocation2 + $0xf0] sm:$0xff] }
  0x5d   : > { %4390 = vrot.lane.b32.xlu2 %v5936_v44, %s5624_s11  ;;  %v5974_v12 = vpack.i.bf16 %v465_v8, %v464_v7  ;;  %v467_v16 = vld [vmem:[#allocation2 + $0x172] sm:$0xff]  ;;  %8824 = vst [vmem:[#allocation11_spill] sm:$0xff] %v6000_v31  ;;  %v6063_v7 = vpack.i.bf16 %v6049_v59, %v6047_v58  ;;  %v6079_v26 = vld [vmem:[#allocation2 + $0x108] sm:$0xff] }
  0x5e   : > { %v5980_v19 = vpack.i.bf16 %v467_v16, %v466_v13  ;;  %8825 = vst [vmem:[#allocation12_spill] sm:$0xff] %v6002_v35  ;;  %v6065_v8 = vld [vmem:[#allocation2 + $0xd8] sm:$0xff]  ;;  %v6067_v13 = vld [vmem:[#allocation2 + $0xe0] sm:$0xff]  ;;  %v6071_v16 = vpack.i.bf16 %v6055_v63, %v6053_v61  ;;  %v6119_v35 = vld [vmem:[#allocation2 + $0x150] sm:$0xff] }
  0x5f   : > { %4385 = vrot.lane.b32.xlu1 %v5940_v45, %s5624_s11  ;;  %371 = vst.msk [vmem:[#allocation2 + $0x189] sm:$0xff] %vm224_vm0, %v339_v30  ;;  %v6081_v30 = vld [vmem:[#allocation2 + $0x110] sm:$0xff]  ;;  %v6121_v10 = vld [vmem:[#allocation2 + $0x158] sm:$0xff] }
  0x60   : > { %8826 = vst [vmem:[#allocation13_spill] sm:$0xff] %v6021_v42  ;;  %v6099_v42 = vld [vmem:[#allocation2 + $0x120] sm:$0xff]  ;;  %v6131_v9 = vpack.i.bf16 %v6121_v10, %v6119_v35 }
  0x61   : > { %8827 = vst [vmem:[#allocation14_spill] sm:$0xff] %v6023_v46  ;;  %v6101_v46 = vld [vmem:[#allocation2 + $0x128] sm:$0xff] }
  0x62   : > { %8828 = vst [vmem:[#allocation15_spill] sm:$0xff] %v6033_v49  ;;  %v6117_v31 = vpack.i.bf16 %v6101_v46, %v6099_v42 }
  0x63   : > { %4395 = vrot.lane.b32.xlu0 %v5946_v50, %s5624_s11  ;;  %8829 = vst [vmem:[#allocation16_spill] sm:$0xff] %v6035_v51 }
  0x64   : > { %8830 = vst [vmem:[#allocation17_spill] sm:$0xff] %v6053_v61  ;;  %v492_v61 = vld [vmem:[#allocation2 + $0x138] sm:$0xff] }
  0x65   : > { %4405 = vrot.lane.b32.xlu2 %v5948_v54, %s5624_s11  ;;  %8831 = vst [vmem:[#allocation18_spill] sm:$0xff] %v6055_v63  ;;  %v493_v63 = vld [vmem:[#allocation2 + $0x140] sm:$0xff] }
  0x66   : > { %8832 = vst [vmem:[#allocation19_spill] sm:$0xff] %v6065_v8  ;;  %v6105_v49 = vpack.i.bf16 %v493_v63, %v492_v61  ;;  %v498_v61 = vld [vmem:[#allocation2 + $0x180] sm:$0xff]  ;;  %v499_v63 = vld [vmem:[#allocation2 + $0x188] sm:$0xff] }
  0x67   : > { %4400 = vrot.lane.b32.xlu1 %v5952_v55, %s5624_s11  ;;  %8833 = vst [vmem:[#allocation20_spill] sm:$0xff] %v6067_v13  ;;  %v6139_v20 = vpack.i.bf16 %v499_v63, %v498_v61 }
  0x68   : > { %8834 = vst [vmem:[#allocation21_spill] sm:$0xff] %v6079_v26 }
  0x69   : > { %8835 = vst [vmem:[#allocation22_spill] sm:$0xff] %v6081_v30 }
  0x6a   : > { %267 = vst.msk [vmem:[#allocation3] sm:$0xff] %vm266_vm2, %v8724_v0 }
  0x6b   : > { %4410 = vrot.lane.b32.xlu0 %v5958_v62, %s5624_s11  ;;  %268 = vst.msk [vmem:[#allocation3 + $0x8] sm:$0xff] %vm266_vm2, %v8724_v0 }
  0x6c   : > { %269 = vst.msk [vmem:[#allocation3 + $0x10] sm:$0xff] %vm266_vm2, %v8724_v0 }
  0x6d   : > { %4420 = vrot.lane.b32.xlu2 %v5960_v3, %s5624_s11  ;;  %8836 = vst [vmem:[#allocation23_spill] sm:$0xff] %v6099_v42  ;;  %v6133_v42 = vld [vmem:[#allocation2 + $0x168] sm:$0xff] }
  0x6e   : > { %8837 = vst [vmem:[#allocation24_spill] sm:$0xff] %v6101_v46  ;;  %v6135_v46 = vld [vmem:[#allocation2 + $0x170] sm:$0xff] }
  0x6f   : > { %4415 = vrot.lane.b32.xlu1 %v5964_v4, %s5624_s11  ;;  %271 = vst.msk [vmem:[#allocation3 + $0x198] sm:$0xff] %vm266_vm2, %v8724_v0 }
  0x70   : > { %272 = vst.msk [vmem:[#allocation3 + $0x1a0] sm:$0xff] %vm266_vm2, %v8724_v0 }
  0x71   : > { %273 = vst.msk [vmem:[#allocation3 + $0x1a8] sm:$0xff] %vm266_vm2, %v8724_v0 }
  0x72   : > { %8838 = vst [vmem:[#allocation25_spill] sm:$0xff] %v6119_v35 }
  0x73   : > { %4425 = vrot.lane.b32.xlu0 %v5974_v12, %s5624_s11  ;;  %8839 = vst [vmem:[#allocation26_spill] sm:$0xff] %v6121_v10 }
  0x74   : > { %8840 = vst [vmem:[#allocation27_spill] sm:$0xff] %v6133_v42 }
  0x75   : > { %4435 = vrot.lane.b32.xlu2 %v4434_v17, %s5625_s12  ;;  %v6077_v17 = vpack.i.bf16 %v6067_v13, %v6065_v8  ;;  %v6095_v13 = vpack.i.bf16 %v6081_v30, %v6079_v26  ;;  %8841 = vst [vmem:[#allocation28_spill] sm:$0xff] %v6135_v46  ;;  %v6147_v30 = vpack.i.bf16 %v6135_v46, %v6133_v42 }
  0x77   : > { %4430 = vrot.lane.b32.xlu1 %v5980_v19, %s5624_s11 }
  0x7b   : > { %4440 = vrot.lane.b32.xlu0 %v5996_v27, %s5625_s12 }
  0x7d   : > { %4450 = vrot.lane.b32.xlu2 %v6007_v36, %s5625_s12 }
  0x7f   : > { %4445 = vrot.lane.b32.xlu1 %v6013_v37, %s5625_s12  ;;  %v6027_v47 = vpop.permute.xlu2 %4295 }
  0x83   : > { %4455 = vrot.lane.b32.xlu0 %v6031_v48, %s5625_s12 }
  0x85   : > { %4465 = vrot.lane.b32.xlu2 %v6039_v53, %s5625_s12 }
  0x87   : > { %4460 = vrot.lane.b32.xlu1 %v6045_v56, %s5625_s12  ;;  %v6059_v1 = vpop.permute.xlu2 %4300 }
  0x8b   : > { %4470 = vrot.lane.b32.xlu0 %v6063_v7, %s5625_s12 }
  0x8d   : > { %4480 = vrot.lane.b32.xlu2 %v6071_v16, %s5625_s12 }
  0x8f   : > { %4475 = vrot.lane.b32.xlu1 %v6077_v17, %s5625_s12  ;;  %v6091_v8 = vpop.permute.xlu2 %4315 }
  0x92   : > { %v6109_v51 = vpop.permute.xlu0 %4275 }
  0x93   : > { %4485 = vrot.lane.b32.xlu0 %v6095_v13, %s5625_s12 }
  0x95   : > { %4495 = vrot.lane.b32.xlu2 %v6105_v49, %s5625_s12 }
  0x97   : > { %4490 = vrot.lane.b32.xlu1 %v6117_v31, %s5625_s12  ;;  %v6127_v0 = vpop.permute.xlu2 %4330 }
  0x99   : > { %v6137_v22 = vpop.permute.xlu1 %4285 }
  0x9b   : > { %4500 = vrot.lane.b32.xlu0 %v6131_v9, %s5625_s12  ;;  %v6143_v26 = vpop.permute.xlu0 %4280 }
  0x9d   : > { %4510 = vrot.lane.b32.xlu2 %v6139_v20, %s5625_s12 }
  0x9f   : > { %4505 = vrot.lane.b32.xlu1 %v6147_v30, %s5625_s12  ;;  %v6153_v35 = vpop.permute.xlu2 %4345  ;;  %s5633_s12 = smov 64  }
  0xa1   : > { %v6155_v10 = vpop.permute.xlu1 %4290 }
  0xa3   : > { %4515 = vrot.lane.b32.xlu0 %v5770_v28, %s5626_s13  ;;  %v6159_v61 = vpop.permute.xlu0 %4305 }
  0xa5   : > { %4525 = vrot.lane.b32.xlu2 %v5784_v38, %s5626_s13 }
  0xa7   : > { %4520 = vrot.lane.b32.xlu1 %v5762_v23, %s5626_s13  ;;  %v6165_v63 = vpop.permute.xlu2 %4360 }
  0xa9   : > { %v6167_v42 = vpop.permute.xlu1 %4310 }
  0xab   : > { %4530 = vrot.lane.b32.xlu0 %v5754_v18, %s5626_s13  ;;  %v6171_v46 = vpop.permute.xlu0 %4320 }
  0xad   : > { %4540 = vrot.lane.b32.xlu2 %v5792_v43, %s5626_s13 }
  0xaf   : > { %4535 = vrot.lane.b32.xlu1 %v5778_v33, %s5626_s13  ;;  %v6177_v28 = vpop.permute.xlu2 %4375 }
  0xb1   : > { %v6179_v38 = vpop.permute.xlu1 %4325 }
  0xb3   : > { %4545 = vrot.lane.b32.xlu0 %v5812_v57, %s5626_s13  ;;  %v6183_v23 = vpop.permute.xlu0 %4335 }
  0xb5   : > { %4555 = vrot.lane.b32.xlu2 %v5820_v60, %s5626_s13 }
  0xb7   : > { %4550 = vrot.lane.b32.xlu1 %v5806_v52, %s5626_s13  ;;  %v6189_v18 = vpop.permute.xlu2 %4390  ;;  %v530_v52 = vld [vmem:[#allocation2 + $0x181] sm:$0xff] }
  0xb8   : > { %8842 = vst [vmem:[#allocation29_spill] sm:$0xff] %v6189_v18 }
  0xb9   : > { %v6191_v43 = vpop.permute.xlu1 %4340 }
  0xba   : > { %8843 = vst [vmem:[#allocation30_spill] sm:$0xff] %v6191_v43  ;;  %v531_v43 = vld [vmem:[#allocation2 + $0x189] sm:$0xff] }
  0xbb   : > { %4560 = vrot.lane.b32.xlu0 %v5837_v5, %s5626_s13  ;;  %v6195_v33 = vpop.permute.xlu0 %4350 }
  0xbd   : > { %4570 = vrot.lane.b32.xlu2 %v5845_v6, %s5626_s13 }
  0xbf   : > { %4565 = vrot.lane.b32.xlu1 %v5831_v2, %s5626_s13  ;;  %v6201_v57 = vpop.permute.xlu2 %4405  ;;  %v6215_v2 = vpack.i.bf16 %v531_v43, %v530_v52 }
  0xc1   : > { %v6203_v60 = vpop.permute.xlu1 %4355 }
  0xc3   : > { %4575 = vrot.lane.b32.xlu0 %v5865_v14, %s5626_s13 }
  0xc5   : > { %v6207_v18 = vpop.permute.xlu0 %4365  ;;  %4585 = vrot.lane.b32.xlu2 %v5873_v15, %s5626_s13 }
  0xc7   : > { %4580 = vrot.lane.b32.xlu1 %v5859_v11, %s5626_s13  ;;  %v6213_v5 = vpop.permute.xlu2 %4420 }
  0xc8   : > { %8844 = vst [vmem:[#allocation31_spill] sm:$0xff] %v6213_v5  ;;  %v563_v5 = vld [vmem:[#allocation2 + $0x18a] sm:$0xff] }
  0xc9   : > { %v6217_v6 = vpop.permute.xlu1 %4370 }
  0xcb   : > { %4590 = vrot.lane.b32.xlu0 %v6215_v2, %s5626_s13 }
  0xcd   : > { %v6221_v14 = vpop.permute.xlu0 %4380  ;;  %4600 = vrot.lane.b32.xlu2 %v5910_v29, %s5627_s14 }
  0xcf   : > { %4595 = vrot.lane.b32.xlu1 %v5887_v21, %s5627_s14  ;;  %v6227_v15 = vpop.permute.xlu2 %4435 }
  0xd1   : > { %v6229_v11 = vpop.permute.xlu1 %4385 }
  0xd3   : > { %4605 = vrot.lane.b32.xlu0 %v5918_v32, %s5627_s14 }
  0xd5   : > { %v6233_v43 = vpop.permute.xlu0 %4395  ;;  %4615 = vrot.lane.b32.xlu2 %v5934_v40, %s5627_s14 }
  0xd7   : > { %4610 = vrot.lane.b32.xlu1 %v5920_v34, %s5627_s14  ;;  %v6239_v52 = vpop.permute.xlu2 %4450 }
  0xd8   : > { %8845 = vst [vmem:[#allocation32_spill] sm:$0xff] %v6239_v52  ;;  %v650_v52 = vld [vmem:[#allocation2 + $0x12a] sm:$0xff] }
  0xd9   : > { %v6241_v29 = vpop.permute.xlu1 %4400 }
  0xdb   : > { %4620 = vrot.lane.b32.xlu0 %v5940_v45, %s5627_s14 }
  0xdd   : > { %v6245_v21 = vpop.permute.xlu0 %4410  ;;  %4630 = vrot.lane.b32.xlu2 %v5946_v50, %s5627_s14 }
  0xdf   : > { %4625 = vrot.lane.b32.xlu1 %v5936_v44, %s5627_s14  ;;  %v6251_v32 = vpop.permute.xlu2 %4465 }
  0xe0   : > { %8846 = vst [vmem:[#allocation33_spill] sm:$0xff] %v6251_v32  ;;  %v8904_v32 = vld [vmem:[#allocation16_spill] sm:$0xff] }
  0xe1   : > { %v6253_v40 = vpop.permute.xlu1 %4415 }
  0xe2   : > { %8847 = vst [vmem:[#allocation34_spill] sm:$0xff] %v6253_v40  ;;  %v618_v40 = vld [vmem:[#allocation2 + $0x129] sm:$0xff] }
  0xe3   : > { %4635 = vrot.lane.b32.xlu0 %v5952_v55, %s5627_s14 }
  0xe5   : > { %v6257_v34 = vpop.permute.xlu0 %4425  ;;  %4645 = vrot.lane.b32.xlu2 %v5958_v62, %s5627_s14  ;;  %v562_v62 = vld [vmem:[#allocation2 + $0x182] sm:$0xff] }
  0xe7   : > { %4640 = vrot.lane.b32.xlu1 %v5948_v54, %s5627_s14  ;;  %v6263_v45 = vpop.permute.xlu2 %4480 }
  0xe8   : > { %8848 = vst [vmem:[#allocation35_spill] sm:$0xff] %v6263_v45  ;;  %v614_v45 = vld [vmem:[#allocation2 + $0xf9] sm:$0xff] }
  0xe9   : > { %v6265_v50 = vpop.permute.xlu1 %4430 }
  0xea   : > { %8849 = vst [vmem:[#allocation36_spill] sm:$0xff] %v6265_v50  ;;  %v6281_v50 = vpack.i.bf16 %v563_v5, %v562_v62  ;;  %v596_v62 = vld [vmem:[#allocation2 + $0x1a0] sm:$0xff] }
  0xeb   : > { %4650 = vrot.lane.b32.xlu0 %v5964_v4, %s5627_s14 }
  0xed   : > { %v6269_v44 = vpop.permute.xlu0 %4440  ;;  %4660 = vrot.lane.b32.xlu2 %v5974_v12, %s5627_s14 }
  0xee   : > { %8850 = vst [vmem:[#allocation37_spill] sm:$0xff] %v6269_v44  ;;  %v606_v44 = vld [vmem:[#allocation2 + $0x99] sm:$0xff] }
  0xef   : > { %4655 = vrot.lane.b32.xlu1 %v5960_v3, %s5627_s14  ;;  %v6275_v55 = vpop.permute.xlu2 %4495 }
  0xf0   : > { %8851 = vst [vmem:[#allocation38_spill] sm:$0xff] %v6275_v55  ;;  %v605_v55 = vld [vmem:[#allocation2 + $0x91] sm:$0xff] }
  0xf1   : > { %v6277_v54 = vpop.permute.xlu1 %4445 }
  0xf2   : > { %8852 = vst [vmem:[#allocation39_spill] sm:$0xff] %v6277_v54 }
  0xf3   : > { %4665 = vrot.lane.b32.xlu0 %v5980_v19, %s5627_s14 }
  0xf5   : > { %v6283_v4 = vpop.permute.xlu0 %4455  ;;  %4675 = vrot.lane.b32.xlu2 %v5996_v27, %s5628_s15 }
  0xf7   : > { %4670 = vrot.lane.b32.xlu1 %v6281_v50, %s5627_s14  ;;  %v6289_v3 = vpop.permute.xlu2 %4510 }
  0xf8   : > { %8853 = vst [vmem:[#allocation40_spill] sm:$0xff] %v6289_v3  ;;  %v607_v3 = vld [vmem:[#allocation2 + $0xa9] sm:$0xff] }
  0xf9   : > { %v6291_v12 = vpop.permute.xlu1 %4460 }
  0xfb   : > { %4680 = vrot.lane.b32.xlu0 %v6013_v37, %s5628_s15 }
  0xfd   : > { %v6295_v54 = vpop.permute.xlu0 %4470  ;;  %4690 = vrot.lane.b32.xlu2 %v6031_v48, %s5628_s15 }
  0xfe   : > { %8854 = vst [vmem:[#allocation41_spill] sm:$0xff] %v6295_v54  ;;  %v604_v54 = vld [vmem:[#allocation2 + $0x81] sm:$0xff] }
  0xff   : > { %4685 = vrot.lane.b32.xlu1 %v6007_v36, %s5628_s15  ;;  %v6301_v19 = vpop.permute.xlu2 %4525 }
 0x100   : > { %8855 = vst [vmem:[#allocation42_spill] sm:$0xff] %v6301_v19  ;;  %v599_v19 = vld [vmem:[#allocation2 + $0x49] sm:$0xff] }
 0x101   : > { %v6303_v27 = vpop.permute.xlu1 %4475 }
 0x103   : > { %4695 = vrot.lane.b32.xlu0 %v6045_v56, %s5628_s15 }
 0x105   : > { %v6307_v5 = vpop.permute.xlu0 %4485  ;;  %4705 = vrot.lane.b32.xlu2 %v6063_v7, %s5628_s15 }
 0x106   : > { %8856 = vst [vmem:[#allocation43_spill] sm:$0xff] %v6307_v5 }
 0x107   : > { %4700 = vrot.lane.b32.xlu1 %v6039_v53, %s5628_s15  ;;  %v6313_v37 = vpop.permute.xlu2 %4540 }
 0x109   : > { %v6315_v48 = vpop.permute.xlu1 %4490 }
 0x10a   : > { %8857 = vst [vmem:[#allocation44_spill] sm:$0xff] %v6315_v48  ;;  %v597_v48 = vld [vmem:[#allocation2 + $0x31] sm:$0xff] }
 0x10b   : > { %4710 = vrot.lane.b32.xlu0 %v6077_v17, %s5628_s15  ;;  %v595_v17 = vld [vmem:[#allocation2 + $0x198] sm:$0xff] }
 0x10d   : > { %v6319_v36 = vpop.permute.xlu0 %4500  ;;  %4720 = vrot.lane.b32.xlu2 %v6095_v13, %s5628_s15 }
 0x10e   : > { %8858 = vst [vmem:[#allocation45_spill] sm:$0xff] %v6319_v36  ;;  %v4749_v36 = vpack.i.bf16 %v596_v62, %v595_v17 }
 0x10f   : > { %4715 = vrot.lane.b32.xlu1 %v6071_v16, %s5628_s15  ;;  %v6325_v56 = vpop.permute.xlu2 %4555 }
 0x111   : > { %v6327_v7 = vpop.permute.xlu1 %4505 }
 0x113   : > { %4725 = vrot.lane.b32.xlu0 %v6117_v31, %s5628_s15  ;;  %v598_v31 = vld [vmem:[#allocation2 + $0x39] sm:$0xff] }
 0x115   : > { %v6331_v53 = vpop.permute.xlu0 %4515  ;;  %4735 = vrot.lane.b32.xlu2 %v6131_v9, %s5628_s15  ;;  %v601_v9 = vld [vmem:[#allocation2 + $0x61] sm:$0xff] }
 0x116   : > { %8859 = vst [vmem:[#allocation46_spill] sm:$0xff] %v6331_v53  ;;  %v602_v53 = vld [vmem:[#allocation2 + $0x69] sm:$0xff] }
 0x117   : > { %4730 = vrot.lane.b32.xlu1 %v6105_v49, %s5628_s15  ;;  %v6337_v13 = vpop.permute.xlu2 %4570  ;;  %v4764_v62 = vpack.i.bf16 %v602_v53, %v601_v9 }
 0x118   : > { %8860 = vst [vmem:[#allocation47_spill] sm:$0xff] %v6337_v13  ;;  %v4754_v13 = vpack.i.bf16 %v598_v31, %v597_v48 }
 0x119   : > { %v6339_v16 = vpop.permute.xlu1 %4520 }
 0x11a   : > { %8861 = vst [vmem:[#allocation48_spill] sm:$0xff] %v6339_v16  ;;  %v600_v16 = vld [vmem:[#allocation2 + $0x51] sm:$0xff] }
 0x11b   : > { %4740 = vrot.lane.b32.xlu0 %v6147_v30, %s5628_s15  ;;  %v4759_v30 = vpack.i.bf16 %v600_v16, %v599_v19  ;;  %v4774_v19 = vpack.i.bf16 %v606_v44, %v605_v55  ;;  %v610_v16 = vld [vmem:[#allocation2 + $0xc9] sm:$0xff] }
 0x11c   : > { %v615_v55 = vld [vmem:[#allocation2 + $0x109] sm:$0xff] }
 0x11d   : > { %v6343_v5 = vpop.permute.xlu0 %4530  ;;  %4750 = vrot.lane.b32.xlu2 %v4749_v36, %s5628_s15 }
 0x11e   : > { %8862 = vst [vmem:[#allocation49_spill] sm:$0xff] %v6343_v5  ;;  %v603_v5 = vld [vmem:[#allocation2 + $0x79] sm:$0xff] }
 0x11f   : > { %4745 = vrot.lane.b32.xlu1 %v6139_v20, %s5628_s15  ;;  %v6348_v49 = vpop.permute.xlu2 %4585  ;;  %v608_v20 = vld [vmem:[#allocation2 + $0xb1] sm:$0xff]  ;;  %v4769_v31 = vpack.i.bf16 %v604_v54, %v603_v5  ;;  %v611_v5 = vld [vmem:[#allocation2 + $0xd9] sm:$0xff] }
 0x120   : > { %v4779_v9 = vpack.i.bf16 %v608_v20, %v607_v3  ;;  %v616_v20 = vld [vmem:[#allocation2 + $0x111] sm:$0xff] }
 0x121   : > { %v6350_v17 = vpop.permute.xlu1 %4535 }
 0x123   : > { %4755 = vrot.lane.b32.xlu0 %v4754_v13, %s5629_s16  ;;  %v609_v13 = vld [vmem:[#allocation2 + $0xc1] sm:$0xff] }
 0x124   : > { %v4784_v54 = vpack.i.bf16 %v610_v16, %v609_v13  ;;  %v4799_v13 = vpack.i.bf16 %v616_v20, %v615_v55  ;;  %v617_v16 = vld [vmem:[#allocation2 + $0x121] sm:$0xff]  ;;  %v623_v55 = vld [vmem:[#allocation2 + $0x169] sm:$0xff]  ;;  %v624_v20 = vld [vmem:[#allocation2 + $0x171] sm:$0xff] }
 0x125   : > { %v6353_v36 = vpop.permute.xlu0 %4545  ;;  %4765 = vrot.lane.b32.xlu2 %v4764_v62, %s5629_s16  ;;  %v613_v62 = vld [vmem:[#allocation2 + $0xf1] sm:$0xff] }
 0x126   : > { %8863 = vst [vmem:[#allocation50_spill] sm:$0xff] %v6353_v36  ;;  %v4794_v3 = vpack.i.bf16 %v614_v45, %v613_v62  ;;  %v621_v62 = vld [vmem:[#allocation2 + $0x151] sm:$0xff] }
 0x127   : > { %4760 = vrot.lane.b32.xlu1 %v4759_v30, %s5629_s16  ;;  %v6357_v48 = vpop.permute.xlu2 %4600 }
 0x128   : > { %8864 = vst [vmem:[#allocation51_spill] sm:$0xff] %v6357_v48  ;;  %v612_v48 = vld [vmem:[#allocation2 + $0xe1] sm:$0xff] }
 0x129   : > { %v6359_v53 = vpop.permute.xlu1 %4550  ;;  %v4789_v44 = vpack.i.bf16 %v612_v48, %v611_v5  ;;  %v4804_v48 = vpack.i.bf16 %v618_v40, %v617_v16  ;;  %v628_v40 = vld [vmem:[#allocation2 + $0x1a1] sm:$0xff]  ;;  %v631_v16 = vld [vmem:[#allocation2 + $0x4a] sm:$0xff] }
 0x12a   : > { %8865 = vst [vmem:[#allocation52_spill] sm:$0xff] %v6359_v53 }
 0x12b   : > { %4770 = vrot.lane.b32.xlu0 %v4769_v31, %s5629_s16 }
 0x12d   : > { %v6362_v36 = vpop.permute.xlu0 %4560  ;;  %4780 = vrot.lane.b32.xlu2 %v4779_v9, %s5629_s16  ;;  %v619_v9 = vld [vmem:[#allocation2 + $0x139] sm:$0xff] }
 0x12e   : > { %8866 = vst [vmem:[#allocation53_spill] sm:$0xff] %v6362_v36  ;;  %v620_v36 = vld [vmem:[#allocation2 + $0x141] sm:$0xff] }
 0x12f   : > { %4775 = vrot.lane.b32.xlu1 %v4774_v19, %s5629_s16  ;;  %v6366_v30 = vpop.permute.xlu2 %4615  ;;  %v4809_v45 = vpack.i.bf16 %v620_v36, %v619_v9  ;;  %v4819_v36 = vpack.i.bf16 %v624_v20, %v623_v55  ;;  %v627_v9 = vld [vmem:[#allocation2 + $0x199] sm:$0xff]  ;;  %v633_v20 = vld [vmem:[#allocation2 + $0x62] sm:$0xff] }
 0x131   : > { %v6368_v53 = vpop.permute.xlu1 %4565 }
 0x132   : > { %8867 = vst [vmem:[#allocation54_spill] sm:$0xff] %v6368_v53 }
 0x133   : > { %4785 = vrot.lane.b32.xlu0 %v4784_v54, %s5629_s16  ;;  %v622_v54 = vld [vmem:[#allocation2 + $0x159] sm:$0xff] }
 0x135   : > { %v6371_v31 = vpop.permute.xlu0 %4575  ;;  %4795 = vrot.lane.b32.xlu2 %v4794_v3, %s5629_s16 }
 0x136   : > { %8868 = vst [vmem:[#allocation55_spill] sm:$0xff] %v6371_v31  ;;  %v644_v31 = vld [vmem:[#allocation2 + $0xe2] sm:$0xff] }
 0x137   : > { %4790 = vrot.lane.b32.xlu1 %v4789_v44, %s5629_s16  ;;  %v6375_v19 = vpop.permute.xlu2 %4630  ;;  %v4814_v44 = vpack.i.bf16 %v622_v54, %v621_v62  ;;  %v4829_v62 = vpack.i.bf16 %v628_v40, %v627_v9  ;;  %v629_v54 = vld [vmem:[#allocation2 + $0x32] sm:$0xff] }
 0x138   : > { %8869 = vst [vmem:[#allocation56_spill] sm:$0xff] %v6375_v19 }
 0x139   : > { %v6377_v53 = vpop.permute.xlu1 %4580 }
 0x13a   : > { %8870 = vst [vmem:[#allocation57_spill] sm:$0xff] %v6377_v53  ;;  %v630_v53 = vld [vmem:[#allocation2 + $0x3a] sm:$0xff] }
 0x13b   : > { %4800 = vrot.lane.b32.xlu0 %v4799_v13, %s5629_s16  ;;  %v4834_v55 = vpack.i.bf16 %v630_v53, %v629_v54  ;;  %v640_v54 = vld [vmem:[#allocation2 + $0xb2] sm:$0xff] }
 0x13d   : > { %v6380_v5 = vpop.permute.xlu0 %4590  ;;  %4810 = vrot.lane.b32.xlu2 %v4809_v45, %s5629_s16  ;;  %v632_v45 = vld [vmem:[#allocation2 + $0x52] sm:$0xff] }
 0x13e   : > { %8871 = vst [vmem:[#allocation58_spill] sm:$0xff] %v6380_v5 }
 0x13f   : > { %4805 = vrot.lane.b32.xlu1 %v4804_v48, %s5629_s16  ;;  %v6384_v3 = vpop.permute.xlu2 %4645 }
 0x140   : > { %8872 = vst [vmem:[#allocation59_spill] sm:$0xff] %v6384_v3 }
 0x141   : > { %v6386_v19 = vpop.permute.xlu1 %4595 }
 0x142   : > { %8873 = vst [vmem:[#allocation60_spill] sm:$0xff] %v6386_v19 }
 0x143   : > { %4815 = vrot.lane.b32.xlu0 %v4814_v44, %s5629_s16  ;;  %v4839_v44 = vpack.i.bf16 %v632_v45, %v631_v16 }
 0x145   : > { %v6389_v13 = vpop.permute.xlu0 %4605  ;;  %4825 = vrot.lane.b32.xlu2 %v6215_v2, %s5629_s16  ;;  %v637_v2 = vld [vmem:[#allocation2 + $0x92] sm:$0xff] }
 0x146   : > { %8874 = vst [vmem:[#allocation61_spill] sm:$0xff] %v6389_v13  ;;  %v634_v13 = vld [vmem:[#allocation2 + $0x6a] sm:$0xff] }
 0x147   : > { %4820 = vrot.lane.b32.xlu1 %v4819_v36, %s5629_s16  ;;  %v6394_v48 = vpop.permute.xlu2 %4660  ;;  %v638_v36 = vld [vmem:[#allocation2 + $0x9a] sm:$0xff]  ;;  %v4844_v40 = vpack.i.bf16 %v634_v13, %v633_v20  ;;  %v641_v20 = vld [vmem:[#allocation2 + $0xc2] sm:$0xff] }
 0x148   : > { %8875 = vst [vmem:[#allocation62_spill] sm:$0xff] %v6394_v48  ;;  %v635_v48 = vld [vmem:[#allocation2 + $0x7a] sm:$0xff]  ;;  %v4854_v45 = vpack.i.bf16 %v638_v36, %v637_v2 }
 0x149   : > { %v6396_v3 = vpop.permute.xlu1 %4610  ;;  %v646_v36 = vld [vmem:[#allocation2 + $0xfa] sm:$0xff] }
 0x14a   : > { %8876 = vst [vmem:[#allocation63_spill] sm:$0xff] %v6396_v3  ;;  %v636_v3 = vld [vmem:[#allocation2 + $0x82] sm:$0xff] }
 0x14b   : > { %4830 = vrot.lane.b32.xlu0 %v4829_v62, %s5629_s16  ;;  %v4849_v53 = vpack.i.bf16 %v636_v3, %v635_v48  ;;  %v639_v62 = vld [vmem:[#allocation2 + $0xaa] sm:$0xff]  ;;  %v645_v48 = vld [vmem:[#allocation2 + $0xf2] sm:$0xff] }
 0x14c   : > { %v4859_v13 = vpack.i.bf16 %v640_v54, %v639_v62  ;;  %v4874_v62 = vpack.i.bf16 %v646_v36, %v645_v48  ;;  %v647_v54 = vld [vmem:[#allocation2 + $0x10a] sm:$0xff]  ;;  %v653_v36 = vld [vmem:[#allocation2 + $0x152] sm:$0xff] }
 0x14d   : > { %v6399_v19 = vpop.permute.xlu0 %4620  ;;  %4840 = vrot.lane.b32.xlu2 %v4839_v44, %s5630_s17  ;;  %v643_v44 = vld [vmem:[#allocation2 + $0xda] sm:$0xff] }
 0x14e   : > { %v4869_v2 = vpack.i.bf16 %v644_v31, %v643_v44  ;;  %v651_v44 = vld [vmem:[#allocation2 + $0x13a] sm:$0xff] }
 0x14f   : > { %4835 = vrot.lane.b32.xlu1 %v4834_v55, %s5630_s17  ;;  %v6403_v9 = vpop.permute.xlu2 %4675 }
 0x150   : > { %8877 = vst [vmem:[#allocation64_spill] sm:$0xff] %v6403_v9  ;;  %v642_v9 = vld [vmem:[#allocation2 + $0xca] sm:$0xff] }
 0x151   : > { %v6405_v16 = vpop.permute.xlu1 %4625  ;;  %v4864_v3 = vpack.i.bf16 %v642_v9, %v641_v20 }
 0x152   : > { %8878 = vst [vmem:[#allocation65_spill] sm:$0xff] %v6405_v16 }
 0x153   : > { %4845 = vrot.lane.b32.xlu0 %v4844_v40, %s5630_s17 }
 0x155   : > { %v6408_v5 = vpop.permute.xlu0 %4635  ;;  %4855 = vrot.lane.b32.xlu2 %v4854_v45, %s5630_s17  ;;  %v649_v45 = vld [vmem:[#allocation2 + $0x122] sm:$0xff] }
 0x156   : > { %v4884_v31 = vpack.i.bf16 %v650_v52, %v649_v45 }
 0x157   : > { %4850 = vrot.lane.b32.xlu1 %v4849_v53, %s5630_s17  ;;  %v6412_v55 = vpop.permute.xlu2 %4690 }
 0x158   : > { %8879 = vst [vmem:[#allocation66_spill] sm:$0xff] %v6412_v55  ;;  %v648_v55 = vld [vmem:[#allocation2 + $0x112] sm:$0xff] }
 0x159   : > { %v6414_v16 = vpop.permute.xlu1 %4640  ;;  %v4879_v9 = vpack.i.bf16 %v648_v55, %v647_v54  ;;  %v659_v54 = vld [vmem:[#allocation2 + $0x19a] sm:$0xff] }
 0x15a   : > { %8880 = vst [vmem:[#allocation67_spill] sm:$0xff] %v6414_v16 }
 0x15b   : > { %4860 = vrot.lane.b32.xlu0 %v4859_v13, %s5630_s17  ;;  %v652_v13 = vld [vmem:[#allocation2 + $0x142] sm:$0xff] }
 0x15c   : > { %v4889_v48 = vpack.i.bf16 %v652_v13, %v651_v44  ;;  %v4298_v13 = vunpack.i.h.bf16 %v6027_v47 }
 0x15d   : > { %v6417_v40 = vpop.permute.xlu0 %4650  ;;  %4870 = vrot.lane.b32.xlu2 %v4869_v2, %s5630_s17  ;;  %v655_v2 = vld [vmem:[#allocation2 + $0x16a] sm:$0xff] }
 0x15e   : > { %8881 = vst [vmem:[#allocation68_spill] sm:$0xff] %v6417_v40  ;;  %v656_v40 = vld [vmem:[#allocation2 + $0x172] sm:$0xff] }
 0x15f   : > { %4865 = vrot.lane.b32.xlu1 %v4864_v3, %s5630_s17  ;;  %v6421_v53 = vpop.permute.xlu2 %4705  ;;  %v4899_v52 = vpack.i.bf16 %v656_v40, %v655_v2  ;;  %v4303_v40 = vunpack.i.h.bf16 %v6059_v1  ;;  %v4318_v2 = vunpack.i.h.bf16 %v6091_v8 }
 0x160   : > { %8882 = vst [vmem:[#allocation69_spill] sm:$0xff] %v6421_v53  ;;  %v654_v53 = vld [vmem:[#allocation2 + $0x15a] sm:$0xff] }
 0x161   : > { %v6423_v16 = vpop.permute.xlu1 %4655  ;;  %v4894_v55 = vpack.i.bf16 %v654_v53, %v653_v36  ;;  %v4302_v53 = vunpack.i.l.bf16 %v6059_v1  ;;  %v4278_v36 = vunpack.i.h.bf16 %v6109_v51 }
 0x162   : > { %8883 = vst [vmem:[#allocation70_spill] sm:$0xff] %v6423_v16 }
 0x163   : > { %4875 = vrot.lane.b32.xlu0 %v4874_v62, %s5630_s17 }
 0x165   : > { %v6426_v20 = vpop.permute.xlu0 %4665  ;;  %4885 = vrot.lane.b32.xlu2 %v4884_v31, %s5630_s17  ;;  %v660_v31 = vld [vmem:[#allocation2 + $0x1a2] sm:$0xff] }
 0x167   : > { %4880 = vrot.lane.b32.xlu1 %v4879_v9, %s5630_s17  ;;  %v6430_v3 = vpop.permute.xlu2 %4720  ;;  %v4297_v9 = vunpack.i.l.bf16 %v6027_v47  ;;  %v4332_v47 = vunpack.i.l.bf16 %v6127_v0 }
 0x168   : > { %8884 = vst [vmem:[#allocation71_spill] sm:$0xff] %v6430_v3  ;;  %v4277_v3 = vunpack.i.l.bf16 %v6109_v51  ;;  %v6465_v51 = vsel %vm224_vm0, %v6017_v41, %v4303_v40  ;;  %v8895_v40 = vld [vmem:[#allocation9_spill] sm:$0xff] }
 0x169   : > { %v6432_v16 = vpop.permute.xlu1 %4670  ;;  %v1693_v1 = vsel %vm224_vm0, %v5987_v24, %v4297_v9  ;;  %v6471_v24 = vsel %vm224_vm0, %v6015_v39, %v4302_v53  ;;  %v8891_v39 = vld [vmem:[#allocation22_spill] sm:$0xff] }
 0x16a   : > { %8885 = vst [vmem:[#allocation72_spill] sm:$0xff] %v6432_v16  ;;  %v4288_v16 = vunpack.i.h.bf16 %v6137_v22 }
 0x16b   : > { %4890 = vrot.lane.b32.xlu0 %v4889_v48, %s5630_s17  ;;  %v4317_v48 = vunpack.i.l.bf16 %v6091_v8  ;;  %v4287_v8 = vunpack.i.l.bf16 %v6137_v22  ;;  %v6475_v22 = vsel %vm224_vm0, %v6049_v59, %v4318_v2  ;;  %v8893_v59 = vld [vmem:[#allocation21_spill] sm:$0xff]  ;;  %v8896_v2 = vld [vmem:[#allocation10_spill] sm:$0xff] }
 0x16d   : > { %v6435_v45 = vpop.permute.xlu0 %4680  ;;  %4900 = vrot.lane.b32.xlu2 %v4899_v52, %s5630_s17  ;;  %v4909_v52 = vpack.i.bf16 %v660_v31, %v659_v54  ;;  %v4283_v54 = vunpack.i.h.bf16 %v6143_v26  ;;  %v6479_v31 = vsel %vm224_vm0, %v6047_v58, %v4317_v48  ;;  %v4348_v58 = vunpack.i.h.bf16 %v6153_v35 }
 0x16e   : > { %8886 = vst [vmem:[#allocation73_spill] sm:$0xff] %v6435_v45  ;;  %v372_v45 = vld [vmem:[#allocation2] sm:$0xff]  ;;  %v6501_v53 = vsel %vm224_vm0, %v8895_v40, %v4287_v8  ;;  %v6505_v48 = vsel %vm224_vm0, %v8896_v2, %v4288_v16  ;;  %v4308_v8 = vunpack.i.h.bf16 %v6159_v61  ;;  %v4313_v16 = vunpack.i.h.bf16 %v6167_v42  ;;  %v8899_v2 = vld [vmem:[#allocation26_spill] sm:$0xff] }
 0x16f   : > { %4895 = vrot.lane.b32.xlu1 %v4894_v55, %s5630_s17  ;;  %v6439_v62 = vpop.permute.xlu2 %4735  ;;  %v373_v55 = vld [vmem:[#allocation2 + $0x8] sm:$0xff]  ;;  %v4362_v40 = vunpack.i.l.bf16 %v6165_v63 }
 0x170   : > { %8887 = vst [vmem:[#allocation74_spill] sm:$0xff] %v6439_v62 }
 0x171   : > { %v6442_v44 = vpop.permute.xlu1 %4685 }
 0x172   : > { %8888 = vst [vmem:[#allocation75_spill] sm:$0xff] %v6442_v44  ;;  %v4333_v44 = vunpack.i.h.bf16 %v6127_v0  ;;  %v4282_v0 = vunpack.i.l.bf16 %v6143_v26  ;;  %v6488_v26 = vsel %vm224_vm0, %v372_v45, %v4277_v3  ;;  %v4347_v3 = vunpack.i.l.bf16 %v6153_v35 }
 0x173   : > { %4905 = vrot.lane.b32.xlu0 %v6281_v50, %s5630_s17  ;;  %v1694_v50 = vsel %vm224_vm0, %v5989_v25, %v4298_v13  ;;  %v6482_v25 = vsel %vm224_vm0, %v373_v55, %v4278_v36  ;;  %v6496_v13 = vsel %vm224_vm0, %v8893_v59, %v4332_v47  ;;  %v4293_v45 = vunpack.i.h.bf16 %v6155_v10  ;;  %v8897_v36 = vld [vmem:[#allocation7_spill] sm:$0xff]  ;;  %v8898_v55 = vld [vmem:[#allocation8_spill] sm:$0xff] }
 0x174   : > { %v6492_v9 = vsel %vm224_vm0, %v8891_v39, %v4333_v44  ;;  %8894 = vst [vmem:[#allocation21_spill] sm:$0xff] %v6496_v13  ;;  %v1688_v47 = vsel %vm224_vm0, %v8898_v55, %v4283_v54  ;;  %v4292_v39 = vunpack.i.l.bf16 %v6155_v10  ;;  %v4307_v59 = vunpack.i.l.bf16 %v6159_v61  ;;  %v8901_v61 = vld [vmem:[#allocation12_spill] sm:$0xff] }
 0x175   : > { %v6459_v62 = vpop.permute.xlu0 %4695  ;;  %8892 = vst [vmem:[#allocation22_spill] sm:$0xff] %v6492_v9  ;;  %v4363_v35 = vunpack.i.h.bf16 %v6165_v63  ;;  %v4323_v54 = vunpack.i.h.bf16 %v6171_v46  ;;  %v4322_v10 = vunpack.i.l.bf16 %v6171_v46  ;;  %v6534_v13 = vsel %vm224_vm0, %v8901_v61, %v4293_v45  ;;  %v8906_v45 = vld [vmem:[#allocation15_spill] sm:$0xff] }
 0x176   : > { %8889 = vst [vmem:[#allocation76_spill] sm:$0xff] %v6459_v62  ;;  %v4378_v63 = vunpack.i.h.bf16 %v6177_v28  ;;  %v4377_v9 = vunpack.i.l.bf16 %v6177_v28  ;;  %v6546_v46 = vsel %vm224_vm0, %v8904_v32, %v4308_v8  ;;  %v6552_v61 = vsel %vm224_vm0, %v8906_v45, %v4307_v59  ;;  %v8907_v62 = vld [vmem:[#allocation14_spill] sm:$0xff]  ;;  %v8911_v32 = vld [vmem:[#allocation13_spill] sm:$0xff]  ;;  %v8913_v59 = vld [vmem:[#allocation19_spill] sm:$0xff] }
 0x177   : > { %4910 = vrot.lane.b32.xlu1 %v4909_v52, %s5630_s17  ;;  %v6485_v41 = vpop.permute.xlu2 %4750  ;;  %v1687_v52 = vsel %vm224_vm0, %v8897_v36, %v4282_v0  ;;  %v4312_v0 = vunpack.i.l.bf16 %v6167_v42  ;;  %v8900_v36 = vld [vmem:[#allocation25_spill] sm:$0xff]  ;;  %8905 = vst [vmem:[#allocation10_spill] sm:$0xff] %v6546_v46  ;;  %v1700_v28 = vsel %vm224_vm0, %v8907_v62, %v4313_v16  ;;  %v6574_v45 = vsel %vm224_vm0, %v8913_v59, %v4322_v10 }
 0x178   : > { %8890 = vst [vmem:[#allocation77_spill] sm:$0xff] %v6485_v41  ;;  %v6523_v41 = vsel %vm224_vm0, %v8899_v2, %v4348_v58  ;;  %v6530_v55 = vsel %vm224_vm0, %v8900_v36, %v4347_v3  ;;  %v8903_v2 = vld [vmem:[#allocation11_spill] sm:$0xff]  ;;  %v4328_v3 = vunpack.i.h.bf16 %v6179_v38  ;;  %v4327_v36 = vunpack.i.l.bf16 %v6179_v38  ;;  %v8912_v38 = vld [vmem:[#allocation20_spill] sm:$0xff]  ;;  %v8915_v10 = vld [vmem:[#allocation17_spill] sm:$0xff] }
 0x179   : > { %v6509_v44 = vpop.permute.xlu1 %4700  ;;  %v6542_v42 = vsel %vm224_vm0, %v8903_v2, %v4292_v39  ;;  %v6560_v39 = vsel %vm266_vm2, %v1688_v47, %v4363_v35  ;;  %v6566_v8 = vsel %vm224_vm0, %v8911_v32, %v4312_v0  ;;  %v6570_v46 = vsel %vm224_vm0, %v8912_v38, %v4323_v54  ;;  %v8914_v0 = vld [vmem:[#allocation18_spill] sm:$0xff]  ;;  %v8916_v38 = vld [vmem:[#allocation24_spill] sm:$0xff] }
 0x17a   : > { %8909 = vst [vmem:[#allocation8_spill] sm:$0xff] %v6560_v39  ;;  %v4338_v62 = vunpack.i.h.bf16 %v6183_v23  ;;  %v6581_v47 = vsel %vm266_vm2, %v1693_v1, %v4377_v9  ;;  %v4383_v16 = vunpack.i.h.bf16 %v6221_v14  ;;  %v4382_v35 = vunpack.i.l.bf16 %v6221_v14 }
 0x17b   : > { %v6589_v54 = vsel %vm224_vm0, %v8914_v0, %v4328_v3  ;;  %v6593_v32 = vsel %vm224_vm0, %v8915_v10, %v4327_v36  ;;  %v4337_v1 = vunpack.i.l.bf16 %v6183_v23  ;;  %v4543_v9 = vunpack.i.h.bf16 %v6313_v37  ;;  %v8918_v3 = vld [vmem:[#allocation29_spill] sm:$0xff] }
 0x17c   : > { %v4542_v14 = vunpack.i.l.bf16 %v6313_v37  ;;  %v6602_v59 = vsel %vm224_vm0, %v8916_v38, %v4338_v62  ;;  %v4393_v0 = vunpack.i.h.bf16 %v8918_v3  ;;  %v4623_v36 = vunpack.i.h.bf16 %v6399_v19 }
 0x17d   : > { %v6538_v58 = vpop.permute.xlu0 %4710  ;;  %8917 = vst [vmem:[#allocation25_spill] sm:$0xff] %v6602_v59  ;;  %v4622_v10 = vunpack.i.l.bf16 %v6399_v19  ;;  %v1727_v23 = vsel %vm266_vm2, %v6471_v24, %v4382_v35  ;;  %v4702_v37 = vunpack.i.l.bf16 %v6509_v44  ;;  %v4398_v62 = vunpack.i.h.bf16 %v6233_v43 }
 0x17e   : > { %8902 = vst [vmem:[#allocation9_spill] sm:$0xff] %v6538_v58  ;;  %v6557_v58 = vsel %vm266_vm2, %v1687_v52, %v4362_v40  ;;  %v6578_v52 = vsel %vm266_vm2, %v1694_v50, %v4378_v63  ;;  %v4463_v50 = vunpack.i.h.bf16 %v6291_v12  ;;  %v4462_v63 = vunpack.i.l.bf16 %v6291_v12 }
 0x17f   : > { %8908 = vst [vmem:[#allocation7_spill] sm:$0xff] %v6557_v58  ;;  %v6562_v2 = vpop.permute.xlu2 %4765  ;;  %v1728_v12 = vsel %vm266_vm2, %v6465_v51, %v4383_v16  ;;  %v4397_v59 = vunpack.i.l.bf16 %v6233_v43 }
 0x180   : > { %8910 = vst [vmem:[#allocation26_spill] sm:$0xff] %v6562_v2  ;;  %v4703_v2 = vunpack.i.h.bf16 %v6509_v44  ;;  %v1760_v38 = vsel %vm1749_vm3, %v1727_v23, %v4462_v63  ;;  %v1761_v58 = vsel %vm1749_vm3, %v1728_v12, %v4463_v50  ;;  %v4392_v23 = vunpack.i.l.bf16 %v8918_v3 }
 0x181   : > { %v6585_v40 = vpop.permute.xlu1 %4715  ;;  %v1793_v19 = vsel %vm1782_vm4, %v1760_v38, %v4542_v14  ;;  %v1794_v51 = vsel %vm1782_vm4, %v1761_v58, %v4543_v9  ;;  %v4478_v58 = vunpack.i.h.bf16 %v6303_v27  ;;  %v4477_v9 = vunpack.i.l.bf16 %v6303_v27 }
 0x182   : > { %v1826_v16 = vsel %vm1815_vm5, %v1793_v19, %v4622_v10  ;;  %v1827_v44 = vsel %vm1815_vm5, %v1794_v51, %v4623_v36  ;;  %v8920_v10 = vld [vmem:[#allocation23_spill] sm:$0xff]  ;;  %v6643_v38 = vsel %vm266_vm2, %v1700_v28, %v4393_v0  ;;  %v4353_v27 = vunpack.i.h.bf16 %v6195_v33 }
 0x183   : > { %v1859_v63 = vsel %vm1848_vm6, %v1826_v16, %v4702_v37  ;;  %v1860_v50 = vsel %vm1848_vm6, %v1827_v44, %v4703_v2  ;;  %v6637_v43 = vsel %vm224_vm0, %v8920_v10, %v4337_v1  ;;  %v4558_v2 = vunpack.i.h.bf16 %v6325_v56 }
 0x184   : > { %v4557_v37 = vunpack.i.l.bf16 %v6325_v56  ;;  %v4637_v19 = vunpack.i.l.bf16 %v6408_v5  ;;  %v1734_v51 = vsel %vm266_vm2, %v6475_v22, %v4398_v62  ;;  %v1733_v1 = vsel %vm266_vm2, %v6479_v31, %v4397_v59 }
 0x185   : > { %v6613_v39 = vpop.permute.xlu0 %4725  ;;  %v4718_v3 = vunpack.i.h.bf16 %v6585_v40  ;;  %v4352_v28 = vunpack.i.l.bf16 %v6195_v33  ;;  %v4408_v0 = vunpack.i.h.bf16 %v6201_v57  ;;  %v1766_v16 = vsel %vm1749_vm3, %v1733_v1, %v4477_v9 }
 0x186   : > { %8919 = vst [vmem:[#allocation12_spill] sm:$0xff] %v6613_v39  ;;  %v4358_v44 = vunpack.i.h.bf16 %v6203_v60  ;;  %v4407_v22 = vunpack.i.l.bf16 %v6201_v57  ;;  %v1799_v31 = vsel %vm1782_vm4, %v1766_v16, %v4557_v37  ;;  %v4368_v9 = vunpack.i.h.bf16 %v6207_v18 }
 0x187   : > { %v4781_v24 = vpop.permute.xlu2 %4780  ;;  %v4367_v37 = vunpack.i.l.bf16 %v6207_v18  ;;  %v4373_v18 = vunpack.i.h.bf16 %v6217_v6 }
 0x188   : > { %v4783_v35 = vunpack.i.h.bf16 %v4781_v24  ;;  %v4782_v39 = vunpack.i.l.bf16 %v4781_v24  ;;  %v4717_v24 = vunpack.i.l.bf16 %v6585_v40  ;;  %v1832_v40 = vsel %vm1815_vm5, %v1799_v31, %v4637_v19 }
 0x189   : > { %v6625_v12 = vpop.permute.xlu1 %4730  ;;  %v1718_v16 = vsel %vm266_vm2, %v6482_v25, %v4358_v44  ;;  %v4428_v25 = vunpack.i.h.bf16 %v6257_v34  ;;  %v4507_v44 = vunpack.i.l.bf16 %v6327_v7  ;;  %v4508_v31 = vunpack.i.h.bf16 %v6327_v7 }
 0x18a   : > { %v6630_v14 = vsel %vm1881_vm7, %v1859_v63, %v4782_v39  ;;  %v6633_v36 = vsel %vm1881_vm7, %v1860_v50, %v4783_v35  ;;  %v4638_v39 = vunpack.i.h.bf16 %v6408_v5  ;;  %v1767_v5 = vsel %vm1749_vm3, %v1734_v51, %v4478_v58  ;;  %v8922_v51 = vld [vmem:[#allocation28_spill] sm:$0xff] }
 0x18b   : > { %v1800_v59 = vsel %vm1782_vm4, %v1767_v5, %v4558_v2  ;;  %v4357_v50 = vunpack.i.l.bf16 %v6203_v60  ;;  %v1865_v58 = vsel %vm1848_vm6, %v1832_v40, %v4717_v24  ;;  %v4372_v2 = vunpack.i.l.bf16 %v6217_v6 }
 0x18c   : > { %v1833_v35 = vsel %vm1815_vm5, %v1800_v59, %v4638_v39  ;;  %v6682_v60 = vsel %vm266_vm2, %v6566_v8, %v4392_v23  ;;  %v6686_v1 = vsel %vm224_vm0, %v8922_v51, %v4353_v27  ;;  %v6697_v5 = vsel %vm266_vm2, %v6589_v54, %v4408_v0 }
 0x18d   : > { %v6654_v56 = vpop.permute.xlu0 %4740  ;;  %v1866_v10 = vsel %vm1848_vm6, %v1833_v35, %v4718_v3  ;;  %v8923_v3 = vld [vmem:[#allocation27_spill] sm:$0xff]  ;;  %v6701_v8 = vsel %vm266_vm2, %v6593_v32, %v4407_v22  ;;  %v4438_v23 = vunpack.i.h.bf16 %v6227_v15  ;;  %v6706_v27 = vsel %vm266_vm2, %v6488_v26, %v4357_v50 }
 0x18e   : > { %8921 = vst [vmem:[#allocation11_spill] sm:$0xff] %v6654_v56  ;;  %v6690_v24 = vsel %vm224_vm0, %v8923_v3, %v4352_v28  ;;  %v6710_v6 = vsel %vm266_vm2, %v6505_v48, %v4368_v9  ;;  %v4427_v28 = vunpack.i.l.bf16 %v6257_v34  ;;  %v6718_v32 = vsel %vm266_vm2, %v6501_v53, %v4367_v37 }
 0x18f   : > { %v4796_v62 = vpop.permute.xlu2 %4795  ;;  %v6722_v0 = vsel %vm266_vm2, %v6542_v42, %v4372_v2  ;;  %v4458_v26 = vunpack.i.h.bf16 %v6283_v4  ;;  %v6728_v48 = vsel %vm266_vm2, %v6534_v13, %v4373_v18  ;;  %v4388_v34 = vunpack.i.h.bf16 %v6229_v11  ;;  %v1967_v13 = vld [vmem:[%s8708_s1 + $0x10] sm:$0x3] }
 0x190   : > { %v4798_v33 = vunpack.i.h.bf16 %v4796_v62  ;;  %v4797_v63 = vunpack.i.l.bf16 %v4796_v62  ;;  %v4437_v22 = vunpack.i.l.bf16 %v6227_v15  ;;  %v4387_v59 = vunpack.i.l.bf16 %v6229_v11  ;;  %v8927_v15 = vld [vmem:[#allocation32_spill] sm:$0xff] }
 0x191   : > { %v6670_v57 = vpop.permute.xlu1 %4745  ;;  %v6737_v42 = vsel %vm1749_vm3, %v1718_v16, %v4438_v23  ;;  %v4403_v62 = vunpack.i.h.bf16 %v6241_v29  ;;  %v4402_v40 = vunpack.i.l.bf16 %v6241_v29  ;;  %v1746_v35 = vsel %vm266_vm2, %v6523_v41, %v4428_v25 }
 0x192   : > { %v6675_v19 = vsel %vm1881_vm7, %v1865_v58, %v4797_v63  ;;  %v6678_v39 = vsel %vm1881_vm7, %v1866_v10, %v4798_v33  ;;  %v1745_v7 = vsel %vm266_vm2, %v6530_v55, %v4427_v28  ;;  %v4457_v33 = vunpack.i.l.bf16 %v6283_v4 }
 0x193   : > { %v1981_v50 = vunpack.c.l.b16 %v1967_v13  ;;  %v1759_v9 = vsel %vm1749_vm3, %v6578_v52, %v4458_v26  ;;  %v1778_v58 = vsel %vm1749_vm3, %v1745_v7, %v4507_v44  ;;  %v4588_v10 = vunpack.i.h.bf16 %v6348_v49 }
 0x194   : > { %v4587_v37 = vunpack.i.l.bf16 %v6348_v49  ;;  %v1779_v2 = vsel %vm1749_vm3, %v1746_v35, %v4508_v31  ;;  %v4538_v41 = vunpack.i.h.bf16 %v6350_v17  ;;  %v4537_v55 = vunpack.i.l.bf16 %v6350_v17  ;;  %v8924_v31 = vld [vmem:[#allocation76_spill] sm:$0xff] }
 0x195   : > { %v6714_v54 = vpop.permute.xlu0 %4755  ;;  %v1984_v51 = vpack.c.b16 %v1981_v50, %v1981_v50  ;;  %v4618_v4 = vunpack.i.h.bf16 %v6366_v30  ;;  %v4668_v3 = vunpack.i.h.bf16 %v6426_v20  ;;  %v4667_v18 = vunpack.i.l.bf16 %v6426_v20 }
 0x196   : > { %v4617_v52 = vunpack.i.l.bf16 %v6366_v30  ;;  %v4748_v16 = vunpack.i.h.bf16 %v6670_v57  ;;  %v4747_v49 = vunpack.i.l.bf16 %v6670_v57  ;;  %v4413_v28 = vunpack.i.h.bf16 %v6245_v21 }
 0x197   : > { %v6733_v53 = vpop.permute.xlu2 %4810  ;;  %v2038_v25 = vsel %vm2036_vm8, %v1984_v51, 0  ;;  %v1758_v17 = vsel %vm1749_vm3, %v6581_v47, %v4457_v33  ;;  %v1811_v26 = vsel %vm1782_vm4, %v1778_v58, %v4587_v37  ;;  %v1812_v44 = vsel %vm1782_vm4, %v1779_v2, %v4588_v10  ;;  %v4208_v58 = vld [vmem:[%s8708_s1 + $0x8] sm:$0xff] }
 0x198   : > { %2045 = vmatpush.bf16.msra.mxu0 %v2038_v25  ;;  %4214 = vmatpush.bf16.msra.mxu3 %v2038_v25  ;;  %v1791_v30 = vsel %vm1782_vm4, %v1758_v17, %v4537_v55  ;;  %v1792_v20 = vsel %vm1782_vm4, %v1759_v9, %v4538_v41  ;;  %v4698_v57 = vunpack.i.h.bf16 %v8924_v31  ;;  %v4697_v13 = vunpack.i.l.bf16 %v8924_v31  ;;  %v8928_v31 = vld [vmem:[#allocation34_spill] sm:$0xff] }
 0x199   : > { %v6749_v63 = vpop.permute.xlu1 %4760  ;;  %v1844_v7 = vsel %vm1815_vm5, %v1811_v26, %v4667_v18  ;;  %v1845_v50 = vsel %vm1815_vm5, %v1812_v44, %v4668_v3  ;;  %v1824_v10 = vsel %vm1815_vm5, %v1791_v30, %v4617_v52  ;;  %v1825_v37 = vsel %vm1815_vm5, %v1792_v20, %v4618_v4  ;;  %v8925_v52 = vld [vmem:[#allocation33_spill] sm:$0xff]  ;;  %v4207_v44 = vld [vmem:[%s8708_s1] sm:$0xff]  ;;  %v8926_v20 = vld [vmem:[#allocation10_spill] sm:$0xff] }
 0x19a   : > { %v1877_v9 = vsel %vm1848_vm6, %v1844_v7, %v4747_v49  ;;  %v1878_v2 = vsel %vm1848_vm6, %v1845_v50, %v4748_v16  ;;  %v4412_v25 = vunpack.i.l.bf16 %v6245_v21  ;;  %v4467_v17 = vunpack.i.l.bf16 %v8925_v52  ;;  %v8930_v50 = vld [vmem:[#allocation21_spill] sm:$0xff] }
 0x19b   : > { %v1857_v4 = vsel %vm1848_vm6, %v1824_v10, %v4697_v13  ;;  %v1858_v49 = vsel %vm1848_vm6, %v1825_v37, %v4698_v57  ;;  %v1729_v16 = vsel %vm266_vm2, %v6552_v61, %v4387_v59  ;;  %v6801_v26 = vsel %vm1749_vm3, %v6706_v27, %v4437_v22  ;;  %v8933_v10 = vld [vmem:[#allocation37_spill] sm:$0xff] }
 0x19c   : > { %2046 = vmatpush.bf16.msra.mxu0 %v4208_v58  ;;  %4215 = vmatpush.bf16.msra.mxu3 %v4208_v58  ;;  %v1730_v61 = vsel %vm266_vm2, %v8926_v20, %v4388_v34  ;;  %v4417_v27 = vunpack.i.l.bf16 %v8928_v31  ;;  %v4468_v22 = vunpack.i.h.bf16 %v8925_v52  ;;  %v1735_v13 = vsel %vm266_vm2, %v6574_v45, %v4402_v40  ;;  %v8931_v45 = vld [vmem:[#allocation35_spill] sm:$0xff]  ;;  %v8937_v20 = vld [vmem:[#allocation40_spill] sm:$0xff] }
 0x19d   : > { %v6765_v23 = vpop.permute.xlu0 %4770  ;;  %v1736_v11 = vsel %vm266_vm2, %v6570_v46, %v4403_v62  ;;  %v4418_v7 = vunpack.i.h.bf16 %v8928_v31  ;;  %v4483_v29 = vunpack.i.h.bf16 %v8931_v45  ;;  %v4482_v40 = vunpack.i.l.bf16 %v8931_v45  ;;  %v8932_v62 = vld [vmem:[#allocation36_spill] sm:$0xff]  ;;  %v8939_v45 = vld [vmem:[#allocation7_spill] sm:$0xff] }
 0x19e   : > { %v4432_v58 = vunpack.i.l.bf16 %v8932_v62  ;;  %v4443_v37 = vunpack.i.h.bf16 %v8933_v10  ;;  %v4512_v31 = vunpack.i.l.bf16 %v8937_v20 }
 0x19f   : > { %v4826_v35 = vpop.permute.xlu2 %4825 }
 0x1a0   : > { %v4828_v47 = vunpack.i.h.bf16 %v4826_v35  ;;  %v4827_v33 = vunpack.i.l.bf16 %v4826_v35  ;;  %v8929_v35 = vld [vmem:[#allocation22_spill] sm:$0xff]  ;;  %2047 = vmatpush.bf16.msra.mxu0 %v4207_v44  ;;  %4216 = vmatpush.bf16.msra.mxu3 %v4207_v44 }
 0x1a1   : > { %v4776_v41 = vpop.permute.xlu1 %4775  ;;  %v6831_v34 = vsel %vm266_vm2, %v8929_v35, %v4413_v28  ;;  %v4433_v28 = vunpack.i.h.bf16 %v8932_v62 }
 0x1a2   : > { %v4778_v55 = vunpack.i.h.bf16 %v4776_v41  ;;  %v4777_v51 = vunpack.i.l.bf16 %v4776_v41  ;;  %v6786_v3 = vsel %vm1881_vm7, %v1877_v9, %v4827_v33  ;;  %v6789_v18 = vsel %vm1881_vm7, %v1878_v2, %v4828_v47 }
 0x1a3   : > { %v6836_v47 = vsel %vm266_vm2, %v8930_v50, %v4412_v25  ;;  %v6839_v33 = vsel %vm1749_vm3, %v1729_v16, %v4467_v17  ;;  %v4442_v9 = vunpack.i.l.bf16 %v8933_v10  ;;  %v1741_v2 = vsel %vm266_vm2, %v6637_v43, %v4417_v27  ;;  %v8935_v17 = vld [vmem:[#allocation25_spill] sm:$0xff]  ;;  %v8940_v10 = vld [vmem:[#allocation8_spill] sm:$0xff] }
 0x1a4   : > { %v6807_v21 = vsel %vm1881_vm7, %v1857_v4, %v4777_v51  ;;  %v6810_v30 = vsel %vm1881_vm7, %v1858_v49, %v4778_v55  ;;  %v6852_v41 = vsel %vm1749_vm3, %v1730_v61, %v4468_v22  ;;  %v8934_v55 = vld [vmem:[#allocation38_spill] sm:$0xff]  ;;  %v1742_v4 = vsel %vm266_vm2, %v8935_v17, %v4418_v7  ;;  %v8936_v49 = vld [vmem:[#allocation39_spill] sm:$0xff]  ;;  %v8938_v27 = vld [vmem:[#allocation41_spill] sm:$0xff] }
 0x1a5   : > { %v6819_v57 = vpop.permute.xlu0 %4785  ;;  %v4498_v51 = vunpack.i.h.bf16 %v8934_v55  ;;  %v4497_v25 = vunpack.i.l.bf16 %v8934_v55  ;;  %v4448_v16 = vunpack.i.h.bf16 %v8936_v49  ;;  %v4447_v44 = vunpack.i.l.bf16 %v8936_v49  ;;  %v8943_v49 = vld [vmem:[#allocation56_spill] sm:$0xff] }
 0x1a6   : > { %v6864_v43 = vsel %vm1749_vm3, %v1735_v13, %v4482_v40  ;;  %v6867_v61 = vsel %vm1749_vm3, %v1736_v11, %v4483_v29  ;;  %v4473_v22 = vunpack.i.h.bf16 %v8938_v27  ;;  %v4472_v35 = vunpack.i.l.bf16 %v8938_v27  ;;  %v8941_v40 = vld [vmem:[#allocation52_spill] sm:$0xff] }
 0x1a7   : > { %v6843_v46 = vpop.permute.xlu2 %4840  ;;  %v1747_v50 = vsel %vm266_vm2, %v6690_v24, %v4432_v58  ;;  %v1748_v7 = vsel %vm266_vm2, %v6686_v1, %v4433_v28  ;;  %v6877_v62 = vsel %vm1749_vm3, %v8939_v45, %v4442_v9  ;;  %v6881_v13 = vsel %vm1749_vm3, %v8940_v10, %v4443_v37 }
 0x1a8   : > { %v1774_v11 = vsel %vm1749_vm3, %v1741_v2, %v4497_v25  ;;  %v1775_v29 = vsel %vm1749_vm3, %v1742_v4, %v4498_v51  ;;  %v4553_v55 = vunpack.i.h.bf16 %v8941_v40  ;;  %v4552_v17 = vunpack.i.l.bf16 %v8941_v40  ;;  %v8942_v51 = vld [vmem:[#allocation55_spill] sm:$0xff] }
 0x1a9   : > { %v6856_v52 = vpop.permute.xlu1 %4790  ;;  %v6891_v1 = vsel %vm1749_vm3, %v6718_v32, %v4447_v44  ;;  %v6895_v28 = vsel %vm1749_vm3, %v6710_v6, %v4448_v16  ;;  %v4513_v58 = vunpack.i.h.bf16 %v8937_v20  ;;  %v1780_v37 = vsel %vm1749_vm3, %v1747_v50, %v4512_v31  ;;  %v8944_v50 = vld [vmem:[#allocation70_spill] sm:$0xff] }
 0x1aa   : > { %v1765_v9 = vsel %vm1749_vm3, %v6643_v38, %v4473_v22  ;;  %v1764_v2 = vsel %vm1749_vm3, %v6682_v60, %v4472_v35  ;;  %v4578_v25 = vunpack.i.h.bf16 %v8942_v51  ;;  %v4577_v4 = vunpack.i.l.bf16 %v8942_v51  ;;  %v8945_v35 = vld [vmem:[#allocation74_spill] sm:$0xff] }
 0x1ab   : > { %v4633_v44 = vunpack.i.h.bf16 %v8943_v49  ;;  %v4632_v6 = vunpack.i.l.bf16 %v8943_v49  ;;  %v1797_v20 = vsel %vm1782_vm4, %v1764_v2, %v4552_v17  ;;  %v1798_v31 = vsel %vm1782_vm4, %v1765_v9, %v4553_v55  ;;  %v8946_v55 = vld [vmem:[#allocation9_spill] sm:$0xff] }
 0x1ac   : > { %v4658_v38 = vunpack.i.h.bf16 %v8944_v50  ;;  %v4657_v60 = vunpack.i.l.bf16 %v8944_v50  ;;  %v4738_v45 = vunpack.i.h.bf16 %v8945_v35  ;;  %v4737_v17 = vunpack.i.l.bf16 %v8945_v35  ;;  %v8947_v50 = vld [vmem:[#allocation58_spill] sm:$0xff] }
 0x1ad   : > { %v6887_v24 = vpop.permute.xlu0 %4800  ;;  %v4713_v9 = vunpack.i.h.bf16 %v8946_v55  ;;  %v4712_v2 = vunpack.i.l.bf16 %v8946_v55  ;;  %v1808_v49 = vsel %vm1782_vm4, %v1775_v29, %v4578_v25  ;;  %v4793_v35 = vunpack.i.h.bf16 %v6856_v52 }
 0x1ae   : > { %v4792_v59 = vunpack.i.l.bf16 %v6856_v52  ;;  %v1841_v51 = vsel %vm1815_vm5, %v1808_v49, %v4658_v38  ;;  %v1781_v38 = vsel %vm1749_vm3, %v1748_v7, %v4513_v58  ;;  %v8951_v58 = vld [vmem:[#allocation77_spill] sm:$0xff] }
 0x1af   : > { %v4856_v32 = vpop.permute.xlu2 %4855  ;;  %v1874_v25 = vsel %vm1848_vm6, %v1841_v51, %v4738_v45 }
 0x1b0   : > { %v4858_v16 = vunpack.i.h.bf16 %v4856_v32  ;;  %v4857_v27 = vunpack.i.l.bf16 %v4856_v32  ;;  %v1807_v32 = vsel %vm1782_vm4, %v1774_v11, %v4577_v4 }
 0x1b1   : > { %v6910_v22 = vpop.permute.xlu1 %4805  ;;  %v1840_v56 = vsel %vm1815_vm5, %v1807_v32, %v4657_v60  ;;  %v8948_v32 = vld [vmem:[#allocation42_spill] sm:$0xff] }
 0x1b2   : > { %v6916_v10 = vsel %vm1914_vm9, %v6807_v21, %v4857_v27  ;;  %v6920_v40 = vsel %vm1914_vm9, %v6810_v30, %v4858_v16  ;;  %v1830_v21 = vsel %vm1815_vm5, %v1797_v20, %v4632_v6  ;;  %v1831_v27 = vsel %vm1815_vm5, %v1798_v31, %v4633_v44 }
 0x1b3   : > { %v4593_v30 = vunpack.i.h.bf16 %v8947_v50  ;;  %v4592_v16 = vunpack.i.l.bf16 %v8947_v50  ;;  %v1873_v29 = vsel %vm1848_vm6, %v1840_v56, %v4737_v17  ;;  %v1863_v44 = vsel %vm1848_vm6, %v1830_v21, %v4712_v2 }
 0x1b4   : > { %v1864_v6 = vsel %vm1848_vm6, %v1831_v27, %v4713_v9  ;;  %v4528_v49 = vunpack.i.h.bf16 %v8948_v32  ;;  %v1896_v45 = vsel %vm1881_vm7, %v1863_v44, %v4792_v59  ;;  %v8949_v9 = vld [vmem:[#allocation72_spill] sm:$0xff]  ;;  %v4527_v7 = vunpack.i.l.bf16 %v8948_v32 }
 0x1b5   : > { %v4816_v55 = vpop.permute.xlu0 %4815  ;;  %v1897_v17 = vsel %vm1881_vm7, %v1864_v6, %v4793_v35  ;;  %v4673_v2 = vunpack.i.h.bf16 %v8949_v9  ;;  %v4672_v51 = vunpack.i.l.bf16 %v8949_v9  ;;  %v8952_v35 = vld [vmem:[#allocation46_spill] sm:$0xff]  ;;  %v1814_v44 = vsel %vm1782_vm4, %v1781_v38, %v4593_v30  ;;  %v8953_v6 = vld [vmem:[#allocation60_spill] sm:$0xff] }
 0x1b6   : > { %v4818_v11 = vunpack.i.h.bf16 %v4816_v55  ;;  %v4817_v4 = vunpack.i.l.bf16 %v4816_v55  ;;  %v4753_v55 = vunpack.i.h.bf16 %v8951_v58  ;;  %v4758_v30 = vunpack.i.h.bf16 %v6714_v54 }
 0x1b7   : > { %v4871_v20 = vpop.permute.xlu2 %4870 }
 0x1b8   : > { %v4873_v31 = vunpack.i.h.bf16 %v4871_v20  ;;  %v4872_v50 = vunpack.i.l.bf16 %v4871_v20  ;;  %v6942_v52 = vsel %vm1881_vm7, %v1873_v29, %v4817_v4  ;;  %v6945_v60 = vsel %vm1881_vm7, %v1874_v25, %v4818_v11 }
 0x1b9   : > { %v6949_v56 = vpop.permute.xlu1 %4820  ;;  %v4752_v11 = vunpack.i.l.bf16 %v8951_v58  ;;  %v4518_v4 = vunpack.i.h.bf16 %v8952_v35  ;;  %v4517_v29 = vunpack.i.l.bf16 %v8952_v35  ;;  %v1813_v25 = vsel %vm1782_vm4, %v1780_v37, %v4592_v16 }
 0x1ba   : > { %v6956_v21 = vsel %vm1914_vm9, %v1896_v45, %v4872_v50  ;;  %v6959_v27 = vsel %vm1914_vm9, %v1897_v17, %v4873_v31  ;;  %v4598_v20 = vunpack.i.h.bf16 %v8953_v6  ;;  %v4597_v31 = vunpack.i.l.bf16 %v8953_v6  ;;  %v8954_v50 = vld [vmem:[#allocation64_spill] sm:$0xff] }
 0x1bb   : > { %8950 = vst [vmem:[#allocation16_spill] sm:$0xff] %v6956_v21  ;;  %v4678_v32 = vunpack.i.h.bf16 %v8954_v50  ;;  %v4677_v45 = vunpack.i.l.bf16 %v8954_v50  ;;  %v1846_v9 = vsel %vm1815_vm5, %v1813_v25, %v4672_v51  ;;  %v1847_v58 = vsel %vm1815_vm5, %v1814_v44, %v4673_v2  ;;  %v8956_v50 = vld [vmem:[#allocation44_spill] sm:$0xff] }
 0x1bc   : > { %v1879_v35 = vsel %vm1848_vm6, %v1846_v9, %v4752_v11  ;;  %v1880_v37 = vsel %vm1848_vm6, %v1847_v58, %v4753_v55  ;;  %v4757_v16 = vunpack.i.l.bf16 %v6714_v54  ;;  %v1784_v38 = vsel %vm1782_vm4, %v6737_v42, %v4518_v4  ;;  %v8955_v55 = vld [vmem:[#allocation43_spill] sm:$0xff] }
 0x1bd   : > { %v4831_v17 = vpop.permute.xlu0 %4830  ;;  %v1783_v6 = vsel %vm1782_vm4, %v6801_v26, %v4517_v29  ;;  %v6992_v11 = vsel %vm1782_vm4, %v6891_v1, %v4527_v7  ;;  %v4488_v25 = vunpack.i.h.bf16 %v8955_v55  ;;  %v1817_v44 = vsel %vm1815_vm5, %v1784_v38, %v4598_v20  ;;  %v8957_v9 = vld [vmem:[#allocation47_spill] sm:$0xff] }
 0x1be   : > { %v4833_v59 = vunpack.i.h.bf16 %v4831_v17  ;;  %v4832_v21 = vunpack.i.l.bf16 %v4831_v17  ;;  %v1816_v54 = vsel %vm1815_vm5, %v1783_v6, %v4597_v31  ;;  %v1850_v26 = vsel %vm1848_vm6, %v1817_v44, %v4678_v32  ;;  %v8960_v44 = vld [vmem:[#allocation51_spill] sm:$0xff] }
 0x1bf   : > { %v1849_v4 = vsel %vm1848_vm6, %v1816_v54, %v4677_v45  ;;  %v4492_v17 = vunpack.i.l.bf16 %v8956_v50  ;;  %v1883_v7 = vsel %vm1881_vm7, %v1850_v26, %v4758_v30  ;;  %v4572_v58 = vunpack.i.l.bf16 %v8957_v9  ;;  %v8958_v45 = vld [vmem:[#allocation48_spill] sm:$0xff]  ;;  %v8959_v54 = vld [vmem:[#allocation50_spill] sm:$0xff] }
 0x1c0   : > { %v6985_v51 = vsel %vm1881_vm7, %v1879_v35, %v4832_v21  ;;  %v6988_v2 = vsel %vm1881_vm7, %v1880_v37, %v4833_v59  ;;  %v4493_v59 = vunpack.i.h.bf16 %v8956_v50  ;;  %v1882_v1 = vsel %vm1881_vm7, %v1849_v4, %v4757_v16 }
 0x1c1   : > { %v4836_v42 = vpop.permute.xlu1 %4835  ;;  %v4523_v35 = vunpack.i.h.bf16 %v8958_v45  ;;  %v4522_v32 = vunpack.i.l.bf16 %v8958_v45  ;;  %v4573_v37 = vunpack.i.h.bf16 %v8957_v9  ;;  %v4548_v16 = vunpack.i.h.bf16 %v8959_v54 }
 0x1c2   : > { %v4838_v21 = vunpack.i.h.bf16 %v4836_v42  ;;  %v4837_v29 = vunpack.i.l.bf16 %v4836_v42  ;;  %v4547_v30 = vunpack.i.l.bf16 %v8959_v54  ;;  %v4603_v42 = vunpack.i.h.bf16 %v8960_v44 }
 0x1c3   : > { %v4602_v4 = vunpack.i.l.bf16 %v8960_v44  ;;  %v7017_v26 = vsel %vm1782_vm4, %v6895_v28, %v4528_v49  ;;  %v4487_v9 = vunpack.i.l.bf16 %v8955_v55  ;;  %v1786_v49 = vsel %vm1782_vm4, %v6881_v13, %v4523_v35 }
 0x1c4   : > { %v1915_v31 = vsel %vm1914_vm9, %v1882_v1, %v4837_v29  ;;  %v1916_v20 = vsel %vm1914_vm9, %v1883_v7, %v4838_v21  ;;  %v1772_v21 = vsel %vm1749_vm3, %v6836_v47, %v4492_v17  ;;  %v8961_v29 = vld [vmem:[#allocation53_spill] sm:$0xff]  ;;  %v7026_v7 = vsel %vm1749_vm3, %v6697_v5, %v4488_v25 }
 0x1c5   : > { %v7009_v38 = vpop.permute.xlu0 %4845  ;;  %v1947_v6 = vpack.c.bf16 %v1916_v20, %v1915_v31  ;;  %v4563_v50 = vunpack.i.h.bf16 %v8961_v29  ;;  %v4562_v1 = vunpack.i.l.bf16 %v8961_v29  ;;  %v1773_v31 = vsel %vm1749_vm3, %v6831_v34, %v4493_v59  ;;  %v8962_v20 = vld [vmem:[#allocation65_spill] sm:$0xff] }
 0x1c6   : > { %v7032_v28 = vsel %vm1782_vm4, %v1772_v21, %v4572_v58  ;;  %v1785_v47 = vsel %vm1782_vm4, %v6877_v62, %v4522_v32  ;;  %v7039_v17 = vsel %vm1782_vm4, %v1773_v31, %v4573_v37  ;;  %v4627_v5 = vunpack.i.l.bf16 %v8962_v20  ;;  %v8963_v32 = vld [vmem:[#allocation69_spill] sm:$0xff] }
 0x1c7   : > { %4153 = vmatmul.msk.bf16.vlgmr.msra.gmra.mxu0 %vm1987_vm10, %v1947_v6  ;;  %v1795_v45 = vsel %vm1782_vm4, %v6839_v33, %v4547_v30  ;;  %v1796_v34 = vsel %vm1782_vm4, %v6852_v41, %v4548_v16  ;;  %v1818_v59 = vsel %vm1815_vm5, %v1785_v47, %v4602_v4  ;;  %v1819_v62 = vsel %vm1815_vm5, %v1786_v49, %v4603_v42  ;;  %v8964_v6 = vld [vmem:[#allocation54_spill] sm:$0xff]  ;;  %v8965_v30 = vld [vmem:[#allocation73_spill] sm:$0xff] }
 0x1c8   : > { %v1801_v13 = vsel %vm1782_vm4, %v6864_v43, %v4562_v1  ;;  %v1802_v58 = vsel %vm1782_vm4, %v6867_v61, %v4563_v50  ;;  %v4628_v35 = vunpack.i.h.bf16 %v8962_v20  ;;  %v4707_v37 = vunpack.i.l.bf16 %v8963_v32 }
 0x1c9   : > { %v7042_v25 = vpop.permute.xlu1 %4850  ;;  %v4568_v54 = vunpack.i.h.bf16 %v8964_v6  ;;  %v4567_v33 = vunpack.i.l.bf16 %v8964_v6  ;;  %v4683_v41 = vunpack.i.h.bf16 %v8965_v30  ;;  %v4682_v16 = vunpack.i.l.bf16 %v8965_v30 }
 0x1ca   : > { %v1828_v44 = vsel %vm1815_vm5, %v1795_v45, %v4627_v5  ;;  %v4708_v42 = vunpack.i.h.bf16 %v8963_v32  ;;  %v4763_v43 = vunpack.i.h.bf16 %v6749_v63  ;;  %v4762_v61 = vunpack.i.l.bf16 %v6749_v63 }
 0x1cb   : > { %v4843_v21 = vunpack.i.h.bf16 %v6843_v46  ;;  %v4842_v29 = vunpack.i.l.bf16 %v6843_v46  ;;  %v1829_v31 = vsel %vm1815_vm5, %v1796_v34, %v4628_v35  ;;  %v1861_v47 = vsel %vm1848_vm6, %v1828_v44, %v4707_v37 }
 0x1cc   : > { %v4788_v49 = vunpack.i.h.bf16 %v6819_v57  ;;  %v4787_v20 = vunpack.i.l.bf16 %v6819_v57  ;;  %v1851_v5 = vsel %vm1848_vm6, %v1818_v59, %v4682_v16  ;;  %v1852_v45 = vsel %vm1848_vm6, %v1819_v62, %v4683_v41  ;;  %v8966_v41 = vld [vmem:[#allocation67_spill] sm:$0xff] }
 0x1cd   : > { %v4861_v4 = vpop.permute.xlu0 %4860  ;;  %v1862_v34 = vsel %vm1848_vm6, %v1829_v31, %v4708_v42  ;;  %v1884_v32 = vsel %vm1881_vm7, %v1851_v5, %v4762_v61  ;;  %v1885_v37 = vsel %vm1881_vm7, %v1852_v45, %v4763_v43  ;;  %v4643_v16 = vunpack.i.h.bf16 %v8966_v41  ;;  %v8967_v61 = vld [vmem:[#allocation68_spill] sm:$0xff]  ;;  %v8969_v31 = vld [vmem:[#allocation71_spill] sm:$0xff] }
 0x1ce   : > { %v4863_v50 = vunpack.i.h.bf16 %v4861_v4  ;;  %v4862_v1 = vunpack.i.l.bf16 %v4861_v4  ;;  %v1917_v30 = vsel %vm1914_vm9, %v1884_v32, %v4842_v29  ;;  %v1894_v44 = vsel %vm1881_vm7, %v1861_v47, %v4787_v20  ;;  %v8968_v29 = vld [vmem:[#allocation61_spill] sm:$0xff] }
 0x1cf   : > { %v1895_v42 = vsel %vm1881_vm7, %v1862_v34, %v4788_v49  ;;  %v4653_v4 = vunpack.i.h.bf16 %v8967_v61  ;;  %v4652_v43 = vunpack.i.l.bf16 %v8967_v61  ;;  %v4722_v5 = vunpack.i.l.bf16 %v8969_v31 }
 0x1d0   : > { %v7074_v63 = vsel %vm1914_vm9, %v6630_v14, %v4862_v1  ;;  %v7078_v46 = vsel %vm1914_vm9, %v6633_v36, %v4863_v50  ;;  %v1918_v14 = vsel %vm1914_vm9, %v1885_v37, %v4843_v21  ;;  %v4642_v36 = vunpack.i.l.bf16 %v8966_v41 }
 0x1d1   : > { %v4866_v35 = vpop.permute.xlu1 %4865  ;;  %v1952_v57 = vpack.c.bf16 %v7078_v46, %v7074_v63  ;;  %v4608_v21 = vunpack.i.h.bf16 %v8968_v29  ;;  %v4607_v49 = vunpack.i.l.bf16 %v8968_v29  ;;  %v4723_v20 = vunpack.i.h.bf16 %v8969_v31  ;;  %v8986_v46 = vld [vmem:[#allocation16_spill] sm:$0xff] }
 0x1d2   : > { %v4868_v59 = vunpack.i.h.bf16 %v4866_v35  ;;  %v4867_v62 = vunpack.i.l.bf16 %v4866_v35  ;;  %v1948_v35 = vpack.c.bf16 %v1918_v14, %v1917_v30  ;;  %v1834_v37 = vsel %vm1815_vm5, %v1801_v13, %v4642_v36 }
 0x1d3   : > { %v4802_v41 = vunpack.i.l.bf16 %v6887_v24  ;;  %v1838_v30 = vsel %vm1815_vm5, %v7032_v28, %v4652_v43  ;;  %v1839_v14 = vsel %vm1815_vm5, %v7039_v17, %v4653_v4  ;;  %v4813_v43 = vunpack.i.h.bf16 %v6733_v53 }
 0x1d4   : > { %v7094_v50 = vsel %vm1914_vm9, %v1894_v44, %v4867_v62  ;;  %v7097_v1 = vsel %vm1914_vm9, %v1895_v42, %v4868_v59  ;;  %v1835_v59 = vsel %vm1815_vm5, %v1802_v58, %v4643_v16  ;;  %v4803_v62 = vunpack.i.h.bf16 %v6887_v24  ;;  %v8970_v42 = vld [vmem:[#allocation75_spill] sm:$0xff] }
 0x1d5   : > { %v4876_v45 = vpop.permute.xlu0 %4875  ;;  %v1953_v47 = vpack.c.bf16 %v7097_v1, %v7094_v50  ;;  %v1867_v58 = vsel %vm1848_vm6, %v1834_v37, %v4722_v5  ;;  %v4733_v24 = vunpack.i.h.bf16 %v6625_v12  ;;  %v4732_v16 = vunpack.i.l.bf16 %v6625_v12  ;;  %v8971_v5 = vld [vmem:[#allocation26_spill] sm:$0xff] }
 0x1d6   : > { %v4878_v34 = vunpack.i.h.bf16 %v4876_v45  ;;  %v4877_v32 = vunpack.i.l.bf16 %v4876_v45  ;;  %v1868_v17 = vsel %vm1848_vm6, %v1835_v59, %v4723_v20  ;;  %v4688_v61 = vunpack.i.h.bf16 %v8970_v42 }
 0x1d7   : > { %4154 = vmatmul.msk.bf16.gmra.mxu0 %vm1987_vm10, %v1948_v35  ;;  %v1900_v29 = vsel %vm1881_vm7, %v1867_v58, %v4802_v41  ;;  %v1901_v31 = vsel %vm1881_vm7, %v1868_v17, %v4803_v62  ;;  %v4687_v12 = vunpack.i.l.bf16 %v8970_v42  ;;  %v4768_v45 = vunpack.i.h.bf16 %v8971_v5 }
 0x1d8   : > { %v7116_v44 = vsel %vm1914_vm9, %v6675_v19, %v4877_v32  ;;  %v7120_v13 = vsel %vm1914_vm9, %v6678_v39, %v4878_v34  ;;  %v4812_v39 = vunpack.i.l.bf16 %v6733_v53  ;;  %v4767_v34 = vunpack.i.l.bf16 %v8971_v5  ;;  %v4886_v5 = vpop.permute.xlu2 %4885 }
 0x1d9   : > { %v4881_v36 = vpop.permute.xlu1 %4880  ;;  %v1955_v28 = vpack.c.bf16 %v7120_v13, %v7116_v44  ;;  %v1871_v32 = vsel %vm1848_vm6, %v1838_v30, %v4732_v16  ;;  %v1872_v37 = vsel %vm1848_vm6, %v1839_v14, %v4733_v24  ;;  %v4848_v41 = vunpack.i.h.bf16 %v7009_v38  ;;  %v2225_v13 = vld [vmem:[#allocation3 + $0x1] sm:$0xff] }
 0x1da   : > { %v4883_v19 = vunpack.i.h.bf16 %v4881_v36  ;;  %v4882_v4 = vunpack.i.l.bf16 %v4881_v36  ;;  %v4847_v62 = vunpack.i.l.bf16 %v7009_v38  ;;  %v1820_v17 = vsel %vm1815_vm5, %v6992_v11, %v4607_v49 }
 0x1db   : > { %v1821_v42 = vsel %vm1815_vm5, %v7017_v26, %v4608_v21  ;;  %v1904_v30 = vsel %vm1881_vm7, %v1871_v32, %v4812_v39  ;;  %v1905_v14 = vsel %vm1881_vm7, %v1872_v37, %v4813_v43  ;;  %v1853_v24 = vsel %vm1848_vm6, %v1820_v17, %v4687_v12 }
 0x1dc   : > { %v1933_v35 = vsel %vm1914_vm9, %v1900_v29, %v4882_v4  ;;  %v1934_v20 = vsel %vm1914_vm9, %v1901_v31, %v4883_v19  ;;  %v1854_v16 = vsel %vm1848_vm6, %v1821_v42, %v4688_v61  ;;  %v1770_v11 = vsel %vm1749_vm3, %v6701_v8, %v4487_v9  ;;  %v8972_v9 = vld [vmem:[#allocation59_spill] sm:$0xff] }
 0x1dd   : > { %v4891_v59 = vpop.permute.xlu0 %4890  ;;  %v1956_v53 = vpack.c.bf16 %v1934_v20, %v1933_v35  ;;  %v1886_v21 = vsel %vm1881_vm7, %v1853_v24, %v4767_v34  ;;  %v1887_v49 = vsel %vm1881_vm7, %v1854_v16, %v4768_v45  ;;  %v1803_v55 = vsel %vm1782_vm4, %v1770_v11, %v4567_v33  ;;  %v8973_v45 = vld [vmem:[#allocation12_spill] sm:$0xff] }
 0x1de   : > { %v4893_v58 = vunpack.i.h.bf16 %v4891_v59  ;;  %v4892_v36 = vunpack.i.l.bf16 %v4891_v59  ;;  %v1919_v39 = vsel %vm1914_vm9, %v1886_v21, %v4847_v62  ;;  %v1920_v29 = vsel %vm1914_vm9, %v1887_v49, %v4848_v41 }
 0x1df   : > { %4162 = vmatmul.msk.bf16.vlgmr.msra.gmra.mxu3 %vm1987_vm10, %v1956_v53  ;;  %v1804_v8 = vsel %vm1782_vm4, %v7026_v7, %v4568_v54  ;;  %v4648_v31 = vunpack.i.h.bf16 %v8972_v9  ;;  %v4647_v12 = vunpack.i.l.bf16 %v8972_v9  ;;  %v4728_v35 = vunpack.i.h.bf16 %v8973_v45 }
 0x1e0   : > { %v7152_v38 = vsel %vm1914_vm9, %v1904_v30, %v4892_v36  ;;  %v7155_v19 = vsel %vm1914_vm9, %v1905_v14, %v4893_v58  ;;  %v4727_v20 = vunpack.i.l.bf16 %v8973_v45  ;;  %v4808_v6 = vunpack.i.h.bf16 %v6910_v22  ;;  %v8974_v36 = vld [vmem:[#allocation49_spill] sm:$0xff] }
 0x1e1   : > { %v4896_v26 = vpop.permute.xlu1 %4895  ;;  %v1958_v4 = vpack.c.bf16 %v7155_v19, %v7152_v38  ;;  %v4807_v32 = vunpack.i.l.bf16 %v6910_v22  ;;  %v1949_v54 = vpack.c.bf16 %v1920_v29, %v1919_v39  ;;  %v4888_v59 = vunpack.i.h.bf16 %v4886_v5  ;;  %v8982_v19 = vld [vmem:[#allocation57_spill] sm:$0xff] }
 0x1e2   : > { %v4898_v61 = vunpack.i.h.bf16 %v4896_v26  ;;  %v4897_v43 = vunpack.i.l.bf16 %v4896_v26  ;;  %v4887_v53 = vunpack.i.l.bf16 %v4886_v5  ;;  %v4452_v58 = vunpack.i.l.bf16 %v8927_v15 }
 0x1e3   : > { %v4533_v17 = vunpack.i.h.bf16 %v8974_v36  ;;  %v1837_v42 = vsel %vm1815_vm5, %v1804_v8, %v4648_v31  ;;  %v4532_v24 = vunpack.i.l.bf16 %v8974_v36  ;;  %v8975_v39 = vunpack.i.h.bf16 %v8927_v15  ;;  %v8977_v31 = vld [vmem:[#allocation66_spill] sm:$0xff] }
 0x1e4   : > { %v1939_v34 = vsel %vm1914_vm9, %v6942_v52, %v4897_v43  ;;  %v1940_v33 = vsel %vm1914_vm9, %v6945_v60, %v4898_v61  ;;  %v1836_v52 = vsel %vm1815_vm5, %v1803_v55, %v4647_v12  ;;  %v1870_v22 = vsel %vm1848_vm6, %v1837_v42, %v4728_v35  ;;  %v8976_v55 = vld [vmem:[#allocation63_spill] sm:$0xff] }
 0x1e5   : > { %v4906_v7 = vpop.permute.xlu0 %4905  ;;  %v1959_v37 = vpack.c.bf16 %v1940_v33, %v1939_v34  ;;  %v1869_v60 = vsel %vm1848_vm6, %v1836_v52, %v4727_v20  ;;  %v1903_v26 = vsel %vm1881_vm7, %v1870_v22, %v4808_v6  ;;  %v1756_v29 = vsel %vm1749_vm3, %v6722_v0, %v4452_v58  ;;  %v8979_v58 = vld [vmem:[#allocation30_spill] sm:$0xff]  ;;  %v8980_v52 = vld [vmem:[#allocation31_spill] sm:$0xff]  ;;  %v8981_v22 = vld [vmem:[#allocation45_spill] sm:$0xff] }
 0x1e6   : > { %v4908_v41 = vunpack.i.h.bf16 %v4906_v7  ;;  %v4907_v62 = vunpack.i.l.bf16 %v4906_v7  ;;  %v1902_v11 = vsel %vm1881_vm7, %v1869_v60, %v4807_v32  ;;  %v4613_v8 = vunpack.i.h.bf16 %v8976_v55 }
 0x1e7   : > { %4155 = vmatmul.msk.bf16.gmra.mxu0 %vm1987_vm10, %v1949_v54  ;;  %v1935_v43 = vsel %vm1914_vm9, %v1902_v11, %v4887_v53  ;;  %v4612_v9 = vunpack.i.l.bf16 %v8976_v55  ;;  %v4693_v12 = vunpack.i.h.bf16 %v8977_v31  ;;  %v4692_v5 = vunpack.i.l.bf16 %v8977_v31  ;;  %v5557_v11 = vld [vmem:[#allocation2 + $0x138] sm:$0xff] }
 0x1e8   : > { %v7193_v30 = vsel %vm1914_vm9, %v6786_v3, %v4907_v62  ;;  %v7197_v14 = vsel %vm1914_vm9, %v6789_v18, %v4908_v41  ;;  %v1936_v3 = vsel %vm1914_vm9, %v1903_v26, %v4888_v59  ;;  %v1757_v18 = vsel %vm1749_vm3, %v6728_v48, %v8975_v39 }
 0x1e9   : > { %v4911_v16 = vpop.permute.xlu1 %4910  ;;  %v1961_v21 = vpack.c.bf16 %v7197_v14, %v7193_v30  ;;  %v4773_v48 = vunpack.i.h.bf16 %v6765_v23  ;;  %v4772_v0 = vunpack.i.l.bf16 %v6765_v23  ;;  %v1957_v35 = vpack.c.bf16 %v1936_v3, %v1935_v43  ;;  %v4901_v43 = vpop.permute.xlu2 %4900 }
 0x1ea   : > { %v4913_v49 = vunpack.i.h.bf16 %v4911_v16  ;;  %v4912_v61 = vunpack.i.l.bf16 %v4911_v16  ;;  %v1790_v34 = vsel %vm1782_vm4, %v1757_v18, %v4533_v17  ;;  %v1789_v33 = vsel %vm1782_vm4, %v1756_v29, %v4532_v24  ;;  %v8984_v18 = vld [vmem:[#allocation11_spill] sm:$0xff] }
 0x1eb   : > { %v4853_v6 = vunpack.i.h.bf16 %v7042_v25  ;;  %v1822_v32 = vsel %vm1815_vm5, %v1789_v33, %v4612_v9  ;;  %v4343_v36 = vunpack.i.h.bf16 %v8979_v58  ;;  %v4342_v17 = vunpack.i.l.bf16 %v8979_v58 }
 0x1ec   : > { %v7218_v45 = vsel %vm1914_vm9, %v6985_v51, %v4912_v61  ;;  %v7222_v15 = vsel %vm1914_vm9, %v6988_v2, %v4913_v49  ;;  %v4852_v51 = vunpack.i.l.bf16 %v7042_v25  ;;  %v1823_v2 = vsel %vm1815_vm5, %v1790_v34, %v4613_v8  ;;  %v8983_v49 = vld [vmem:[#allocation62_spill] sm:$0xff] }
 0x1ed   : > { %v1962_v20 = vpack.c.bf16 %v7222_v15, %v7218_v45  ;;  %v1855_v23 = vsel %vm1848_vm6, %v1822_v32, %v4692_v5  ;;  %v1856_v7 = vsel %vm1848_vm6, %v1823_v2, %v4693_v12  ;;  %v8978_v25 = vpack.c.bf16 %v6920_v40, %v6916_v10  ;;  %v5556_v40 = vld [vmem:[#allocation2 + $0x140] sm:$0xff] }
 0x1ee   : > { %v1888_v54 = vsel %vm1881_vm7, %v1855_v23, %v4772_v0  ;;  %v1889_v59 = vsel %vm1881_vm7, %v1856_v7, %v4773_v48  ;;  %v4423_v42 = vunpack.i.h.bf16 %v8980_v52  ;;  %v4422_v60 = vunpack.i.l.bf16 %v8980_v52 }
 0x1ef   : > { %4163 = vmatmul.msk.bf16.gmra.mxu3 %vm1987_vm10, %v1957_v35  ;;  %v1921_v53 = vsel %vm1914_vm9, %v1888_v54, %v4852_v51  ;;  %v1922_v41 = vsel %vm1914_vm9, %v1889_v59, %v4853_v6  ;;  %v4503_v24 = vunpack.i.h.bf16 %v8981_v22  ;;  %v4502_v38 = vunpack.i.l.bf16 %v8981_v22 }
 0x1f0   : > { %v1950_v62 = vpack.c.bf16 %v1922_v41, %v1921_v53  ;;  %v4582_v10 = vunpack.i.l.bf16 %v8982_v19  ;;  %v1712_v16 = vsel %vm224_vm0, %v5556_v40, %v4343_v36  ;;  %v1711_v26 = vsel %vm224_vm0, %v5557_v11, %v4342_v17 }
 0x1f1   : > { %v4662_v61 = vunpack.i.l.bf16 %v8983_v49  ;;  %v1744_v3 = vsel %vm266_vm2, %v1712_v16, %v4423_v42  ;;  %v1743_v39 = vsel %vm266_vm2, %v1711_v26, %v4422_v60  ;;  %v4743_v29 = vunpack.i.h.bf16 %v8984_v18 }
 0x1f2   : > { %v4742_v55 = vunpack.i.l.bf16 %v8984_v18  ;;  %v1777_v8 = vsel %vm1749_vm3, %v1744_v3, %v4503_v24  ;;  %v1776_v9 = vsel %vm1749_vm3, %v1743_v39, %v4502_v38  ;;  %v4823_v31 = vunpack.i.h.bf16 %v6949_v56 }
 0x1f3   : > { %v4822_v12 = vunpack.i.l.bf16 %v6949_v56  ;;  %v1809_v5 = vsel %vm1782_vm4, %v1776_v9, %v4582_v10  ;;  %v4903_v0 = vunpack.i.h.bf16 %v4901_v43  ;;  %v4902_v35 = vunpack.i.l.bf16 %v4901_v43 }
 0x1f4   : > { %v1842_v34 = vsel %vm1815_vm5, %v1809_v5, %v4662_v61  ;;  %v8985_v63 = vmov 0.0   ;;  %vm3733_vm0 = vcmask 523264  }
 0x1f5   : > { %v1875_v6 = vsel %vm1848_vm6, %v1842_v34, %v4742_v55  ;;  %292 = vst.msk [vmem:[#allocation3 + $0x29] sm:$0x1] %vm275_vm11, %v8985_v63 }
 0x1f6   : > { %v1908_v56 = vsel %vm1881_vm7, %v1875_v6, %v4822_v12  ;;  %276 = vst.msk [vmem:[#allocation3 + $0x18] sm:$0x1] %vm275_vm11, %v8985_v63 }
 0x1f7   : > { %4156 = vmatmul.msk.bf16.gmra.mxu0 %vm1987_vm10, %v1950_v62  ;;  %v1941_v2 = vsel %vm1914_vm9, %v1908_v56, %v4902_v35  ;;  %277 = vst.msk [vmem:[#allocation3 + $0x30] sm:$0x1] %vm275_vm11, %v8985_v63 }
 0x1f8   : > { %278 = vst.msk [vmem:[#allocation3 + $0x48] sm:$0x1] %vm275_vm11, %v8985_v63 }
 0x1f9   : > { %279 = vst.msk [vmem:[#allocation3 + $0x60] sm:$0x1] %vm275_vm11, %v8985_v63 }
 0x1fa   : > { %280 = vst.msk [vmem:[#allocation3 + $0x78] sm:$0x1] %vm275_vm11, %v8985_v63 }
 0x1fb   : > { %281 = vst.msk [vmem:[#allocation3 + $0x90] sm:$0x1] %vm275_vm11, %v8985_v63 }
 0x1fc   : > { %282 = vst.msk [vmem:[#allocation3 + $0xa8] sm:$0x1] %vm275_vm11, %v8985_v63 }
 0x1fd   : > { %283 = vst.msk [vmem:[#allocation3 + $0xc0] sm:$0x1] %vm275_vm11, %v8985_v63 }
 0x1fe   : > { %284 = vst.msk [vmem:[#allocation3 + $0xd8] sm:$0x1] %vm275_vm11, %v8985_v63 }
 0x1ff   : > { %4164 = vmatmul.msk.bf16.gmra.mxu3 %vm1987_vm10, %v1958_v4  ;;  %v4583_v4 = vunpack.i.h.bf16 %v8982_v19  ;;  %285 = vst.msk [vmem:[#allocation3 + $0xf0] sm:$0x1] %vm275_vm11, %v8985_v63 }
 0x200   : > { %286 = vst.msk [vmem:[#allocation3 + $0x108] sm:$0x1] %vm275_vm11, %v8985_v63 }
 0x201   : > { %v1810_v48 = vsel %vm1782_vm4, %v1777_v8, %v4583_v4  ;;  %287 = vst.msk [vmem:[#allocation3 + $0x120] sm:$0x1] %vm275_vm11, %v8985_v63 }
 0x202   : > { %288 = vst.msk [vmem:[#allocation3 + $0x138] sm:$0x1] %vm275_vm11, %v8985_v63 }
 0x203   : > { %289 = vst.msk [vmem:[#allocation3 + $0x150] sm:$0x1] %vm275_vm11, %v8985_v63 }
 0x204   : > { %290 = vst.msk [vmem:[#allocation3 + $0x168] sm:$0x1] %vm275_vm11, %v8985_v63 }
 0x205   : > { %291 = vst.msk [vmem:[#allocation3 + $0x180] sm:$0x1] %vm275_vm11, %v8985_v63 }
 0x206   : > { %293 = vst.msk [vmem:[#allocation3 + $0x41] sm:$0x1] %vm275_vm11, %v8985_v63 }
 0x207   : > { %4157 = vmatmul.msk.bf16.gmra.mxu0 %vm1987_vm10, %v8978_v25  ;;  %294 = vst.msk [vmem:[#allocation3 + $0x59] sm:$0x1] %vm275_vm11, %v8985_v63 }
 0x208   : > { %295 = vst.msk [vmem:[#allocation3 + $0x71] sm:$0x1] %vm275_vm11, %v8985_v63 }
 0x209   : > { %296 = vst.msk [vmem:[#allocation3 + $0x89] sm:$0x1] %vm275_vm11, %v8985_v63 }
 0x20a   : > { %297 = vst.msk [vmem:[#allocation3 + $0xa1] sm:$0x1] %vm275_vm11, %v8985_v63 }
 0x20b   : > { %298 = vst.msk [vmem:[#allocation3 + $0xb9] sm:$0x1] %vm275_vm11, %v8985_v63 }
 0x20c   : > { %299 = vst.msk [vmem:[#allocation3 + $0xd1] sm:$0x1] %vm275_vm11, %v8985_v63 }
 0x20d   : > { %300 = vst.msk [vmem:[#allocation3 + $0xe9] sm:$0x1] %vm275_vm11, %v8985_v63 }
 0x20e   : > { %301 = vst.msk [vmem:[#allocation3 + $0x101] sm:$0x1] %vm275_vm11, %v8985_v63 }
 0x20f   : > { %4165 = vmatmul.msk.bf16.gmra.mxu3 %vm1987_vm10, %v1959_v37  ;;  %v4663_v37 = vunpack.i.h.bf16 %v8983_v49  ;;  %302 = vst.msk [vmem:[#allocation3 + $0x119] sm:$0x1] %vm275_vm11, %v8985_v63 }
 0x210   : > { %303 = vst.msk [vmem:[#allocation3 + $0x131] sm:$0x1] %vm275_vm11, %v8985_v63 }
 0x211   : > { %v1843_v33 = vsel %vm1815_vm5, %v1810_v48, %v4663_v37  ;;  %304 = vst.msk [vmem:[#allocation3 + $0x149] sm:$0x1] %vm275_vm11, %v8985_v63 }
 0x212   : > { %v1876_v51 = vsel %vm1848_vm6, %v1843_v33, %v4743_v29  ;;  %305 = vst.msk [vmem:[#allocation3 + $0x161] sm:$0x1] %vm275_vm11, %v8985_v63 }
 0x213   : > { %v1909_v32 = vsel %vm1881_vm7, %v1876_v51, %v4823_v31  ;;  %306 = vst.msk [vmem:[#allocation3 + $0x179] sm:$0x1] %vm275_vm11, %v8985_v63 }
 0x214   : > { %v1942_v23 = vsel %vm1914_vm9, %v1909_v32, %v4903_v0  ;;  %307 = vst.msk [vmem:[#allocation3 + $0x191] sm:$0x1] %vm275_vm11, %v8985_v63 }
 0x215   : > { %v1960_v7 = vpack.c.bf16 %v1942_v23, %v1941_v2 }
 0x217   : > { %4158 = vmatmul.msk.bf16.gmra.mxu0 %vm1987_vm10, %v1952_v57  ;;  %v8987_v57 = vpack.c.bf16 %v6959_v27, %v8986_v46  ;;  %v7349_v27 = vld [vmem:[%s8709_s2] ss:$0 sm:$0xff] }
 0x21f   : > { %4166 = vmatmul.msk.bf16.gmra.mxu3 %vm1987_vm10, %v1960_v7 }
 0x227   : > { %4159 = vmatmul.msk.bf16.gmra.mxu0 %vm1987_vm10, %v1953_v47 }
 0x22f   : > { %4167 = vmatmul.msk.bf16.gmra.mxu3 %vm1987_vm10, %v1961_v21 }
 0x237   : > { %4160 = vmatmul.msk.bf16.gmra.mxu0 %vm1987_vm10, %v8987_v57 }
 0x23f   : > { %4168 = vmatmul.msk.bf16.gmra.mxu3 %vm1987_vm10, %v1962_v20 }
 0x244   : > { %v2049_v50 = vpop.f32.mrf.mxu0 }
 0x245   : > { %v2050_v1 = vadd.f32 %v7349_v27, %v2049_v50 }
 0x247   : > { %v2129_v47 = vmax.f32 %v2050_v1, 0.0  ;;  %4161 = vmatmul.msk.bf16.gmra.mxu0 %vm1987_vm10, %v1955_v28  ;;  %v2226_v28 = vld [vmem:[#allocation3 + $0x9] sm:$0xff] }
 0x248   : > { %v4914_v21 = vpack.i.bf16 %v2226_v28, %v2225_v13 }
 0x249   : > { %2161 = vst.msk [vmem:[#allocation3 + $0x19] sm:$0xff] %vm266_vm2, %v2129_v47 }
 0x24a   : > { %4915 = vrot.lane.b32.xlu2 %v4914_v21, %s5624_s11 }
 0x24c   : > { %v2051_v30 = vpop.f32.mrf.mxu0 }
 0x24d   : > { %v2052_v14 = vadd.f32 %v7349_v27, %v2051_v30 }
 0x24f   : > { %v2130_v44 = vmax.f32 %v2052_v14, 0.0 }
 0x250   : > { %v2227_v54 = vld [vmem:[#allocation3 + $0x19] sm:$0xff] }
 0x251   : > { %2162 = vst.msk [vmem:[#allocation3 + $0x21] sm:$0xff] %vm266_vm2, %v2130_v44 }
 0x254   : > { %v2054_v45 = vpop.f32.mrf.mxu0 }
 0x255   : > { %v2055_v15 = vadd.f32 %v7349_v27, %v2054_v45 }
 0x257   : > { %v2131_v20 = vmax.f32 %v2055_v15, 0.0 }
 0x258   : > { %v2228_v59 = vld [vmem:[#allocation3 + $0x21] sm:$0xff] }
 0x259   : > { %2163 = vst.msk [vmem:[#allocation3 + $0x31] sm:$0xff] %vm266_vm2, %v2131_v20  ;;  %v7382_v53 = vpack.i.bf16 %v2228_v59, %v2227_v54 }
 0x25b   : > { %4920 = vrot.lane.b32.xlu0 %v7382_v53, %s5624_s11 }
 0x25c   : > { %v2056_v41 = vpop.f32.mrf.mxu0 }
 0x25d   : > { %v2057_v62 = vadd.f32 %v7349_v27, %v2056_v41 }
 0x25f   : > { %v2132_v25 = vmax.f32 %v2057_v62, 0.0 }
 0x260   : > { %v2229_v22 = vld [vmem:[#allocation3 + $0x31] sm:$0xff] }
 0x261   : > { %2164 = vst.msk [vmem:[#allocation3 + $0x39] sm:$0xff] %vm266_vm2, %v2132_v25 }
 0x262   : > { %v2094_v58 = vpop.f32.mrf.mxu3 }
 0x263   : > { %v2095_v36 = vadd.f32 %v7349_v27, %v2094_v58 }
 0x264   : > { %v2059_v17 = vpop.f32.mrf.mxu0 }
 0x265   : > { %v2147_v52 = vmax.f32 %v2095_v36, 0.0  ;;  %v2060_v42 = vadd.f32 %v7349_v27, %v2059_v17 }
 0x267   : > { %2179 = vst.msk [vmem:[#allocation3 + $0xf1] sm:$0xff] %vm266_vm2, %v2147_v52  ;;  %v2133_v60 = vmax.f32 %v2060_v42, 0.0 }
 0x268   : > { %v2230_v24 = vld [vmem:[#allocation3 + $0x39] sm:$0xff] }
 0x269   : > { %2165 = vst.msk [vmem:[#allocation3 + $0x49] sm:$0xff] %vm266_vm2, %v2133_v60  ;;  %v7392_v38 = vpack.i.bf16 %v2230_v24, %v2229_v22 }
 0x26a   : > { %v2096_v19 = vpop.f32.mrf.mxu3 }
 0x26b   : > { %v2097_v4 = vadd.f32 %v7349_v27, %v2096_v19  ;;  %4925 = vrot.lane.b32.xlu1 %v7392_v38, %s5624_s11 }
 0x26c   : > { %v2061_v10 = vpop.f32.mrf.mxu0 }
 0x26d   : > { %v2148_v40 = vmax.f32 %v2097_v4, 0.0  ;;  %v2062_v16 = vadd.f32 %v7349_v27, %v2061_v10 }
 0x26e   : > { %v2245_v1 = vld [vmem:[#allocation3 + $0xf1] sm:$0xff] }
 0x26f   : > { %2180 = vst.msk [vmem:[#allocation3 + $0xf9] sm:$0xff] %vm266_vm2, %v2148_v40  ;;  %v2134_v11 = vmax.f32 %v2062_v16, 0.0 }
 0x270   : > { %v2231_v39 = vld [vmem:[#allocation3 + $0x49] sm:$0xff] }
 0x271   : > { %2166 = vst.msk [vmem:[#allocation3 + $0x51] sm:$0xff] %vm266_vm2, %v2134_v11 }
 0x272   : > { %v2099_v26 = vpop.f32.mrf.mxu3 }
 0x273   : > { %v2100_v49 = vadd.f32 %v7349_v27, %v2099_v26 }
 0x274   : > { %v2064_v37 = vpop.f32.mrf.mxu0 }
 0x275   : > { %v2149_v61 = vmax.f32 %v2100_v49, 0.0  ;;  %v2065_v43 = vadd.f32 %v7349_v27, %v2064_v37 }
 0x276   : > { %v2246_v57 = vld [vmem:[#allocation3 + $0xf9] sm:$0xff] }
 0x277   : > { %2181 = vst.msk [vmem:[#allocation3 + $0x109] sm:$0xff] %vm266_vm2, %v2149_v61  ;;  %v2135_v3 = vmax.f32 %v2065_v43, 0.0  ;;  %v7424_v47 = vpack.i.bf16 %v2246_v57, %v2245_v1  ;;  %v2260_v57 = vld [vmem:[#allocation3 + $0x22] sm:$0xff]  ;;  %v2258_v1 = vld [vmem:[#allocation3 + $0xa] sm:$0xff] }
 0x278   : > { %v2232_v18 = vld [vmem:[#allocation3 + $0x51] sm:$0xff] }
 0x279   : > { %2167 = vst.msk [vmem:[#allocation3 + $0x61] sm:$0xff] %vm266_vm2, %v2135_v3  ;;  %v7404_v29 = vpack.i.bf16 %v2232_v18, %v2231_v39 }
 0x27a   : > { %v2101_v55 = vpop.f32.mrf.mxu3 }
 0x27b   : > { %v2102_v8 = vadd.f32 %v7349_v27, %v2101_v55  ;;  %4930 = vrot.lane.b32.xlu2 %v7404_v29, %s5624_s11 }
 0x27c   : > { %v2066_v9 = vpop.f32.mrf.mxu0 }
 0x27d   : > { %v2150_v31 = vmax.f32 %v2102_v8, 0.0  ;;  %v2067_v12 = vadd.f32 %v7349_v27, %v2066_v9 }
 0x27e   : > { %v2247_v60 = vld [vmem:[#allocation3 + $0x109] sm:$0xff] }
 0x27f   : > { %2182 = vst.msk [vmem:[#allocation3 + $0x111] sm:$0xff] %vm266_vm2, %v2150_v31  ;;  %v2136_v5 = vmax.f32 %v2067_v12, 0.0 }
 0x280   : > { %v2233_v51 = vld [vmem:[#allocation3 + $0x61] sm:$0xff] }
 0x281   : > { %2168 = vst.msk [vmem:[#allocation3 + $0x69] sm:$0xff] %vm266_vm2, %v2136_v5 }
 0x282   : > { %v2104_v48 = vpop.f32.mrf.mxu3 }
 0x283   : > { %v2105_v0 = vadd.f32 %v7349_v27, %v2104_v48 }
 0x284   : > { %v2069_v35 = vpop.f32.mrf.mxu0 }
 0x285   : > { %v2151_v34 = vmax.f32 %v2105_v0, 0.0  ;;  %v2070_v33 = vadd.f32 %v7349_v27, %v2069_v35 }
 0x286   : > { %v2248_v52 = vld [vmem:[#allocation3 + $0x111] sm:$0xff] }
 0x287   : > { %2183 = vst.msk [vmem:[#allocation3 + $0x121] sm:$0xff] %vm266_vm2, %v2151_v34  ;;  %v2137_v6 = vmax.f32 %v2070_v33, 0.0  ;;  %v7444_v22 = vpack.i.bf16 %v2248_v52, %v2247_v60  ;;  %v2264_v52 = vld [vmem:[#allocation3 + $0x52] sm:$0xff] }
 0x288   : > { %v2234_v56 = vld [vmem:[#allocation3 + $0x69] sm:$0xff] }
 0x289   : > { %2169 = vst.msk [vmem:[#allocation3 + $0x79] sm:$0xff] %vm266_vm2, %v2137_v6  ;;  %v7416_v32 = vpack.i.bf16 %v2234_v56, %v2233_v51 }
 0x28a   : > { %v2106_v2 = vpop.f32.mrf.mxu3 }
 0x28b   : > { %v2107_v23 = vadd.f32 %v7349_v27, %v2106_v2  ;;  %4935 = vrot.lane.b32.xlu0 %v7416_v32, %s5624_s11 }
 0x28c   : > { %v2071_v7 = vpop.f32.mrf.mxu0 }
 0x28d   : > { %v2152_v63 = vmax.f32 %v2107_v23, 0.0  ;;  %v2072_v46 = vadd.f32 %v7349_v27, %v2071_v7 }
 0x28e   : > { %v2249_v21 = vld [vmem:[#allocation3 + $0x121] sm:$0xff] }
 0x28f   : > { %2184 = vst.msk [vmem:[#allocation3 + $0x129] sm:$0xff] %vm266_vm2, %v2152_v63  ;;  %v2138_v50 = vmax.f32 %v2072_v46, 0.0  ;;  %v2259_v63 = vld [vmem:[#allocation3 + $0x1a] sm:$0xff] }
 0x290   : > { %v2235_v54 = vld [vmem:[#allocation3 + $0x79] sm:$0xff] }
 0x291   : > { %2170 = vst.msk [vmem:[#allocation3 + $0x81] sm:$0xff] %vm266_vm2, %v2138_v50  ;;  %v2257_v50 = vld [vmem:[#allocation3 + $0x2] sm:$0xff] }
 0x292   : > { %v2109_v30 = vpop.f32.mrf.mxu3 }
 0x293   : > { %v2110_v14 = vadd.f32 %v7349_v27, %v2109_v30  ;;  %4945 = vrot.lane.b32.xlu0 %v7424_v47, %s5624_s11 }
 0x294   : > { %v2074_v44 = vpop.f32.mrf.mxu0 }
 0x295   : > { %v2153_v13 = vmax.f32 %v2110_v14, 0.0  ;;  %v2075_v28 = vadd.f32 %v7349_v27, %v2074_v44 }
 0x296   : > { %v2250_v45 = vld [vmem:[#allocation3 + $0x129] sm:$0xff] }
 0x297   : > { %2185 = vst.msk [vmem:[#allocation3 + $0x139] sm:$0xff] %vm266_vm2, %v2153_v13  ;;  %v2139_v15 = vmax.f32 %v2075_v28, 0.0  ;;  %v7431_v20 = vpack.i.bf16 %v2250_v45, %v2249_v21  ;;  %v7479_v13 = vpack.i.bf16 %v2260_v57, %v2259_v63  ;;  %v4984_v28 = vpack.i.bf16 %v2258_v1, %v2257_v50  ;;  %v2278_v63 = vld [vmem:[#allocation3 + $0xfa] sm:$0xff]  ;;  %v2282_v57 = vld [vmem:[#allocation3 + $0x12a] sm:$0xff] }
 0x298   : > { %v2236_v59 = vld [vmem:[#allocation3 + $0x81] sm:$0xff] }
 0x299   : > { %2171 = vst.msk [vmem:[#allocation3 + $0x91] sm:$0xff] %vm266_vm2, %v2139_v15  ;;  %4955 = vrot.lane.b32.xlu2 %v7431_v20, %s5624_s11  ;;  %v7436_v41 = vpack.i.bf16 %v2236_v59, %v2235_v54  ;;  %v2265_v54 = vld [vmem:[#allocation3 + $0x62] sm:$0xff]  ;;  %v2266_v59 = vld [vmem:[#allocation3 + $0x6a] sm:$0xff] }
 0x29a   : > { %v2111_v62 = vpop.f32.mrf.mxu3 }
 0x29b   : > { %v2112_v25 = vadd.f32 %v7349_v27, %v2111_v62  ;;  %4940 = vrot.lane.b32.xlu1 %v7436_v41, %s5624_s11 }
 0x29c   : > { %v2076_v58 = vpop.f32.mrf.mxu0 }
 0x29d   : > { %v2154_v36 = vmax.f32 %v2112_v25, 0.0  ;;  %v2077_v17 = vadd.f32 %v7349_v27, %v2076_v58  ;;  %v2263_v58 = vld [vmem:[#allocation3 + $0x4a] sm:$0xff] }
 0x29e   : > { %v2251_v16 = vld [vmem:[#allocation3 + $0x139] sm:$0xff] }
 0x29f   : > { %2186 = vst.msk [vmem:[#allocation3 + $0x141] sm:$0xff] %vm266_vm2, %v2154_v36  ;;  %v2140_v42 = vmax.f32 %v2077_v17, 0.0 }
 0x2a0   : > { %v2237_v37 = vld [vmem:[#allocation3 + $0x91] sm:$0xff] }
 0x2a1   : > { %2172 = vst.msk [vmem:[#allocation3 + $0x99] sm:$0xff] %vm266_vm2, %v2140_v42 }
 0x2a2   : > { %v2114_v24 = vpop.f32.mrf.mxu3 }
 0x2a3   : > { %v2115_v19 = vadd.f32 %v7349_v27, %v2114_v24  ;;  %4950 = vrot.lane.b32.xlu1 %v7444_v22, %s5624_s11  ;;  %v7490_v24 = vpack.i.bf16 %v2266_v59, %v2265_v54 }
 0x2a4   : > { %v2079_v4 = vpop.f32.mrf.mxu0 }
 0x2a5   : > { %v2155_v10 = vmax.f32 %v2115_v19, 0.0  ;;  %v2080_v40 = vadd.f32 %v7349_v27, %v2079_v4  ;;  %v7497_v19 = vpack.i.bf16 %v2264_v52, %v2263_v58 }
 0x2a6   : > { %v2252_v11 = vld [vmem:[#allocation3 + $0x141] sm:$0xff] }
 0x2a7   : > { %2187 = vst.msk [vmem:[#allocation3 + $0x151] sm:$0xff] %vm266_vm2, %v2155_v10  ;;  %v2141_v26 = vmax.f32 %v2080_v40, 0.0  ;;  %v7451_v49 = vpack.i.bf16 %v2252_v11, %v2251_v16  ;;  %v2261_v16 = vld [vmem:[#allocation3 + $0x32] sm:$0xff]  ;;  %v2262_v11 = vld [vmem:[#allocation3 + $0x3a] sm:$0xff] }
 0x2a8   : > { %v2238_v61 = vld [vmem:[#allocation3 + $0x99] sm:$0xff]  ;;  %8988 = vst [vmem:[#allocation15_spill] sm:$0xff] %v7497_v19 }
 0x2a9   : > { %2173 = vst.msk [vmem:[#allocation3 + $0xa9] sm:$0xff] %vm266_vm2, %v2141_v26  ;;  %4960 = vrot.lane.b32.xlu0 %v7451_v49, %s5624_s11  ;;  %v7456_v43 = vpack.i.bf16 %v2238_v61, %v2237_v37 }
 0x2aa   : > { %v2116_v3 = vpop.f32.mrf.mxu3 }
 0x2ab   : > { %v2117_v39 = vadd.f32 %v7349_v27, %v2116_v3  ;;  %4970 = vrot.lane.b32.xlu2 %v7456_v43, %s5624_s11 }
 0x2ac   : > { %v2081_v18 = vpop.f32.mrf.mxu0 }
 0x2ad   : > { %v2156_v55 = vmax.f32 %v2117_v39, 0.0  ;;  %v2082_v8 = vadd.f32 %v7349_v27, %v2081_v18  ;;  %v2269_v39 = vld [vmem:[#allocation3 + $0x92] sm:$0xff]  ;;  %v2270_v18 = vld [vmem:[#allocation3 + $0x9a] sm:$0xff] }
 0x2ae   : > { %v2253_v35 = vld [vmem:[#allocation3 + $0x151] sm:$0xff] }
 0x2af   : > { %2188 = vst.msk [vmem:[#allocation3 + $0x159] sm:$0xff] %vm266_vm2, %v2156_v55  ;;  %v2142_v9 = vmax.f32 %v2082_v8, 0.0  ;;  %v7504_v8 = vpack.i.bf16 %v2262_v11, %v2261_v16 }
 0x2b0   : > { %v2239_v51 = vld [vmem:[#allocation3 + $0xa9] sm:$0xff] }
 0x2b1   : > { %2174 = vst.msk [vmem:[#allocation3 + $0xb1] sm:$0xff] %vm266_vm2, %v2142_v9 }
 0x2b2   : > { %v2119_v31 = vpop.f32.mrf.mxu3 }
 0x2b3   : > { %v2120_v12 = vadd.f32 %v7349_v27, %v2119_v31  ;;  %v7513_v31 = vpack.i.bf16 %v2270_v18, %v2269_v39  ;;  %v7586_v18 = vld [vmem:[#allocation3 + $0x90] sm:$0xff] }
 0x2b4   : > { %v2084_v5 = vpop.f32.mrf.mxu0 }
 0x2b5   : > { %v2157_v48 = vmax.f32 %v2120_v12, 0.0  ;;  %v2085_v0 = vadd.f32 %v7349_v27, %v2084_v5  ;;  %8989 = vst [vmem:[#allocation14_spill] sm:$0xff] %v7513_v31  ;;  %v2268_v12 = vld [vmem:[#allocation3 + $0x82] sm:$0xff] }
 0x2b6   : > { %v2254_v34 = vld [vmem:[#allocation3 + $0x159] sm:$0xff] }
 0x2b7   : > { %2189 = vst.msk [vmem:[#allocation3 + $0x169] sm:$0xff] %vm266_vm2, %v2157_v48  ;;  %v2143_v33 = vmax.f32 %v2085_v0, 0.0  ;;  %v7467_v6 = vpack.i.bf16 %v2254_v34, %v2253_v35  ;;  %v2285_v16 = vld [vmem:[#allocation3 + $0x152] sm:$0xff]  ;;  %v2286_v11 = vld [vmem:[#allocation3 + $0x15a] sm:$0xff] }
 0x2b8   : > { %v2240_v56 = vld [vmem:[#allocation3 + $0xb1] sm:$0xff] }
 0x2b9   : > { %2175 = vst.msk [vmem:[#allocation3 + $0xc1] sm:$0xff] %vm266_vm2, %v2143_v33  ;;  %4965 = vrot.lane.b32.xlu1 %v7467_v6, %s5624_s11  ;;  %v7472_v2 = vpack.i.bf16 %v2240_v56, %v2239_v51  ;;  %v2271_v5 = vld [vmem:[#allocation3 + $0xaa] sm:$0xff]  ;;  %v2272_v48 = vld [vmem:[#allocation3 + $0xb2] sm:$0xff] }
 0x2ba   : > { %v2121_v23 = vpop.f32.mrf.mxu3  ;;  %v7519_v35 = vpack.i.bf16 %v2272_v48, %v2271_v5  ;;  %v2277_v56 = vld [vmem:[#allocation3 + $0xf2] sm:$0xff]  ;;  %v7604_v48 = vld [vmem:[#allocation3 + $0xa8] sm:$0xff] }
 0x2bb   : > { %v2122_v7 = vadd.f32 %v7349_v27, %v2121_v23  ;;  %4980 = vrot.lane.b32.xlu0 %v7472_v2, %s5624_s11  ;;  %v7531_v1 = vpack.i.bf16 %v2278_v63, %v2277_v56  ;;  %v7602_v5 = vld [vmem:[#allocation3 + $0x30] sm:$0xff] }
 0x2bc   : > { %v2086_v46 = vpop.f32.mrf.mxu0 }
 0x2bd   : > { %v2158_v30 = vmax.f32 %v2122_v7, 0.0  ;;  %v2087_v14 = vadd.f32 %v7349_v27, %v2086_v46  ;;  %v2281_v46 = vld [vmem:[#allocation3 + $0x122] sm:$0xff]  ;;  %8992 = vst [vmem:[#allocation19_spill] sm:$0xff] %v7531_v1 }
 0x2be   : > { %v2255_v36 = vld [vmem:[#allocation3 + $0x169] sm:$0xff] }
 0x2bf   : > { %2190 = vst.msk [vmem:[#allocation3 + $0x171] sm:$0xff] %vm266_vm2, %v2158_v30  ;;  %v2144_v44 = vmax.f32 %v2087_v14, 0.0  ;;  %v7537_v30 = vpack.i.bf16 %v2282_v57, %v2281_v46  ;;  %v2279_v14 = vld [vmem:[#allocation3 + $0x10a] sm:$0xff]  ;;  %v7630_v46 = vld [vmem:[#allocation3 + $0xf8] sm:$0xff]  ;;  %v7632_v57 = vld [vmem:[#allocation3 + $0x80] sm:$0xff] }
 0x2c0   : > { %v2241_v3 = vld [vmem:[#allocation3 + $0xc1] sm:$0xff] }
 0x2c1   : > { %2176 = vst.msk [vmem:[#allocation3 + $0xc9] sm:$0xff] %vm266_vm2, %v2144_v44  ;;  %4990 = vrot.lane.b32.xlu1 %v7479_v13, %s5626_s13  ;;  %v2280_v44 = vld [vmem:[#allocation3 + $0x112] sm:$0xff] }
 0x2c2   : > { %v2124_v21 = vpop.f32.mrf.mxu3  ;;  %8993 = vst [vmem:[#allocation18_spill] sm:$0xff] %v7537_v30  ;;  %v7541_v54 = vpack.i.bf16 %v2280_v44, %v2279_v14  ;;  %v7634_v14 = vld [vmem:[#allocation3 + $0x128] sm:$0xff]  ;;  %v7636_v44 = vld [vmem:[#allocation3 + $0xf0] sm:$0xff] }
 0x2c3   : > { %v2125_v45 = vadd.f32 %v7349_v27, %v2124_v21  ;;  %4985 = vrot.lane.b32.xlu0 %v4984_v28, %s5626_s13  ;;  %v2283_v28 = vld [vmem:[#allocation3 + $0x13a] sm:$0xff]  ;;  %v2284_v21 = vld [vmem:[#allocation3 + $0x142] sm:$0xff] }
 0x2c4   : > { %v2089_v15 = vpop.f32.mrf.mxu0  ;;  %8994 = vst [vmem:[#allocation17_spill] sm:$0xff] %v7541_v54  ;;  %v7543_v59 = vpack.i.bf16 %v2284_v21, %v2283_v28  ;;  %v7638_v28 = vld [vmem:[#allocation3 + $0x78] sm:$0xff] }
 0x2c5   : > { %v2159_v62 = vmax.f32 %v2125_v45, 0.0  ;;  %v2090_v25 = vadd.f32 %v7349_v27, %v2089_v15  ;;  %v7642_v21 = vpack.i.bf16 %v7632_v57, %v7638_v28 }
 0x2c6   : > { %v2256_v17 = vld [vmem:[#allocation3 + $0x171] sm:$0xff]  ;;  %8995 = vst [vmem:[#allocation24_spill] sm:$0xff] %v7543_v59 }
 0x2c7   : > { %2191 = vst.msk [vmem:[#allocation3 + $0x181] sm:$0xff] %vm266_vm2, %v2159_v62  ;;  %v2145_v42 = vmax.f32 %v2090_v25, 0.0  ;;  %v7488_v60 = vpack.i.bf16 %v2256_v17, %v2255_v36  ;;  %v2287_v45 = vld [vmem:[#allocation3 + $0x16a] sm:$0xff]  ;;  %v2288_v15 = vld [vmem:[#allocation3 + $0x172] sm:$0xff]  ;;  %v7553_v25 = vld [vmem:[#allocation3 + $0x20] sm:$0xff] }
 0x2c8   : > { %v2242_v26 = vld [vmem:[#allocation3 + $0xc9] sm:$0xff]  ;;  %v7549_v62 = vpack.i.bf16 %v2288_v15, %v2287_v45  ;;  %v7555_v36 = vld [vmem:[#allocation3 + $0x18] sm:$0xff]  ;;  %9004 = vst [vmem:[#allocation34_spill] sm:$0xff] %v7642_v21  ;;  %v7646_v45 = vpack.i.bf16 %v7630_v46, %v7636_v44  ;;  %v7648_v15 = vld [vmem:[#allocation3 + $0x120] sm:$0xff] }
 0x2c9   : > { %2177 = vst.msk [vmem:[#allocation3 + $0xd9] sm:$0xff] %vm266_vm2, %v2145_v42  ;;  %4975 = vrot.lane.b32.xlu2 %v7488_v60, %s5624_s11  ;;  %5005 = vrot.lane.b32.xlu1 %v7490_v24, %s5626_s13  ;;  %v7506_v9 = vpack.i.bf16 %v2242_v26, %v2241_v3  ;;  %v2273_v23 = vld [vmem:[#allocation3 + $0xc2] sm:$0xff]  ;;  %v2274_v7 = vld [vmem:[#allocation3 + $0xca] sm:$0xff]  ;;  %v7580_v3 = vpack.i.bf16 %v2286_v11, %v2285_v16 }
 0x2ca   : > { %v2126_v4 = vpop.f32.mrf.mxu3  ;;  %v7529_v50 = vpack.i.bf16 %v2274_v7, %v2273_v23  ;;  %8996 = vst [vmem:[#allocation29_spill] sm:$0xff] %v7549_v62  ;;  %v7557_v17 = vld [vmem:[#allocation3 + $0x50] sm:$0xff]  ;;  %v7574_v26 = vld [vmem:[#allocation3 + $0x68] sm:$0xff]  ;;  %v7618_v7 = vpop.permute.xlu2 %4915  ;;  %v7663_v11 = vld [vmem:[#allocation3 + $0x140] sm:$0xff] }
 0x2cb   : > { %v2127_v10 = vadd.f32 %v7349_v27, %v2126_v4  ;;  %5000 = vrot.lane.b32.xlu0 %v7497_v19, %s5626_s13  ;;  %v5074_v4 = vpack.i.bf16 %v7553_v25, %v7555_v36  ;;  %8998 = vst [vmem:[#allocation28_spill] sm:$0xff] %v7580_v3  ;;  %v7661_v16 = vld [vmem:[#allocation3 + $0xc8] sm:$0xff] }
 0x2cc   : > { %v2091_v40 = vpop.f32.mrf.mxu0  ;;  %8991 = vst [vmem:[#allocation20_spill] sm:$0xff] %v7529_v50 }
 0x2cd   : > { %v2160_v37 = vmax.f32 %v2127_v10, 0.0  ;;  %v2092_v61 = vadd.f32 %v7349_v27, %v2091_v40  ;;  %v2267_v27 = vld [vmem:[#allocation3 + $0x7a] sm:$0xff]  ;;  %v7563_v10 = vld [vmem:[#allocation3 + $0x48] sm:$0xff]  ;;  %9005 = vst [vmem:[#allocation22_spill] sm:$0xff] %v7646_v45 }
 0x2ce   : > { %v7517_v0 = vpack.i.bf16 %v2268_v12, %v2267_v27  ;;  %v7570_v40 = vpack.i.bf16 %v7557_v17, %v7563_v10  ;;  %v7598_v27 = vld [vmem:[#allocation3 + $0x38] sm:$0xff]  ;;  %v7600_v12 = vld [vmem:[#allocation3 + $0xb0] sm:$0xff]  ;;  %9006 = vst [vmem:[#allocation21_spill] sm:$0xff] %v7663_v11 }
 0x2cf   : > { %2192 = vst.msk [vmem:[#allocation3 + $0x189] sm:$0xff] %vm266_vm2, %v2160_v37  ;;  %v2146_v55 = vmax.f32 %v2092_v61, 0.0  ;;  %v7576_v37 = vld [vmem:[#allocation3 + $0x60] sm:$0xff]  ;;  %v7578_v61 = vld [vmem:[#allocation3 + $0x98] sm:$0xff]  ;;  %v7614_v56 = vpack.i.bf16 %v7600_v12, %v7604_v48 }
 0x2d0   : > { %v2243_v52 = vld [vmem:[#allocation3 + $0xd9] sm:$0xff]  ;;  %8997 = vst [vmem:[#allocation23_spill] sm:$0xff] %v7570_v40  ;;  %v7584_v39 = vpack.i.bf16 %v7574_v26, %v7576_v37 }
 0x2d1   : > { %2178 = vst.msk [vmem:[#allocation3 + $0xe1] sm:$0xff] %vm266_vm2, %v2146_v55  ;;  %4995 = vrot.lane.b32.xlu2 %v7504_v8, %s5626_s13  ;;  %5020 = vrot.lane.b32.xlu1 %v7506_v9, %s5624_s11  ;;  %v7594_v55 = vpack.i.bf16 %v7578_v61, %v7586_v18  ;;  %v7616_v23 = vld [vmem:[#allocation3 + $0xd8] sm:$0xff] }
 0x2d2   : > { %8999 = vst [vmem:[#allocation27_spill] sm:$0xff] %v7584_v39 }
 0x2d3   : > { %5015 = vrot.lane.b32.xlu0 %v7513_v31, %s5626_s13  ;;  %9000 = vst [vmem:[#allocation76_spill] sm:$0xff] %v7594_v55 }
 0x2d4   : > { %9002 = vst [vmem:[#allocation10_spill] sm:$0xff] %v7614_v56 }
 0x2d8   : > { %v2275_v34 = vld [vmem:[#allocation3 + $0xda] sm:$0xff]  ;;  %v2276_v33 = vld [vmem:[#allocation3 + $0xe2] sm:$0xff] }
 0x2d9   : > { %5010 = vrot.lane.b32.xlu2 %v7517_v0, %s5626_s13  ;;  %5025 = vrot.lane.b32.xlu1 %v7519_v35, %s5626_s13  ;;  %v7525_v51 = vpack.i.bf16 %v2276_v33, %v2275_v34  ;;  %v2244_v58 = vld [vmem:[#allocation3 + $0xe1] sm:$0xff]  ;;  %v7610_v33 = vpack.i.bf16 %v7598_v27, %v7602_v5 }
 0x2da   : > { %v7559_v42 = vpack.i.bf16 %v2244_v58, %v2243_v52  ;;  %v7606_v34 = vld [vmem:[#allocation3 + $0xe0] sm:$0xff]  ;;  %v5129_v58 = vpack.i.bf16 %v7634_v14, %v7648_v15  ;;  %v7656_v52 = vpop.permute.xlu0 %4920 }
 0x2db   : > { %8990 = vst [vmem:[#allocation13_spill] sm:$0xff] %v7525_v51  ;;  %5050 = vrot.lane.b32.xlu0 %v7525_v51, %s5626_s13  ;;  %v7626_v63 = vpack.i.bf16 %v7606_v34, %v7616_v23  ;;  %v7694_v51 = vld [vmem:[#allocation3 + $0x108] sm:$0xff] }
 0x2dc   : > { %9001 = vst [vmem:[#allocation33_spill] sm:$0xff] %v7610_v33 }
 0x2dd   : > { %9003 = vst [vmem:[#allocation32_spill] sm:$0xff] %v7626_v63 }
 0x2e1   : > { %5035 = vrot.lane.b32.xlu2 %v7529_v50, %s5626_s13  ;;  %5030 = vrot.lane.b32.xlu1 %v7531_v1, %s5626_s13  ;;  %v4922_v50 = vunpack.i.l.bf16 %v7656_v52 }
 0x2e3   : > { %5055 = vrot.lane.b32.xlu0 %v7537_v30, %s5626_s13  ;;  %v7692_v30 = vld [vmem:[#allocation3 + $0x110] sm:$0xff] }
 0x2e9   : > { %5040 = vrot.lane.b32.xlu2 %v7541_v54, %s5626_s13  ;;  %5060 = vrot.lane.b32.xlu1 %v7543_v59, %s5626_s13  ;;  %v2319_v59 = vld [vmem:[#allocation3 + $0x180] sm:$0xff] }
 0x2eb   : > { %5070 = vrot.lane.b32.xlu0 %v7549_v62, %s5626_s13 }
 0x2f1   : > { %5045 = vrot.lane.b32.xlu2 %v7559_v42, %s5624_s11  ;;  %5075 = vrot.lane.b32.xlu1 %v5074_v4, %s5628_s15  ;;  %v7658_v4 = vpop.permute.xlu2 %4930  ;;  %s5632_s11 = smov 48  }
 0x2f3   : > { %5085 = vrot.lane.b32.xlu0 %v7570_v40, %s5628_s15  ;;  %v7669_v40 = vld [vmem:[#allocation3 + $0x170] sm:$0xff] }
 0x2f4   : > { %9008 = vst [vmem:[#allocation36_spill] sm:$0xff] %v7669_v40 }
 0x2f9   : > { %5065 = vrot.lane.b32.xlu2 %v7580_v3, %s5626_s13  ;;  %5090 = vrot.lane.b32.xlu1 %v7584_v39, %s5628_s15  ;;  %v7687_v39 = vpop.permute.xlu2 %4955  ;;  %v2320_v3 = vld [vmem:[#allocation3 + $0x188] sm:$0xff]  ;;  %s5634_s13 = smov 56  }
 0x2fb   : > { %5100 = vrot.lane.b32.xlu0 %v7594_v55, %s5628_s15  ;;  %v7667_v55 = vld [vmem:[#allocation3 + $0x138] sm:$0xff] }
 0x2fc   : > { %9007 = vst [vmem:[#allocation35_spill] sm:$0xff] %v7667_v55 }
 0x301   : > { %5080 = vrot.lane.b32.xlu2 %v7610_v33, %s5628_s15  ;;  %5105 = vrot.lane.b32.xlu1 %v7614_v56, %s5628_s15  ;;  %v7677_v56 = vpack.i.bf16 %v7663_v11, %v7667_v55  ;;  %v7689_v33 = vpop.permute.xlu0 %4935 }
 0x303   : > { %5115 = vrot.lane.b32.xlu0 %v7626_v63, %s5628_s15  ;;  %v7665_v63 = vld [vmem:[#allocation3 + $0xc0] sm:$0xff]  ;;  %9010 = vst [vmem:[#allocation38_spill] sm:$0xff] %v7677_v56 }
 0x305   : > { %v7703_v31 = vpop.permute.xlu2 %4970 }
 0x309   : > { %5095 = vrot.lane.b32.xlu2 %v7642_v21, %s5628_s15  ;;  %5120 = vrot.lane.b32.xlu1 %v7646_v45, %s5628_s15  ;;  %v7673_v45 = vpack.i.bf16 %v7661_v16, %v7665_v63  ;;  %v7679_v21 = vld [vmem:[#allocation3 + $0x168] sm:$0xff] }
 0x30a   : > { %9011 = vst [vmem:[#allocation25_spill] sm:$0xff] %v7679_v21  ;;  %v5144_v62 = vpack.i.bf16 %v7669_v40, %v7679_v21  ;;  %v7709_v21 = vpop.permute.xlu0 %4945  ;;  %v7711_v40 = vld [vmem:[#allocation3 + $0x150] sm:$0xff] }
 0x30b   : > { %5130 = vrot.lane.b32.xlu0 %v5129_v58, %s5628_s15  ;;  %9009 = vst [vmem:[#allocation37_spill] sm:$0xff] %v7673_v45  ;;  %v4926_v58 = vpop.permute.xlu1 %4925 }
 0x30c   : > { %v4927_v55 = vunpack.i.l.bf16 %v4926_v58 }
 0x311   : > { %5110 = vrot.lane.b32.xlu2 %v7673_v45, %s5628_s15  ;;  %5135 = vrot.lane.b32.xlu1 %v7677_v56, %s5628_s15  ;;  %v7698_v45 = vpack.i.bf16 %v7692_v30, %v7694_v51  ;;  %v5149_v56 = vpack.i.bf16 %v2320_v3, %v2319_v59 }
 0x313   : > { %5145 = vrot.lane.b32.xlu0 %v5144_v62, %s5628_s15  ;;  %9012 = vst [vmem:[#allocation39_spill] sm:$0xff] %v7698_v45  ;;  %v4941_v54 = vpop.permute.xlu1 %4940  ;;  %v7707_v62 = vld [vmem:[#allocation3 + $0x158] sm:$0xff] }
 0x314   : > { %v7715_v59 = vpack.i.bf16 %v7707_v62, %v7711_v40  ;;  %v4943_v19 = vunpack.i.h.bf16 %v4941_v54 }
 0x316   : > { %9013 = vst [vmem:[#allocation40_spill] sm:$0xff] %v7715_v59 }
 0x319   : > { %5125 = vrot.lane.b32.xlu2 %v7698_v45, %s5628_s15  ;;  %5150 = vrot.lane.b32.xlu1 %v5149_v56, %s5628_s15  ;;  %v4928_v45 = vunpack.i.h.bf16 %v4926_v58 }
 0x31b   : > { %5160 = vrot.lane.b32.xlu0 %v7392_v38, %s5630_s17  ;;  %v7721_v3 = vpop.permute.xlu1 %4950  ;;  %v7727_v38 = vpop.permute.xlu0 %4960  ;;  %v3511_v58 = vsel %vm266_vm2, %v7598_v27, %v4928_v45 }
 0x321   : > { %5140 = vrot.lane.b32.xlu2 %v7715_v59, %s5628_s15  ;;  %5165 = vrot.lane.b32.xlu1 %v7404_v29, %s5630_s17 }
 0x323   : > { %v7723_v56 = vpop.permute.xlu2 %4975  ;;  %5175 = vrot.lane.b32.xlu0 %v7436_v41, %s5630_s17  ;;  %v3510_v41 = vsel %vm266_vm2, %v7602_v5, %v4927_v55  ;;  %v4918_v55 = vunpack.i.h.bf16 %v7618_v7 }
 0x324   : > { %9014 = vst [vmem:[#allocation41_spill] sm:$0xff] %v7723_v56 }
 0x329   : > { %5155 = vrot.lane.b32.xlu2 %v7382_v53, %s5630_s17  ;;  %5180 = vrot.lane.b32.xlu1 %v7456_v43, %s5630_s17 }
 0x32b   : > { %5190 = vrot.lane.b32.xlu0 %v7506_v9, %s5630_s17  ;;  %v4996_v29 = vpop.permute.xlu2 %4995  ;;  %v7735_v59 = vpop.permute.xlu1 %4965  ;;  %v4923_v9 = vunpack.i.h.bf16 %v7656_v52 }
 0x32c   : > { %v4998_v11 = vunpack.i.h.bf16 %v4996_v29  ;;  %v4997_v1 = vunpack.i.l.bf16 %v4996_v29  ;;  %v4942_v29 = vunpack.i.l.bf16 %v4941_v54  ;;  %v2193_v54 = vld [vmem:[#allocation3] sm:$0xff] }
 0x32d   : > { %v7741_v56 = vpop.permute.xlu0 %4980 }
 0x32e   : > { %v7744_v53 = vsel %vm1782_vm4, %v3510_v41, %v4997_v1  ;;  %v7747_v43 = vsel %vm1782_vm4, %v3511_v58, %v4998_v11  ;;  %v4917_v1 = vunpack.i.l.bf16 %v7618_v7  ;;  %v2194_v58 = vld [vmem:[#allocation3 + $0x8] sm:$0xff]  ;;  %v3517_v7 = vsel %vm266_vm2, %v7632_v57, %v4943_v19 }
 0x32f   : > { %9015 = vst [vmem:[#allocation7_spill] sm:$0xff] %v7744_v53  ;;  %v3507_v19 = vsel %vm266_vm2, %v2194_v58, %v4918_v55  ;;  %v4932_v55 = vunpack.i.l.bf16 %v7658_v4 }
 0x330   : > { %9016 = vst [vmem:[#allocation8_spill] sm:$0xff] %v7747_v43  ;;  %v3506_v57 = vsel %vm266_vm2, %v2193_v54, %v4917_v1 }
 0x331   : > { %5170 = vrot.lane.b32.xlu2 %v7416_v32, %s5630_s17  ;;  %5195 = vrot.lane.b32.xlu1 %v7559_v42, %s5630_s17  ;;  %v3508_v32 = vsel %vm266_vm2, %v7555_v36, %v4922_v50  ;;  %v3509_v42 = vsel %vm266_vm2, %v7553_v25, %v4923_v9  ;;  %v4937_v9 = vunpack.i.l.bf16 %v7689_v33 }
 0x333   : > { %5205 = vrot.lane.b32.xlu0 %v7444_v22, %s5630_s17  ;;  %v5011_v27 = vpop.permute.xlu2 %5010  ;;  %v4991_v5 = vpop.permute.xlu1 %4990  ;;  %v3516_v22 = vsel %vm266_vm2, %v7638_v28, %v4942_v29  ;;  %v4938_v28 = vunpack.i.h.bf16 %v7689_v33 }
 0x334   : > { %v5013_v45 = vunpack.i.h.bf16 %v5011_v27  ;;  %v5012_v11 = vunpack.i.l.bf16 %v5011_v27  ;;  %v4993_v52 = vunpack.i.h.bf16 %v4991_v5  ;;  %v4992_v41 = vunpack.i.l.bf16 %v4991_v5 }
 0x335   : > { %v4986_v43 = vpop.permute.xlu0 %4985 }
 0x336   : > { %v7768_v53 = vsel %vm1782_vm4, %v3516_v22, %v5012_v11  ;;  %v7771_v27 = vsel %vm1782_vm4, %v3517_v7, %v5013_v45  ;;  %v7774_v5 = vsel %vm1782_vm4, %v3509_v42, %v4993_v52  ;;  %v7777_v50 = vsel %vm1782_vm4, %v3508_v32, %v4992_v41 }
 0x337   : > { %v4988_v25 = vunpack.i.h.bf16 %v4986_v43  ;;  %v4987_v36 = vunpack.i.l.bf16 %v4986_v43  ;;  %v4933_v43 = vunpack.i.h.bf16 %v7658_v4  ;;  %v3514_v41 = vsel %vm266_vm2, %v7576_v37, %v4937_v9 }
 0x338   : > { %v4953_v7 = vunpack.i.h.bf16 %v7721_v3  ;;  %v4952_v22 = vunpack.i.l.bf16 %v7721_v3 }
 0x339   : > { %v7784_v29 = vsel %vm1782_vm4, %v3507_v19, %v4988_v25  ;;  %v7787_v45 = vsel %vm1782_vm4, %v3506_v57, %v4987_v36  ;;  %5185 = vrot.lane.b32.xlu2 %v7472_v2, %s5630_s17  ;;  %5210 = vrot.lane.b32.xlu1 %v7431_v20, %s5630_s17  ;;  %v3515_v2 = vsel %vm266_vm2, %v7574_v26, %v4938_v28 }
 0x33a   : > { %v3513_v42 = vsel %vm266_vm2, %v7557_v17, %v4933_v43  ;;  %v4972_v17 = vunpack.i.l.bf16 %v7703_v31 }
 0x33b   : > { %5220 = vrot.lane.b32.xlu0 %v7467_v6, %s5630_s17  ;;  %v5036_v33 = vpop.permute.xlu2 %5035  ;;  %v5006_v1 = vpop.permute.xlu1 %5005  ;;  %v3512_v6 = vsel %vm266_vm2, %v7563_v10, %v4932_v55  ;;  %v4973_v10 = vunpack.i.h.bf16 %v7703_v31 }
 0x33c   : > { %v5008_v11 = vunpack.i.h.bf16 %v5006_v1  ;;  %v5007_v52 = vunpack.i.l.bf16 %v5006_v1  ;;  %v5038_v9 = vunpack.i.h.bf16 %v5036_v33  ;;  %v5037_v43 = vunpack.i.l.bf16 %v5036_v33 }
 0x33d   : > { %v5001_v54 = vpop.permute.xlu0 %5000  ;;  %v3519_v33 = vsel %vm266_vm2, %v7578_v61, %v4973_v10 }
 0x33e   : > { %v7802_v20 = vsel %vm1782_vm4, %v3515_v2, %v5008_v11  ;;  %v7805_v58 = vsel %vm1782_vm4, %v3514_v41, %v5007_v52  ;;  %v5003_v4 = vunpack.i.h.bf16 %v5001_v54  ;;  %v5002_v32 = vunpack.i.l.bf16 %v5001_v54 }
 0x33f   : > { %v3518_v2 = vsel %vm266_vm2, %v7586_v18, %v4972_v17  ;;  %v4983_v54 = vunpack.i.h.bf16 %v7741_v56 }
 0x340   : > { %v7812_v37 = vsel %vm1782_vm4, %v3512_v6, %v5002_v32  ;;  %v7815_v26 = vsel %vm1782_vm4, %v3513_v42, %v5003_v4 }
 0x341   : > { %5200 = vrot.lane.b32.xlu2 %v7424_v47, %s5630_s17  ;;  %5225 = vrot.lane.b32.xlu1 %v7488_v60, %s5630_s17  ;;  %v3529_v47 = vsel %vm266_vm2, %v7692_v30, %v4953_v7  ;;  %v3528_v60 = vsel %vm266_vm2, %v7694_v51, %v4952_v22  ;;  %v2352_v7 = vld [vmem:[#allocation3 + $0x189] sm:$0xff]  ;;  %v3521_v22 = vsel %vm266_vm2, %v7600_v12, %v4983_v54 }
 0x343   : > { %5235 = vrot.lane.b32.xlu0 %v7479_v13, %s5631_s10  ;;  %v5041_v25 = vpop.permute.xlu2 %5040  ;;  %v5021_v36 = vpop.permute.xlu1 %5020 }
 0x344   : > { %v5043_v19 = vunpack.i.h.bf16 %v5041_v25  ;;  %v5042_v57 = vunpack.i.l.bf16 %v5041_v25  ;;  %v5023_v28 = vunpack.i.h.bf16 %v5021_v36  ;;  %v5022_v3 = vunpack.i.l.bf16 %v5021_v36  ;;  %v2351_v36 = vld [vmem:[#allocation3 + $0x181] sm:$0xff] }
 0x345   : > { %v5016_v55 = vpop.permute.xlu0 %5015  ;;  %v7879_v12 = vpack.i.bf16 %v2352_v7, %v2351_v36 }
 0x346   : > { %v7832_v31 = vsel %vm1782_vm4, %v3528_v60, %v5042_v57  ;;  %v7835_v13 = vsel %vm1782_vm4, %v3529_v47, %v5043_v19  ;;  %v3523_v1 = vsel %vm266_vm2, %v7661_v16, %v5023_v28  ;;  %v3522_v11 = vsel %vm266_vm2, %v7665_v63, %v5022_v3 }
 0x347   : > { %v5018_v52 = vunpack.i.h.bf16 %v5016_v55  ;;  %v5017_v30 = vunpack.i.l.bf16 %v5016_v55  ;;  %v7842_v41 = vsel %vm1782_vm4, %v3522_v11, %v5037_v43  ;;  %v7845_v51 = vsel %vm1782_vm4, %v3523_v1, %v5038_v9 }
 0x348   : > { %v4982_v16 = vunpack.i.l.bf16 %v7741_v56  ;;  %v4947_v28 = vunpack.i.l.bf16 %v7709_v21  ;;  %v4967_v3 = vunpack.i.l.bf16 %v7735_v59  ;;  %v4958_v60 = vunpack.i.h.bf16 %v7687_v39 }
 0x349   : > { %v7854_v63 = vsel %vm1782_vm4, %v3518_v2, %v5017_v30  ;;  %v7857_v4 = vsel %vm1782_vm4, %v3519_v33, %v5018_v52  ;;  %5215 = vrot.lane.b32.xlu2 %v7451_v49, %s5630_s17  ;;  %5240 = vrot.lane.b32.xlu1 %v7504_v8, %s5631_s10 }
 0x34a   : > { %v3520_v10 = vsel %vm266_vm2, %v7604_v48, %v4982_v16  ;;  %v4948_v48 = vunpack.i.h.bf16 %v7709_v21  ;;  %v4957_v21 = vunpack.i.l.bf16 %v7687_v39  ;;  %v3526_v30 = vsel %vm266_vm2, %v7636_v44, %v4947_v28 }
 0x34b   : > { %5250 = vrot.lane.b32.xlu0 %v7490_v24, %s5631_s10  ;;  %v5046_v61 = vpop.permute.xlu2 %5045  ;;  %v5026_v18 = vpop.permute.xlu1 %5025  ;;  %v3534_v39 = vsel %vm266_vm2, %v7711_v40, %v4967_v3 }
 0x34c   : > { %v5048_v32 = vunpack.i.h.bf16 %v5046_v61  ;;  %v5047_v6 = vunpack.i.l.bf16 %v5046_v61  ;;  %v5028_v56 = vunpack.i.h.bf16 %v5026_v18  ;;  %v5027_v42 = vunpack.i.l.bf16 %v5026_v18 }
 0x34d   : > { %v5051_v49 = vpop.permute.xlu0 %5050  ;;  %v3527_v52 = vsel %vm266_vm2, %v7630_v46, %v4948_v48  ;;  %v3530_v40 = vsel %vm266_vm2, %v7648_v15, %v4957_v21  ;;  %v4963_v61 = vunpack.i.h.bf16 %v7727_v38  ;;  %v4962_v18 = vunpack.i.l.bf16 %v7727_v38  ;;  %v9022_v48 = vld [vmem:[#allocation35_spill] sm:$0xff] }
 0x34e   : > { %v3525_v8 = vsel %vm266_vm2, %v7606_v34, %v5048_v32  ;;  %v3524_v24 = vsel %vm266_vm2, %v7616_v23, %v5047_v6  ;;  %v7874_v17 = vsel %vm1782_vm4, %v3521_v22, %v5028_v56  ;;  %v7877_v25 = vsel %vm1782_vm4, %v3520_v10, %v5027_v42  ;;  %v9017_v56 = vld [vmem:[#allocation15_spill] sm:$0xff]  ;;  %v9018_v42 = vld [vmem:[#allocation20_spill] sm:$0xff] }
 0x34f   : > { %v5053_v19 = vunpack.i.h.bf16 %v5051_v49  ;;  %v5052_v57 = vunpack.i.l.bf16 %v5051_v49  ;;  %v4968_v34 = vunpack.i.h.bf16 %v7735_v59  ;;  %v9020_v22 = vld [vmem:[#allocation19_spill] sm:$0xff]  ;;  %v3532_v28 = vsel %vm266_vm2, %v9022_v48, %v4962_v18 }
 0x351   : > { %v7886_v23 = vsel %vm1782_vm4, %v3524_v24, %v5052_v57  ;;  %v7889_v47 = vsel %vm1782_vm4, %v3525_v8, %v5053_v19  ;;  %5230 = vrot.lane.b32.xlu2 %v7879_v12, %s5630_s17  ;;  %5255 = vrot.lane.b32.xlu1 %v7517_v0, %s5631_s10  ;;  %v3535_v0 = vsel %vm266_vm2, %v7707_v62, %v4968_v34  ;;  %v9021_v19 = vld [vmem:[#allocation21_spill] sm:$0xff] }
 0x352   : > { %v3531_v62 = vsel %vm266_vm2, %v7634_v14, %v4958_v60  ;;  %v9019_v14 = vld [vmem:[#allocation41_spill] sm:$0xff]  ;;  %v3533_v57 = vsel %vm266_vm2, %v9021_v19, %v4963_v61 }
 0x353   : > { %5265 = vrot.lane.b32.xlu0 %v7519_v35, %s5631_s10  ;;  %v5066_v59 = vpop.permute.xlu2 %5065  ;;  %v5031_v9 = vpop.permute.xlu1 %5030  ;;  %v4978_v7 = vunpack.i.h.bf16 %v9019_v14  ;;  %v4977_v15 = vunpack.i.l.bf16 %v9019_v14 }
 0x354   : > { %v5068_v43 = vunpack.i.h.bf16 %v5066_v59  ;;  %v5067_v55 = vunpack.i.l.bf16 %v5066_v59  ;;  %v5033_v1 = vunpack.i.h.bf16 %v5031_v9  ;;  %v5032_v11 = vunpack.i.l.bf16 %v5031_v9 }
 0x355   : > { %v5056_v33 = vpop.permute.xlu0 %5055 }
 0x356   : > { %v7908_v35 = vsel %vm1782_vm4, %v3534_v39, %v5067_v55  ;;  %v7911_v2 = vsel %vm1782_vm4, %v3535_v0, %v5068_v43  ;;  %v7914_v54 = vsel %vm1782_vm4, %v3527_v52, %v5033_v1  ;;  %v7917_v46 = vsel %vm1782_vm4, %v3526_v30, %v5032_v11  ;;  %v9023_v55 = vld [vmem:[#allocation36_spill] sm:$0xff]  ;;  %v9024_v11 = vld [vmem:[#allocation25_spill] sm:$0xff]  ;;  %v9025_v30 = vld [vmem:[#allocation14_spill] sm:$0xff] }
 0x357   : > { %v5058_v44 = vunpack.i.h.bf16 %v5056_v33  ;;  %v5057_v16 = vunpack.i.l.bf16 %v5056_v33  ;;  %v3537_v1 = vsel %vm266_vm2, %v9023_v55, %v4978_v7  ;;  %v3536_v52 = vsel %vm266_vm2, %v9024_v11, %v4977_v15  ;;  %v9026_v0 = vld [vmem:[#allocation17_spill] sm:$0xff]  ;;  %v9027_v39 = vld [vmem:[#allocation24_spill] sm:$0xff] }
 0x358   : > { %v2383_v15 = vld [vmem:[#allocation3 + $0x182] sm:$0xff] }
 0x359   : > { %v7926_v32 = vsel %vm1782_vm4, %v3530_v40, %v5057_v16  ;;  %v7929_v6 = vsel %vm1782_vm4, %v3531_v62, %v5058_v44  ;;  %5245 = vrot.lane.b32.xlu2 %v9017_v56, %s5631_s10  ;;  %5270 = vrot.lane.b32.xlu1 %v9018_v42, %s5631_s10 }
 0x35b   : > { %5280 = vrot.lane.b32.xlu0 %v9020_v22, %s5631_s10  ;;  %v5081_v38 = vpop.permute.xlu2 %5080  ;;  %v5061_v10 = vpop.permute.xlu1 %5060  ;;  %v2384_v22 = vld [vmem:[#allocation3 + $0x18a] sm:$0xff] }
 0x35c   : > { %v5083_v49 = vunpack.i.h.bf16 %v5081_v38  ;;  %v5082_v8 = vunpack.i.l.bf16 %v5081_v38  ;;  %v5063_v24 = vunpack.i.h.bf16 %v5061_v10  ;;  %v5062_v36 = vunpack.i.l.bf16 %v5061_v10 }
 0x35d   : > { %v5071_v34 = vpop.permute.xlu0 %5070 }
 0x35e   : > { %v7945_v3 = vsel %vm1848_vm6, %v7777_v50, %v5082_v8  ;;  %v7949_v60 = vsel %vm1848_vm6, %v7774_v5, %v5083_v49  ;;  %v7952_v21 = vsel %vm1782_vm4, %v3533_v57, %v5063_v24  ;;  %v7955_v59 = vsel %vm1782_vm4, %v3532_v28, %v5062_v36  ;;  %v9028_v49 = vld [vmem:[#allocation7_spill] sm:$0xff]  ;;  %v9029_v8 = vld [vmem:[#allocation8_spill] sm:$0xff]  ;;  %v9030_v24 = vld [vmem:[#allocation13_spill] sm:$0xff] }
 0x35f   : > { %v5073_v9 = vunpack.i.h.bf16 %v5071_v34  ;;  %v5072_v43 = vunpack.i.l.bf16 %v5071_v34 }
 0x361   : > { %v7962_v50 = vsel %vm1782_vm4, %v3536_v52, %v5072_v43  ;;  %v7965_v5 = vsel %vm1782_vm4, %v3537_v1, %v5073_v9  ;;  %5260 = vrot.lane.b32.xlu2 %v9025_v30, %s5631_s10  ;;  %5285 = vrot.lane.b32.xlu1 %v9026_v0, %s5631_s10 }
 0x363   : > { %5295 = vrot.lane.b32.xlu0 %v9027_v39, %s5631_s10  ;;  %v5096_v33 = vpop.permute.xlu2 %5095  ;;  %v5076_v44 = vpop.permute.xlu1 %5075 }
 0x364   : > { %v5098_v16 = vunpack.i.h.bf16 %v5096_v33  ;;  %v5097_v62 = vunpack.i.l.bf16 %v5096_v33  ;;  %v5078_v40 = vunpack.i.h.bf16 %v5076_v44  ;;  %v5077_v61 = vunpack.i.l.bf16 %v5076_v44 }
 0x365   : > { %v5086_v18 = vpop.permute.xlu0 %5085 }
 0x366   : > { %v7975_v56 = vsel %vm1848_vm6, %v7805_v58, %v5097_v62  ;;  %v7979_v42 = vsel %vm1848_vm6, %v7802_v20, %v5098_v16  ;;  %v7983_v14 = vsel %vm1848_vm6, %v7784_v29, %v5078_v40  ;;  %v7987_v7 = vsel %vm1848_vm6, %v7787_v45, %v5077_v61  ;;  %v9031_v29 = vld [vmem:[#allocation28_spill] sm:$0xff] }
 0x367   : > { %v5088_v38 = vunpack.i.h.bf16 %v5086_v18  ;;  %v5087_v10 = vunpack.i.l.bf16 %v5086_v18  ;;  %v8001_v45 = vpack.i.bf16 %v2384_v22, %v2383_v15 }
 0x369   : > { %v7991_v58 = vsel %vm1848_vm6, %v9028_v49, %v5087_v10  ;;  %v7995_v20 = vsel %vm1848_vm6, %v9029_v8, %v5088_v38  ;;  %5275 = vrot.lane.b32.xlu2 %v9030_v24, %s5631_s10  ;;  %5300 = vrot.lane.b32.xlu1 %v9031_v29, %s5631_s10  ;;  %v9037_v49 = vld [vmem:[#allocation10_spill] sm:$0xff] }
 0x36b   : > { %5310 = vrot.lane.b32.xlu0 %v8001_v45, %s5631_s10  ;;  %v5111_v36 = vpop.permute.xlu2 %5110  ;;  %v5091_v19 = vpop.permute.xlu1 %5090 }
 0x36c   : > { %v5113_v57 = vunpack.i.h.bf16 %v5111_v36  ;;  %v5112_v48 = vunpack.i.l.bf16 %v5111_v36  ;;  %v5093_v28 = vunpack.i.h.bf16 %v5091_v19  ;;  %v5092_v34 = vunpack.i.l.bf16 %v5091_v19 }
 0x36d   : > { %v5101_v9 = vpop.permute.xlu0 %5100 }
 0x36e   : > { %v8007_v43 = vsel %vm1848_vm6, %v7877_v25, %v5112_v48  ;;  %v8011_v55 = vsel %vm1848_vm6, %v7874_v17, %v5113_v57  ;;  %v8015_v1 = vsel %vm1848_vm6, %v7815_v26, %v5093_v28  ;;  %v8019_v11 = vsel %vm1848_vm6, %v7812_v37, %v5092_v34  ;;  %v9032_v17 = vld [vmem:[#allocation18_spill] sm:$0xff]  ;;  %v9033_v26 = vld [vmem:[#allocation33_spill] sm:$0xff]  ;;  %v9034_v37 = vld [vmem:[#allocation27_spill] sm:$0xff] }
 0x36f   : > { %v5103_v52 = vunpack.i.h.bf16 %v5101_v9  ;;  %v5102_v30 = vunpack.i.l.bf16 %v5101_v9 }
 0x371   : > { %v8023_v0 = vsel %vm1848_vm6, %v7768_v53, %v5102_v30  ;;  %v8027_v25 = vsel %vm1848_vm6, %v7771_v27, %v5103_v52  ;;  %5290 = vrot.lane.b32.xlu2 %v9032_v17, %s5631_s10  ;;  %5315 = vrot.lane.b32.xlu1 %v9033_v26, %s5632_s11  ;;  %v9040_v30 = vld [vmem:[#allocation22_spill] sm:$0xff] }
 0x373   : > { %5325 = vrot.lane.b32.xlu0 %v9034_v37, %s5632_s11  ;;  %v5126_v39 = vpop.permute.xlu2 %5125  ;;  %v5106_v33 = vpop.permute.xlu1 %5105 }
 0x374   : > { %v5128_v44 = vunpack.i.h.bf16 %v5126_v39  ;;  %v5127_v16 = vunpack.i.l.bf16 %v5126_v39  ;;  %v5108_v53 = vunpack.i.h.bf16 %v5106_v33  ;;  %v5107_v62 = vunpack.i.l.bf16 %v5106_v33 }
 0x375   : > { %v5116_v40 = vpop.permute.xlu0 %5115 }
 0x376   : > { %v8037_v27 = vsel %vm1848_vm6, %v7917_v46, %v5127_v16  ;;  %v8041_v61 = vsel %vm1848_vm6, %v7914_v54, %v5128_v44  ;;  %v8045_v18 = vsel %vm1848_vm6, %v7857_v4, %v5108_v53  ;;  %v8049_v15 = vsel %vm1848_vm6, %v7854_v63, %v5107_v62  ;;  %v9035_v54 = vld [vmem:[#allocation29_spill] sm:$0xff]  ;;  %v9036_v4 = vld [vmem:[#allocation34_spill] sm:$0xff] }
 0x377   : > { %v5118_v22 = vunpack.i.h.bf16 %v5116_v40  ;;  %v5117_v38 = vunpack.i.l.bf16 %v5116_v40 }
 0x379   : > { %v8053_v10 = vsel %vm1848_vm6, %v7842_v41, %v5117_v38  ;;  %v8057_v46 = vsel %vm1848_vm6, %v7845_v51, %v5118_v22  ;;  %5305 = vrot.lane.b32.xlu2 %v9035_v54, %s5631_s10  ;;  %5330 = vrot.lane.b32.xlu1 %v9036_v4, %s5632_s11  ;;  %v9043_v38 = vld [vmem:[#allocation38_spill] sm:$0xff]  ;;  %s215_s10 = sand.u32 1, %s5612_s19  }
 0x37a   : > { %s4063_s25 = scalar_lea.sflag [#allocation5], %s215_s10 }
 0x37b   : > { %5340 = vrot.lane.b32.xlu0 %v9037_v49, %s5632_s11  ;;  %v5141_v63 = vpop.permute.xlu2 %5140  ;;  %v5121_v8 = vpop.permute.xlu1 %5120 }
 0x37c   : > { %v5143_v24 = vunpack.i.h.bf16 %v5141_v63  ;;  %v5142_v29 = vunpack.i.l.bf16 %v5141_v63  ;;  %v5123_v36 = vunpack.i.h.bf16 %v5121_v8  ;;  %v5122_v41 = vunpack.i.l.bf16 %v5121_v8 }
 0x37d   : > { %v5131_v19 = vpop.permute.xlu0 %5130 }
 0x37e   : > { %v8067_v51 = vsel %vm1848_vm6, %v7955_v59, %v5142_v29  ;;  %v8071_v57 = vsel %vm1848_vm6, %v7952_v21, %v5143_v24  ;;  %v8075_v48 = vsel %vm1848_vm6, %v7889_v47, %v5123_v36  ;;  %v8079_v28 = vsel %vm1848_vm6, %v7886_v23, %v5122_v41  ;;  %v9038_v21 = vld [vmem:[#allocation23_spill] sm:$0xff]  ;;  %v9039_v47 = vld [vmem:[#allocation37_spill] sm:$0xff] }
 0x37f   : > { %v5133_v34 = vunpack.i.h.bf16 %v5131_v19  ;;  %v5132_v9 = vunpack.i.l.bf16 %v5131_v19  ;;  %v2466_v41 = vld [vmem:[#allocation3 + $0xf2] sm:$0xff]  ;;  %v2467_v19 = vld [vmem:[#allocation3 + $0xfa] sm:$0xff] }
 0x381   : > { %v8083_v52 = vsel %vm1848_vm6, %v7832_v31, %v5132_v9  ;;  %v8087_v59 = vsel %vm1848_vm6, %v7835_v13, %v5133_v34  ;;  %5320 = vrot.lane.b32.xlu2 %v9038_v21, %s5632_s11  ;;  %5345 = vrot.lane.b32.xlu1 %v9039_v47, %s5632_s11  ;;  %v9044_v21 = vld [vmem:[#allocation32_spill] sm:$0xff] }
 0x383   : > { %5355 = vrot.lane.b32.xlu0 %v9040_v30, %s5632_s11  ;;  %v5156_v23 = vpop.permute.xlu2 %5155  ;;  %v5136_v17 = vpop.permute.xlu1 %5135 }
 0x384   : > { %v5158_v26 = vunpack.i.h.bf16 %v5156_v23  ;;  %v5157_v37 = vunpack.i.l.bf16 %v5156_v23  ;;  %v5138_v39 = vunpack.i.h.bf16 %v5136_v17  ;;  %v5137_v31 = vunpack.i.l.bf16 %v5136_v17 }
 0x385   : > { %v5146_v33 = vpop.permute.xlu0 %5145 }
 0x386   : > { %v8097_v13 = vsel %vm1914_vm9, %v7987_v7, %v5157_v37  ;;  %v8101_v44 = vsel %vm1914_vm9, %v7983_v14, %v5158_v26  ;;  %v8105_v16 = vsel %vm1848_vm6, %v7929_v6, %v5138_v39  ;;  %v8109_v53 = vsel %vm1848_vm6, %v7926_v32, %v5137_v31  ;;  %v9041_v14 = vld [vmem:[#allocation76_spill] sm:$0xff]  ;;  %v9042_v6 = vld [vmem:[#allocation39_spill] sm:$0xff]  ;;  %v2407_v37 = vld [vmem:[#allocation3 + $0x128] sm:$0xff] }
 0x387   : > { %v5148_v62 = vunpack.i.h.bf16 %v5146_v33  ;;  %v5147_v40 = vunpack.i.l.bf16 %v5146_v33  ;;  %v2419_v39 = vld [vmem:[#allocation3 + $0x39] sm:$0xff] }
 0x389   : > { %v8113_v22 = vsel %vm1848_vm6, %v7908_v35, %v5147_v40  ;;  %v8117_v7 = vsel %vm1848_vm6, %v7911_v2, %v5148_v62  ;;  %5335 = vrot.lane.b32.xlu2 %v9041_v14, %s5632_s11  ;;  %5360 = vrot.lane.b32.xlu1 %v9042_v6, %s5632_s11  ;;  %v2406_v14 = vld [vmem:[#allocation3 + $0x120] sm:$0xff]  ;;  %v2418_v6 = vld [vmem:[#allocation3 + $0x31] sm:$0xff] }
 0x38b   : > { %5370 = vrot.lane.b32.xlu0 %v9043_v38, %s5632_s11  ;;  %v5171_v32 = vpop.permute.xlu2 %5170  ;;  %v5151_v54 = vpop.permute.xlu1 %5150  ;;  %v2437_v38 = vld [vmem:[#allocation3 + $0x111] sm:$0xff] }
 0x38c   : > { %v5173_v4 = vunpack.i.h.bf16 %v5171_v32  ;;  %v5172_v49 = vunpack.i.l.bf16 %v5171_v32  ;;  %v5153_v63 = vunpack.i.h.bf16 %v5151_v54  ;;  %v5152_v35 = vunpack.i.l.bf16 %v5151_v54 }
 0x38d   : > { %v5161_v8 = vpop.permute.xlu0 %5160 }
 0x38e   : > { %v8127_v2 = vsel %vm1914_vm9, %v8019_v11, %v5172_v49  ;;  %v8131_v24 = vsel %vm1914_vm9, %v8015_v1, %v5173_v4  ;;  %v8135_v29 = vsel %vm1848_vm6, %v7965_v5, %v5153_v63  ;;  %v8139_v36 = vsel %vm1848_vm6, %v7962_v50, %v5152_v35  ;;  %v9045_v5 = vld [vmem:[#allocation40_spill] sm:$0xff]  ;;  %v2436_v49 = vld [vmem:[#allocation3 + $0x109] sm:$0xff] }
 0x38f   : > { %v5163_v34 = vunpack.i.h.bf16 %v5161_v8  ;;  %v5162_v9 = vunpack.i.l.bf16 %v5161_v8  ;;  %v5384_v50 = vpack.i.bf16 %v2467_v19, %v2466_v41  ;;  %v5364_v4 = vpack.i.bf16 %v2407_v37, %v2406_v14 }
 0x391   : > { %v8143_v11 = vsel %vm1914_vm9, %v7945_v3, %v5162_v9  ;;  %v8147_v1 = vsel %vm1914_vm9, %v7949_v60, %v5163_v34  ;;  %5350 = vrot.lane.b32.xlu2 %v9044_v21, %s5632_s11  ;;  %5375 = vrot.lane.b32.xlu1 %v9045_v5, %s5632_s11  ;;  %v2468_v9 = vld [vmem:[#allocation3 + $0x10a] sm:$0xff]  ;;  %v2469_v21 = vld [vmem:[#allocation3 + $0x112] sm:$0xff] }
 0x393   : > { %5385 = vrot.lane.b32.xlu0 %v5384_v50, %s5633_s12  ;;  %v5186_v47 = vpop.permute.xlu2 %5185  ;;  %v5166_v30 = vpop.permute.xlu1 %5165 }
 0x394   : > { %v5188_v23 = vunpack.i.h.bf16 %v5186_v47  ;;  %v5187_v17 = vunpack.i.l.bf16 %v5186_v47  ;;  %v5168_v3 = vunpack.i.h.bf16 %v5166_v30  ;;  %v5167_v26 = vunpack.i.l.bf16 %v5166_v30 }
 0x395   : > { %v5176_v60 = vpop.permute.xlu0 %5175 }
 0x396   : > { %v8156_v31 = vsel %vm1914_vm9, %v8049_v15, %v5187_v17  ;;  %v8160_v33 = vsel %vm1914_vm9, %v8045_v18, %v5188_v23  ;;  %v8164_v62 = vsel %vm1914_vm9, %v7991_v58, %v5167_v26  ;;  %v8168_v40 = vsel %vm1914_vm9, %v7995_v20, %v5168_v3  ;;  %v2434_v23 = vld [vmem:[#allocation3 + $0xf1] sm:$0xff] }
 0x397   : > { %v5178_v32 = vunpack.i.h.bf16 %v5176_v60  ;;  %v5177_v54 = vunpack.i.l.bf16 %v5176_v60  ;;  %v5389_v15 = vpack.i.bf16 %v2419_v39, %v2418_v6  ;;  %v5399_v20 = vpack.i.bf16 %v2437_v38, %v2436_v49  ;;  %v2452_v17 = vld [vmem:[#allocation3 + $0x4a] sm:$0xff]  ;;  %v2453_v3 = vld [vmem:[#allocation3 + $0x52] sm:$0xff] }
 0x399   : > { %v8172_v18 = vsel %vm1914_vm9, %v7975_v56, %v5177_v54  ;;  %v8176_v58 = vsel %vm1914_vm9, %v7979_v42, %v5178_v32  ;;  %5365 = vrot.lane.b32.xlu2 %v5364_v4, %s5632_s11  ;;  %5390 = vrot.lane.b32.xlu1 %v5389_v15, %s5634_s13  ;;  %v2435_v56 = vld [vmem:[#allocation3 + $0xf9] sm:$0xff]  ;;  %v2439_v15 = vld [vmem:[#allocation3 + $0x129] sm:$0xff] }
 0x39a   : > { %v5379_v39 = vpack.i.bf16 %v2435_v56, %v2434_v23  ;;  %v2450_v4 = vld [vmem:[#allocation3 + $0x32] sm:$0xff] }
 0x39b   : > { %5400 = vrot.lane.b32.xlu0 %v5399_v20, %s5634_s13  ;;  %v5201_v63 = vpop.permute.xlu2 %5200  ;;  %v5181_v35 = vpop.permute.xlu1 %5180 }
 0x39c   : > { %v5203_v8 = vunpack.i.h.bf16 %v5201_v63  ;;  %v5202_v41 = vunpack.i.l.bf16 %v5201_v63  ;;  %v5183_v19 = vunpack.i.h.bf16 %v5181_v35  ;;  %v5182_v34 = vunpack.i.l.bf16 %v5181_v35 }
 0x39d   : > { %v5191_v5 = vpop.permute.xlu0 %5190 }
 0x39e   : > { %v8183_v42 = vsel %vm1914_vm9, %v8079_v28, %v5202_v41  ;;  %v8187_v50 = vsel %vm1914_vm9, %v8075_v48, %v5203_v8  ;;  %v8191_v47 = vsel %vm1914_vm9, %v8023_v0, %v5182_v34  ;;  %v8195_v30 = vsel %vm1914_vm9, %v8027_v25, %v5183_v19  ;;  %v2438_v8 = vld [vmem:[#allocation3 + $0x121] sm:$0xff]  ;;  %v2423_v41 = vld [vmem:[#allocation3 + $0x69] sm:$0xff] }
 0x39f   : > { %v5193_v26 = vunpack.i.h.bf16 %v5191_v5  ;;  %v5192_v37 = vunpack.i.l.bf16 %v5191_v5  ;;  %v5404_v28 = vpack.i.bf16 %v2469_v21, %v2468_v9  ;;  %v5414_v0 = vpack.i.bf16 %v2453_v3, %v2452_v17 }
 0x3a0   : > { %v5419_v9 = vpack.i.bf16 %v2439_v15, %v2438_v8 }
 0x3a1   : > { %v8199_v60 = vsel %vm1914_vm9, %v8007_v43, %v5192_v37  ;;  %v8203_v48 = vsel %vm1914_vm9, %v8011_v55, %v5193_v26  ;;  %5380 = vrot.lane.b32.xlu2 %v5379_v39, %s5634_s13  ;;  %5405 = vrot.lane.b32.xlu1 %v5404_v28, %s5633_s12  ;;  %v2451_v43 = vld [vmem:[#allocation3 + $0x3a] sm:$0xff]  ;;  %v2421_v37 = vld [vmem:[#allocation3 + $0x51] sm:$0xff] }
 0x3a2   : > { %v5394_v56 = vpack.i.bf16 %v2451_v43, %v2450_v4  ;;  %v2455_v39 = vld [vmem:[#allocation3 + $0x6a] sm:$0xff] }
 0x3a3   : > { %5415 = vrot.lane.b32.xlu0 %v5414_v0, %s5633_s12  ;;  %v5216_v25 = vpop.permute.xlu2 %5215  ;;  %v5196_v14 = vpop.permute.xlu1 %5195 }
 0x3a4   : > { %v5218_v6 = vunpack.i.h.bf16 %v5216_v25  ;;  %v5217_v38 = vunpack.i.l.bf16 %v5216_v25  ;;  %v5198_v32 = vunpack.i.h.bf16 %v5196_v14  ;;  %v5197_v54 = vunpack.i.l.bf16 %v5196_v14 }
 0x3a5   : > { %v5206_v49 = vpop.permute.xlu0 %5205 }
 0x3a6   : > { %v8210_v55 = vsel %vm1914_vm9, %v8109_v53, %v5217_v38  ;;  %v8214_v20 = vsel %vm1914_vm9, %v8105_v16, %v5218_v6  ;;  %v8218_v63 = vsel %vm1914_vm9, %v8053_v10, %v5197_v54  ;;  %v8222_v35 = vsel %vm1914_vm9, %v8057_v46, %v5198_v32  ;;  %v2422_v53 = vld [vmem:[#allocation3 + $0x61] sm:$0xff]  ;;  %v2420_v6 = vld [vmem:[#allocation3 + $0x49] sm:$0xff] }
 0x3a7   : > { %v5208_v19 = vunpack.i.h.bf16 %v5206_v49  ;;  %v5207_v34 = vunpack.i.l.bf16 %v5206_v49  ;;  %v5429_v10 = vpack.i.bf16 %v2423_v41, %v2422_v53  ;;  %v2472_v38 = vld [vmem:[#allocation3 + $0x13a] sm:$0xff]  ;;  %v2473_v32 = vld [vmem:[#allocation3 + $0x142] sm:$0xff]  ;;  %v5409_v43 = vpack.i.bf16 %v2421_v37, %v2420_v6 }
 0x3a9   : > { %v8226_v21 = vsel %vm1914_vm9, %v8037_v27, %v5207_v34  ;;  %v8230_v16 = vsel %vm1914_vm9, %v8041_v61, %v5208_v19  ;;  %5395 = vrot.lane.b32.xlu2 %v5394_v56, %s5633_s12  ;;  %5420 = vrot.lane.b32.xlu1 %v5419_v9, %s5634_s13  ;;  %v2454_v27 = vld [vmem:[#allocation3 + $0x62] sm:$0xff]  ;;  %v2471_v56 = vld [vmem:[#allocation3 + $0x12a] sm:$0xff] }
 0x3aa   : > { %v2425_v9 = vld [vmem:[#allocation3 + $0x81] sm:$0xff] }
 0x3ab   : > { %5430 = vrot.lane.b32.xlu0 %v5429_v10, %s5634_s13  ;;  %v5231_v46 = vpop.permute.xlu2 %5230  ;;  %v5211_v5 = vpop.permute.xlu1 %5210 }
 0x3ac   : > { %v5233_v23 = vunpack.i.h.bf16 %v5231_v46  ;;  %v5232_v17 = vunpack.i.l.bf16 %v5231_v46  ;;  %v5213_v3 = vunpack.i.h.bf16 %v5211_v5  ;;  %v5212_v26 = vunpack.i.l.bf16 %v5211_v5 }
 0x3ad   : > { %v5221_v28 = vpop.permute.xlu0 %5220 }
 0x3ae   : > { %v8237_v61 = vsel %vm1914_vm9, %v8139_v36, %v5232_v17  ;;  %v8241_v0 = vsel %vm1914_vm9, %v8135_v29, %v5233_v23  ;;  %v8245_v25 = vsel %vm1914_vm9, %v8083_v52, %v5212_v26  ;;  %v8249_v14 = vsel %vm1914_vm9, %v8087_v59, %v5213_v3  ;;  %v2424_v23 = vld [vmem:[#allocation3 + $0x79] sm:$0xff] }
 0x3af   : > { %v5223_v54 = vunpack.i.h.bf16 %v5221_v28  ;;  %v5222_v4 = vunpack.i.l.bf16 %v5221_v28  ;;  %v5434_v36 = vpack.i.bf16 %v2455_v39, %v2454_v27  ;;  %v5444_v52 = vpack.i.bf16 %v2473_v32, %v2472_v38  ;;  %v2443_v17 = vld [vmem:[#allocation3 + $0x159] sm:$0xff] }
 0x3b0   : > { %v5449_v27 = vpack.i.bf16 %v2425_v9, %v2424_v23 }
 0x3b1   : > { %v8253_v15 = vsel %vm1914_vm9, %v8067_v51, %v5222_v4  ;;  %v8257_v29 = vsel %vm1914_vm9, %v8071_v57, %v5223_v54  ;;  %5410 = vrot.lane.b32.xlu2 %v5409_v43, %s5634_s13  ;;  %5435 = vrot.lane.b32.xlu1 %v5434_v36, %s5633_s12  ;;  %v2470_v51 = vld [vmem:[#allocation3 + $0x122] sm:$0xff]  ;;  %v2475_v43 = vld [vmem:[#allocation3 + $0x15a] sm:$0xff] }
 0x3b2   : > { %v5424_v37 = vpack.i.bf16 %v2471_v56, %v2470_v51  ;;  %v2441_v4 = vld [vmem:[#allocation3 + $0x141] sm:$0xff] }
 0x3b3   : > { %5445 = vrot.lane.b32.xlu0 %v5444_v52, %s5633_s12  ;;  %v5246_v59 = vpop.permute.xlu2 %5245  ;;  %v5226_v49 = vpop.permute.xlu1 %5225 }
 0x3b4   : > { %v5248_v8 = vunpack.i.h.bf16 %v5246_v59  ;;  %v5247_v41 = vunpack.i.l.bf16 %v5246_v59  ;;  %v5228_v19 = vunpack.i.h.bf16 %v5226_v49  ;;  %v5227_v34 = vunpack.i.l.bf16 %v5226_v49 }
 0x3b5   : > { %v5236_v53 = vpop.permute.xlu0 %5235 }
 0x3b6   : > { %v8264_v57 = vsel %vm3634_vm12, %v8164_v62, %v5247_v41  ;;  %v8268_v10 = vsel %vm3634_vm12, %v8168_v40, %v5248_v8  ;;  %v8272_v46 = vsel %vm1914_vm9, %v8113_v22, %v5227_v34  ;;  %v8276_v5 = vsel %vm1914_vm9, %v8117_v7, %v5228_v19  ;;  %v2442_v62 = vld [vmem:[#allocation3 + $0x151] sm:$0xff]  ;;  %v2440_v8 = vld [vmem:[#allocation3 + $0x139] sm:$0xff] }
 0x3b7   : > { %v5238_v3 = vunpack.i.h.bf16 %v5236_v53  ;;  %v5237_v26 = vunpack.i.l.bf16 %v5236_v53  ;;  %v5459_v22 = vpack.i.bf16 %v2443_v17, %v2442_v62  ;;  %v2458_v41 = vld [vmem:[#allocation3 + $0x92] sm:$0xff]  ;;  %v2459_v19 = vld [vmem:[#allocation3 + $0x9a] sm:$0xff]  ;;  %v5439_v56 = vpack.i.bf16 %v2441_v4, %v2440_v8  ;;  %v2412_v62 = vld [vmem:[#allocation3 + $0x168] sm:$0xff] }
 0x3b9   : > { %v8280_v39 = vsel %vm3634_vm12, %v8097_v13, %v5237_v26  ;;  %v8284_v40 = vsel %vm3634_vm12, %v8101_v44, %v5238_v3  ;;  %5425 = vrot.lane.b32.xlu2 %v5424_v37, %s5633_s12  ;;  %5450 = vrot.lane.b32.xlu1 %v5449_v27, %s5634_s13  ;;  %v2474_v13 = vld [vmem:[#allocation3 + $0x152] sm:$0xff]  ;;  %v2456_v3 = vld [vmem:[#allocation3 + $0x7a] sm:$0xff]  ;;  %v2457_v26 = vld [vmem:[#allocation3 + $0x82] sm:$0xff] }
 0x3bb   : > { %5460 = vrot.lane.b32.xlu0 %v5459_v22, %s5634_s13  ;;  %v5261_v7 = vpop.permute.xlu2 %5260  ;;  %v5241_v28 = vpop.permute.xlu1 %5240  ;;  %v2476_v22 = vld [vmem:[#allocation3 + $0x16a] sm:$0xff] }
 0x3bc   : > { %v5263_v6 = vunpack.i.h.bf16 %v5261_v7  ;;  %v5262_v38 = vunpack.i.l.bf16 %v5261_v7  ;;  %v5243_v32 = vunpack.i.h.bf16 %v5241_v28  ;;  %v5242_v54 = vunpack.i.l.bf16 %v5241_v28  ;;  %v2477_v7 = vld [vmem:[#allocation3 + $0x172] sm:$0xff] }
 0x3bd   : > { %v5251_v36 = vpop.permute.xlu0 %5250 }
 0x3be   : > { %v8291_v44 = vsel %vm3634_vm12, %v8191_v47, %v5262_v38  ;;  %v8295_v52 = vsel %vm3634_vm12, %v8195_v30, %v5263_v6  ;;  %v8299_v59 = vsel %vm3634_vm12, %v8143_v11, %v5242_v54  ;;  %v8303_v49 = vsel %vm3634_vm12, %v8147_v1, %v5243_v32 }
 0x3bf   : > { %v5253_v34 = vunpack.i.h.bf16 %v5251_v36  ;;  %v5252_v51 = vunpack.i.l.bf16 %v5251_v36  ;;  %v5464_v47 = vpack.i.bf16 %v2475_v43, %v2474_v13  ;;  %v5474_v11 = vpack.i.bf16 %v2459_v19, %v2458_v41  ;;  %v2427_v19 = vld [vmem:[#allocation3 + $0x99] sm:$0xff] }
 0x3c0   : > { %v5454_v38 = vpack.i.bf16 %v2457_v26, %v2456_v3 }
 0x3c1   : > { %v8307_v9 = vsel %vm3634_vm12, %v8127_v2, %v5252_v51  ;;  %v8311_v30 = vsel %vm3634_vm12, %v8131_v24, %v5253_v34  ;;  %5440 = vrot.lane.b32.xlu2 %v5439_v56, %s5634_s13  ;;  %5465 = vrot.lane.b32.xlu1 %v5464_v47, %s5633_s12  ;;  %v2413_v2 = vld [vmem:[#allocation3 + $0x170] sm:$0xff] }
 0x3c2   : > { %v5479_v32 = vpack.i.bf16 %v2413_v2, %v2412_v62  ;;  %v2414_v2 = vld [vmem:[#allocation3 + $0x180] sm:$0xff] }
 0x3c3   : > { %5475 = vrot.lane.b32.xlu0 %v5474_v11, %s5633_s12  ;;  %v8316_v1 = vpop.permute.xlu2 %5275  ;;  %v5256_v53 = vpop.permute.xlu1 %5255  ;;  %v2426_v11 = vld [vmem:[#allocation3 + $0x91] sm:$0xff] }
 0x3c4   : > { %v5258_v23 = vunpack.i.h.bf16 %v5256_v53  ;;  %v5257_v17 = vunpack.i.l.bf16 %v5256_v53  ;;  %v2428_v53 = vld [vmem:[#allocation3 + $0xa9] sm:$0xff]  ;;  %v5469_v26 = vpack.i.bf16 %v2427_v19, %v2426_v11 }
 0x3c5   : > { %v5266_v37 = vpop.permute.xlu0 %5265 }
 0x3c6   : > { %v8320_v24 = vsel %vm3634_vm12, %v8172_v18, %v5257_v17  ;;  %v8324_v27 = vsel %vm3634_vm12, %v8176_v58, %v5258_v23  ;;  %v5268_v28 = vunpack.i.h.bf16 %v5266_v37  ;;  %v5267_v6 = vunpack.i.l.bf16 %v5266_v37  ;;  %v2415_v23 = vld [vmem:[#allocation3 + $0x188] sm:$0xff] }
 0x3c7   : > { %v5489_v18 = vpack.i.bf16 %v2477_v7, %v2476_v22 }
 0x3c8   : > { %v8328_v54 = vsel %vm3634_vm12, %v8156_v31, %v5267_v6  ;;  %v8332_v4 = vsel %vm3634_vm12, %v8160_v33, %v5268_v28  ;;  %v2429_v31 = vld [vmem:[#allocation3 + $0xb1] sm:$0xff] }
 0x3c9   : > { %5455 = vrot.lane.b32.xlu2 %v5454_v38, %s5633_s12  ;;  %5480 = vrot.lane.b32.xlu1 %v5479_v32, %s5632_s11  ;;  %v2445_v38 = vld [vmem:[#allocation3 + $0x171] sm:$0xff]  ;;  %v2431_v32 = vld [vmem:[#allocation3 + $0xc9] sm:$0xff] }
 0x3cb   : > { %5490 = vrot.lane.b32.xlu0 %v5489_v18, %s5633_s12  ;;  %v5291_v58 = vpop.permute.xlu2 %5290  ;;  %v5271_v13 = vpop.permute.xlu1 %5270 }
 0x3cc   : > { %v5293_v43 = vunpack.i.h.bf16 %v5291_v58  ;;  %v5292_v36 = vunpack.i.l.bf16 %v5291_v58  ;;  %v5273_v8 = vunpack.i.h.bf16 %v5271_v13  ;;  %v5272_v41 = vunpack.i.l.bf16 %v5271_v13 }
 0x3cd   : > { %v5281_v34 = vpop.permute.xlu0 %5280 }
 0x3ce   : > { %v8339_v33 = vsel %vm3634_vm12, %v8245_v25, %v5292_v36  ;;  %v8343_v51 = vsel %vm3634_vm12, %v8249_v14, %v5293_v43  ;;  %v8347_v56 = vsel %vm3634_vm12, %v8199_v60, %v5272_v41  ;;  %v8351_v47 = vsel %vm3634_vm12, %v8203_v48, %v5273_v8  ;;  %v2444_v36 = vld [vmem:[#allocation3 + $0x169] sm:$0xff] }
 0x3cf   : > { %v5283_v17 = vunpack.i.h.bf16 %v5281_v34  ;;  %v5282_v3 = vunpack.i.l.bf16 %v5281_v34  ;;  %v5494_v25 = vpack.i.bf16 %v2429_v31, %v2428_v53  ;;  %v5504_v48 = vpack.i.bf16 %v2415_v23, %v2414_v2  ;;  %v2430_v31 = vld [vmem:[#allocation3 + $0xc1] sm:$0xff]  ;;  %v2460_v23 = vld [vmem:[#allocation3 + $0xaa] sm:$0xff]  ;;  %v2448_v2 = vld [vmem:[#allocation3 + $0x199] sm:$0xff] }
 0x3d0   : > { %v5484_v19 = vpack.i.bf16 %v2445_v38, %v2444_v36  ;;  %v2481_v36 = vld [vmem:[#allocation3 + $0x1a2] sm:$0xff] }
 0x3d1   : > { %v8355_v14 = vsel %vm3634_vm12, %v8183_v42, %v5282_v3  ;;  %v8359_v60 = vsel %vm3634_vm12, %v8187_v50, %v5283_v17  ;;  %5470 = vrot.lane.b32.xlu2 %v5469_v26, %s5634_s13  ;;  %5495 = vrot.lane.b32.xlu1 %v5494_v25, %s5634_s13  ;;  %v3790_v50 = vld [vmem:[%s8710_s3 + $0x20] sm:$0xf] }
 0x3d2   : > { %v3812_v34 = vunpack.c.l.b16 %v3790_v50  ;;  %v2461_v17 = vld [vmem:[#allocation3 + $0xb2] sm:$0xff] }
 0x3d3   : > { %5505 = vrot.lane.b32.xlu0 %v5504_v48, %s5632_s11  ;;  %v5306_v37 = vpop.permute.xlu2 %5305  ;;  %v5286_v62 = vpop.permute.xlu1 %5285  ;;  %v2449_v48 = vld [vmem:[#allocation3 + $0x1a1] sm:$0xff] }
 0x3d4   : > { %v5308_v22 = vunpack.i.h.bf16 %v5306_v37  ;;  %v5307_v7 = vunpack.i.l.bf16 %v5306_v37  ;;  %v5288_v28 = vunpack.i.h.bf16 %v5286_v62  ;;  %v5287_v6 = vunpack.i.l.bf16 %v5286_v62 }
 0x3d5   : > { %v5296_v42 = vpop.permute.xlu0 %5295 }
 0x3d6   : > { %v8369_v18 = vsel %vm3634_vm12, %v8272_v46, %v5307_v7  ;;  %v8373_v58 = vsel %vm3634_vm12, %v8276_v5, %v5308_v22  ;;  %v8377_v13 = vsel %vm3634_vm12, %v8226_v21, %v5287_v6  ;;  %v8381_v43 = vsel %vm3634_vm12, %v8230_v16, %v5288_v28 }
 0x3d7   : > { %v5298_v8 = vunpack.i.h.bf16 %v5296_v42  ;;  %v5297_v41 = vunpack.i.l.bf16 %v5296_v42  ;;  %v5519_v46 = vpack.i.bf16 %v2431_v32, %v2430_v31  ;;  %v3817_v21 = vpack.c.b16 %v3812_v34, %v3812_v34  ;;  %v4210_v34 = vld [vmem:[%s8710_s3 + $0x8] sm:$0xff] }
 0x3d8   : > { %v5499_v7 = vpack.i.bf16 %v2461_v17, %v2460_v23  ;;  %v5534_v42 = vpack.i.bf16 %v2449_v48, %v2448_v2  ;;  %v2465_v23 = vld [vmem:[#allocation3 + $0xe2] sm:$0xff] }
 0x3d9   : > { %v8385_v11 = vsel %vm3634_vm12, %v8210_v55, %v5297_v41  ;;  %v8389_v5 = vsel %vm3634_vm12, %v8214_v20, %v5298_v8  ;;  %5485 = vrot.lane.b32.xlu2 %v5484_v19, %s5634_s13  ;;  %5510 = vrot.lane.b32.xlu1 %v7879_v12, %s5634_s13  ;;  %v2462_v55 = vld [vmem:[#allocation3 + $0xc2] sm:$0xff]  ;;  %v3873_v3 = vsel %vm3871_vm13, %v3817_v21, 0  ;;  %v2463_v20 = vld [vmem:[#allocation3 + $0xca] sm:$0xff] }
 0x3da   : > { %4217 = vmatpush.bf16.msra.mxu2 %v3873_v3  ;;  %3878 = vmatpush.bf16.msra.mxu1 %v3873_v3  ;;  %v4212_v12 = vld [vmem:[%s8710_s3 + $0x18] sm:$0xff]  ;;  %v5524_v38 = vpack.i.bf16 %v2463_v20, %v2462_v55  ;;  %v4209_v3 = vld [vmem:[%s8710_s3] sm:$0xff]  ;;  %v2417_v20 = vld [vmem:[#allocation3 + $0x1a0] sm:$0xff] }
 0x3db   : > { %5520 = vrot.lane.b32.xlu0 %v5519_v46, %s5634_s13  ;;  %v8395_v16 = vpop.permute.xlu2 %5320  ;;  %v5301_v53 = vpop.permute.xlu1 %5300 }
 0x3dc   : > { %v5303_v26 = vunpack.i.h.bf16 %v5301_v53  ;;  %v5302_v25 = vunpack.i.l.bf16 %v5301_v53  ;;  %v2464_v53 = vld [vmem:[#allocation3 + $0xda] sm:$0xff] }
 0x3dd   : > { %v5311_v37 = vpop.permute.xlu0 %5310 }
 0x3de   : > { %v8402_v62 = vsel %vm3634_vm12, %v8253_v15, %v5302_v25  ;;  %v8406_v22 = vsel %vm3634_vm12, %v8257_v29, %v5303_v26  ;;  %v5313_v28 = vunpack.i.h.bf16 %v5311_v37  ;;  %v5312_v6 = vunpack.i.l.bf16 %v5311_v37  ;;  %4218 = vmatpush.bf16.msra.mxu2 %v4212_v12  ;;  %3879 = vmatpush.bf16.msra.mxu1 %v4212_v12  ;;  %v4211_v15 = vld [vmem:[%s8710_s3 + $0x10] sm:$0xff]  ;;  %v2416_v25 = vld [vmem:[#allocation3 + $0x198] sm:$0xff] }
 0x3df   : > { %v2480_v29 = vld [vmem:[#allocation3 + $0x19a] sm:$0xff] }
 0x3e0   : > { %v8410_v32 = vsel %vm3634_vm12, %v8237_v61, %v5312_v6  ;;  %v8414_v50 = vsel %vm3634_vm12, %v8241_v0, %v5313_v28  ;;  %v5539_v31 = vpack.i.bf16 %v2481_v36, %v2480_v29  ;;  %v5529_v28 = vpack.i.bf16 %v2417_v20, %v2416_v25 }
 0x3e1   : > { %5500 = vrot.lane.b32.xlu2 %v5499_v7, %s5633_s12  ;;  %5525 = vrot.lane.b32.xlu1 %v5524_v38, %s5633_s12 }
 0x3e2   : > { %4219 = vmatpush.bf16.msra.mxu2 %v4211_v15  ;;  %3880 = vmatpush.bf16.msra.mxu1 %v4211_v15 }
 0x3e3   : > { %5535 = vrot.lane.b32.xlu0 %v5534_v42, %s5634_s13  ;;  %v5336_v8 = vpop.permute.xlu2 %5335  ;;  %v8422_v41 = vpop.permute.xlu1 %5315 }
 0x3e4   : > { %v5338_v61 = vunpack.i.h.bf16 %v5336_v8  ;;  %v5337_v19 = vunpack.i.l.bf16 %v5336_v8 }
 0x3e5   : > { %v5326_v0 = vpop.permute.xlu0 %5325 }
 0x3e6   : > { %v8429_v46 = vsel %vm3667_vm14, %v8320_v24, %v5337_v19  ;;  %v8433_v21 = vsel %vm3667_vm14, %v8324_v27, %v5338_v61  ;;  %v5328_v17 = vunpack.i.h.bf16 %v5326_v0  ;;  %v5327_v55 = vunpack.i.l.bf16 %v5326_v0  ;;  %4220 = vmatpush.bf16.msra.mxu2 %v4210_v34  ;;  %3881 = vmatpush.bf16.msra.mxu1 %v4210_v34  ;;  %v2433_v19 = vld [vmem:[#allocation3 + $0xe1] sm:$0xff] }
 0x3e7   : > { %v5549_v27 = vpack.i.bf16 %v2465_v23, %v2464_v53 }
 0x3e8   : > { %v8440_v26 = vsel %vm3667_vm14, %v8264_v57, %v5327_v55  ;;  %v8444_v24 = vsel %vm3667_vm14, %v8268_v10, %v5328_v17  ;;  %v5277_v17 = vunpack.i.l.bf16 %v8316_v1  ;;  %v5278_v55 = vunpack.i.h.bf16 %v8316_v1 }
 0x3e9   : > { %5515 = vrot.lane.b32.xlu2 %v8001_v45, %s5633_s12  ;;  %5540 = vrot.lane.b32.xlu1 %v5539_v31, %s5633_s12  ;;  %v2432_v31 = vld [vmem:[#allocation3 + $0xd9] sm:$0xff] }
 0x3ea   : > { %4221 = vmatpush.bf16.msra.mxu2 %v4209_v3  ;;  %3882 = vmatpush.bf16.msra.mxu1 %v4209_v3 }
 0x3eb   : > { %5550 = vrot.lane.b32.xlu0 %v5549_v27, %s5633_s12  ;;  %v5351_v2 = vpop.permute.xlu2 %5350  ;;  %v5331_v48 = vpop.permute.xlu1 %5330 }
 0x3ec   : > { %v5353_v37 = vunpack.i.h.bf16 %v5351_v2  ;;  %v5352_v12 = vunpack.i.l.bf16 %v5351_v2  ;;  %v5333_v57 = vunpack.i.h.bf16 %v5331_v48  ;;  %v5332_v7 = vunpack.i.l.bf16 %v5331_v48 }
 0x3ed   : > { %v5341_v10 = vpop.permute.xlu0 %5340  ;;  %v3652_v48 = vsel %vm3634_vm12, %v8222_v35, %v5278_v55 }
 0x3ee   : > { %v8452_v45 = vsel %vm3667_vm14, %v8347_v56, %v5352_v12  ;;  %v8456_v6 = vsel %vm3667_vm14, %v8351_v47, %v5353_v37  ;;  %v8460_v38 = vsel %vm3667_vm14, %v8307_v9, %v5332_v7  ;;  %v8464_v42 = vsel %vm3667_vm14, %v8311_v30, %v5333_v57 }
 0x3ef   : > { %v5343_v15 = vunpack.i.h.bf16 %v5341_v10  ;;  %v5342_v29 = vunpack.i.l.bf16 %v5341_v10 }
 0x3f1   : > { %v8468_v36 = vsel %vm3667_vm14, %v8291_v44, %v5342_v29  ;;  %v8472_v56 = vsel %vm3667_vm14, %v8295_v52, %v5343_v15  ;;  %5530 = vrot.lane.b32.xlu2 %v5529_v28, %s5632_s11  ;;  %v5544_v52 = vpack.i.bf16 %v2433_v19, %v2432_v31  ;;  %s4142_s11 = sshll.u32 %s215_s10, 4 }
 0x3f2   : > { %s217_s12 = scalar_lea.vmem [#allocation4], %s4142_s11 }
 0x3f3   : > { %v8475_v47 = vpop.permute.xlu2 %5365  ;;  %v5346_v9 = vpop.permute.xlu1 %5345  ;;  %s4076_s17 = sshll.u32 %s217_s12, 4  ;;  %s4077_s17 = int_to_ptr.vmem [resolvable:$true] %s4076_s17 }
 0x3f4   : > { %v5348_v8 = vunpack.i.h.bf16 %v5346_v9  ;;  %v5347_v61 = vunpack.i.l.bf16 %v5346_v9 }
 0x3f5   : > { %v5356_v30 = vpop.permute.xlu0 %5355 }
 0x3f6   : > { %v8479_v0 = vsel %vm3667_vm14, %v8328_v54, %v5347_v61  ;;  %v8483_v44 = vsel %vm3667_vm14, %v8332_v4, %v5348_v8  ;;  %v5358_v3 = vunpack.i.h.bf16 %v5356_v30  ;;  %v5357_v27 = vunpack.i.l.bf16 %v5356_v30 }
 0x3f7   : > { %v3651_v54 = vsel %vm3634_vm12, %v8218_v63, %v5277_v17  ;;  %v5318_v61 = vunpack.i.h.bf16 %v8422_v41 }
 0x3f8   : > { %v3684_v57 = vsel %vm3667_vm14, %v3651_v54, %v5357_v27  ;;  %v3685_v7 = vsel %vm3667_vm14, %v3652_v48, %v5358_v3 }
 0x3f9   : > { %5545 = vrot.lane.b32.xlu2 %v5544_v52, %s5634_s13  ;;  %v3669_v17 = vsel %vm3667_vm14, %v8284_v40, %v5318_v61  ;;  %s4213_s13 = sshll.u32 %s5686_s22, 4 }
 0x3fa   : > { %s4074_s16 = scalar_lea.hbm %s8712_s5, %s4213_s13 }
 0x3fb   : > { %v5381_v34 = vpop.permute.xlu2 %5380  ;;  %v5361_v53 = vpop.permute.xlu1 %5360  ;;  %s4078_s23 = sshll.u32 %s4074_s16, 4  ;;  %s4079_s23 = int_to_ptr.hbm [resolvable:$true] %s4078_s23 }
 0x3fc   : > { %v5383_v25 = vunpack.i.h.bf16 %v5381_v34  ;;  %v5382_v4 = vunpack.i.l.bf16 %v5381_v34  ;;  %v5362_v48 = vunpack.i.l.bf16 %v5361_v53  ;;  %s5572_s26 = sshra.s32 %s4079_s23, 4  ;;  %s5573_s26 = int_to_ptr.hbm [resolvable:$true] %s5572_s26 }
 0x3fd   : > { %v8486_v23 = vpop.permute.xlu0 %5370  ;;  %s5574_s30 = scalar_lea.hbm %s5573_s26, 16  ;;  %p5579_p0 = scmp.lt.s32.totalorder %s5573_s26, %s8712_s5 }
 0x3fe   : > { %v3717_v35 = vsel %vm3700_vm15, %v3684_v57, %v5382_v4  ;;  %v3718_v29 = vsel %vm3700_vm15, %v3685_v7, %v5383_v25  ;;  %p5575_p11 = scmp.ne.s32.totalorder %s5573_s26, %s5574_s30  ;;  %p5580_p1 = scmp.lt.s32.totalorder %s5578_s7, %s5574_s30 }
 0x400   : > { %p5576_p12 = pnand %p5575_p11, %p5703_p5  ;;  %p5581_p2 = por %p5580_p1, %p5579_p0 }
 0x402   : > { %p5577_p13 = pneg %p5576_p12 }
 0x403   : > { %v5396_v20 = vpop.permute.xlu2 %5395  ;;  %v5376_v2 = vpop.permute.xlu1 %5375 }
 0x404   : > { %v5378_v37 = vunpack.i.h.bf16 %v5376_v2  ;;  %v5377_v12 = vunpack.i.l.bf16 %v5376_v2  ;;  %v5398_v55 = vunpack.i.h.bf16 %v5396_v20  ;;  %v5397_v3 = vunpack.i.l.bf16 %v5396_v20  ;;  %p5582_p3 = pnand %p5581_p2, %p5577_p13 }
 0x405   : > { %v5386_v1 = vpop.permute.xlu0 %5385  ;;  %v5363_v2 = vunpack.i.h.bf16 %v5361_v53 }
 0x406   : > { %v8498_v10 = vsel %vm3667_vm14, %v8385_v11, %v5377_v12  ;;  %v8502_v63 = vsel %vm3667_vm14, %v8389_v5, %v5378_v37  ;;  %v5388_v28 = vunpack.i.h.bf16 %v5386_v1  ;;  %v5387_v15 = vunpack.i.l.bf16 %v5386_v1 }
 0x407   : > { %v5317_v11 = vunpack.i.l.bf16 %v8422_v41  ;;  %v5323_v12 = vunpack.i.h.bf16 %v8395_v16 }
 0x408   : > { %v3750_v9 = vsel %vm3733_vm0, %v3717_v35, %v5387_v15  ;;  %v3751_v8 = vsel %vm3733_vm0, %v3718_v29, %v5388_v28  ;;  %v3686_v15 = vsel %vm3667_vm14, %v8355_v14, %v5362_v48  ;;  %v3687_v35 = vsel %vm3667_vm14, %v8359_v60, %v5363_v2 }
 0x409   : > { %v3774_v19 = vpack.c.bf16 %v3751_v8, %v3750_v9  ;;  %v3668_v34 = vsel %vm3667_vm14, %v8280_v39, %v5317_v11  ;;  %v5322_v39 = vunpack.i.l.bf16 %v8395_v16  ;;  %v3671_v16 = vsel %vm3667_vm14, %v8303_v49, %v5323_v12 }
 0x40b   : > { %v5411_v30 = vpop.permute.xlu2 %5410  ;;  %v5391_v31 = vpop.permute.xlu1 %5390  ;;  %4193 = vmatmul.msk.bf16.vlgmr.msra.gmra.mxu2 %vm3822_vm1, %v3774_v19  ;;  %v3670_v9 = vsel %vm3667_vm14, %v8299_v59, %v5322_v39 }
 0x40c   : > { %v5393_v5 = vunpack.i.h.bf16 %v5391_v31  ;;  %v5392_v52 = vunpack.i.l.bf16 %v5391_v31  ;;  %v5413_v20 = vunpack.i.h.bf16 %v5411_v30  ;;  %v5412_v7 = vunpack.i.l.bf16 %v5411_v30 }
 0x40d   : > { %v5401_v27 = vpop.permute.xlu0 %5400 }
 0x40e   : > { %v3701_v54 = vsel %vm3700_vm15, %v3668_v34, %v5392_v52  ;;  %v3702_v41 = vsel %vm3700_vm15, %v3669_v17, %v5393_v5  ;;  %v5403_v57 = vunpack.i.h.bf16 %v5401_v27  ;;  %v5402_v40 = vunpack.i.l.bf16 %v5401_v27 }
 0x40f   : > { %v3734_v25 = vsel %vm3733_vm0, %v3701_v54, %v5397_v3  ;;  %v3735_v4 = vsel %vm3733_vm0, %v3702_v41, %v5398_v55  ;;  %v3703_v60 = vsel %vm3700_vm15, %v3670_v9, %v5412_v7  ;;  %v3704_v5 = vsel %vm3700_vm15, %v3671_v16, %v5413_v20 }
 0x410   : > { %v3766_v37 = vpack.c.bf16 %v3735_v4, %v3734_v25  ;;  %v3719_v8 = vsel %vm3700_vm15, %v3686_v15, %v5402_v40  ;;  %v3720_v61 = vsel %vm3700_vm15, %v3687_v35, %v5403_v57  ;;  %v5368_v34 = vunpack.i.h.bf16 %v8475_v47 }
 0x411   : > { %v5367_v17 = vunpack.i.l.bf16 %v8475_v47  ;;  %v5373_v20 = vunpack.i.h.bf16 %v8486_v23  ;;  %v5372_v7 = vunpack.i.l.bf16 %v8486_v23 }
 0x412   : > { %4185 = vmatmul.msk.bf16.vlgmr.msra.gmra.mxu1 %vm3822_vm1, %v3766_v37  ;;  %v3689_v4 = vsel %vm3667_vm14, %v8381_v43, %v5368_v34 }
 0x413   : > { %v5426_v1 = vpop.permute.xlu2 %5425  ;;  %v5406_v28 = vpop.permute.xlu1 %5405  ;;  %v3688_v25 = vsel %vm3667_vm14, %v8377_v13, %v5367_v17  ;;  %v3690_v9 = vsel %vm3667_vm14, %v8339_v33, %v5372_v7  ;;  %v3691_v16 = vsel %vm3667_vm14, %v8343_v51, %v5373_v20 }
 0x414   : > { %v5408_v53 = vunpack.i.h.bf16 %v5406_v28  ;;  %v5407_v29 = vunpack.i.l.bf16 %v5406_v28  ;;  %v5428_v2 = vunpack.i.h.bf16 %v5426_v1  ;;  %v5427_v48 = vunpack.i.l.bf16 %v5426_v1 }
 0x415   : > { %v5416_v11 = vpop.permute.xlu0 %5415 }
 0x416   : > { %v5418_v19 = vunpack.i.h.bf16 %v5416_v11  ;;  %v5417_v30 = vunpack.i.l.bf16 %v5416_v11  ;;  %v3752_v14 = vsel %vm3733_vm0, %v3719_v8, %v5407_v29  ;;  %v3753_v31 = vsel %vm3733_vm0, %v3720_v61, %v5408_v53 }
 0x417   : > { %v3775_v52 = vpack.c.bf16 %v3753_v31, %v3752_v14 }
 0x418   : > { %v3736_v59 = vsel %vm3733_vm0, %v3703_v60, %v5417_v30  ;;  %v3737_v49 = vsel %vm3733_vm0, %v3704_v5, %v5418_v19 }
 0x419   : > { %v3767_v55 = vpack.c.bf16 %v3737_v49, %v3736_v59 }
 0x41b   : > { %v5441_v3 = vpop.permute.xlu2 %5440  ;;  %v5421_v27 = vpop.permute.xlu1 %5420  ;;  %4194 = vmatmul.msk.bf16.gmra.mxu2 %vm3822_vm1, %v3775_v52 }
 0x41c   : > { %v5423_v54 = vunpack.i.h.bf16 %v5421_v27  ;;  %v5422_v41 = vunpack.i.l.bf16 %v5421_v27  ;;  %v5443_v43 = vunpack.i.h.bf16 %v5441_v3  ;;  %v5442_v1 = vunpack.i.l.bf16 %v5441_v3 }
 0x41d   : > { %v5431_v37 = vpop.permute.xlu0 %5430 }
 0x41e   : > { %v3721_v12 = vsel %vm3700_vm15, %v3688_v25, %v5422_v41  ;;  %v3722_v47 = vsel %vm3700_vm15, %v3689_v4, %v5423_v54  ;;  %v5433_v13 = vunpack.i.h.bf16 %v5431_v37  ;;  %v5432_v28 = vunpack.i.l.bf16 %v5431_v37 }
 0x41f   : > { %v3754_v39 = vsel %vm3733_vm0, %v3721_v12, %v5427_v48  ;;  %v3755_v57 = vsel %vm3733_vm0, %v3722_v47, %v5428_v2  ;;  %v3723_v31 = vsel %vm3700_vm15, %v3690_v9, %v5442_v1  ;;  %v3724_v33 = vsel %vm3700_vm15, %v3691_v16, %v5443_v43 }
 0x420   : > { %v3776_v40 = vpack.c.bf16 %v3755_v57, %v3754_v39  ;;  %v3705_v8 = vsel %vm3700_vm15, %v8440_v26, %v5432_v28  ;;  %v3706_v23 = vsel %vm3700_vm15, %v8444_v24, %v5433_v13 }
 0x422   : > { %4186 = vmatmul.msk.bf16.gmra.mxu1 %vm3822_vm1, %v3767_v55 }
 0x423   : > { %v5456_v15 = vpop.permute.xlu2 %5455  ;;  %v5436_v35 = vpop.permute.xlu1 %5435 }
 0x424   : > { %v5438_v53 = vunpack.i.h.bf16 %v5436_v35  ;;  %v5437_v29 = vunpack.i.l.bf16 %v5436_v35  ;;  %v5458_v34 = vunpack.i.h.bf16 %v5456_v15  ;;  %v5457_v17 = vunpack.i.l.bf16 %v5456_v15 }
 0x425   : > { %v5446_v61 = vpop.permute.xlu0 %5445 }
 0x426   : > { %v5448_v11 = vunpack.i.h.bf16 %v5446_v61  ;;  %v5447_v19 = vunpack.i.l.bf16 %v5446_v61  ;;  %v3738_v30 = vsel %vm3733_vm0, %v3705_v8, %v5437_v29  ;;  %v3739_v14 = vsel %vm3733_vm0, %v3706_v23, %v5438_v53 }
 0x427   : > { %v3768_v60 = vpack.c.bf16 %v3739_v14, %v3738_v30 }
 0x428   : > { %v3756_v51 = vsel %vm3733_vm0, %v3723_v31, %v5447_v19  ;;  %v3757_v5 = vsel %vm3733_vm0, %v3724_v33, %v5448_v11 }
 0x429   : > { %v3777_v26 = vpack.c.bf16 %v3757_v5, %v3756_v51 }
 0x42b   : > { %v5471_v52 = vpop.permute.xlu2 %5470  ;;  %v5451_v59 = vpop.permute.xlu1 %5450  ;;  %4195 = vmatmul.msk.bf16.gmra.mxu2 %vm3822_vm1, %v3776_v40 }
 0x42c   : > { %v5453_v24 = vunpack.i.h.bf16 %v5451_v59  ;;  %v5452_v49 = vunpack.i.l.bf16 %v5451_v59  ;;  %v5473_v48 = vunpack.i.h.bf16 %v5471_v52  ;;  %v5472_v37 = vunpack.i.l.bf16 %v5471_v52 }
 0x42d   : > { %v5461_v55 = vpop.permute.xlu0 %5460 }
 0x42e   : > { %v3707_v3 = vsel %vm3700_vm15, %v8460_v38, %v5452_v49  ;;  %v3708_v27 = vsel %vm3700_vm15, %v8464_v42, %v5453_v24  ;;  %v5463_v4 = vunpack.i.h.bf16 %v5461_v55  ;;  %v5462_v2 = vunpack.i.l.bf16 %v5461_v55 }
 0x42f   : > { %v3740_v54 = vsel %vm3733_vm0, %v3707_v3, %v5457_v17  ;;  %v3741_v41 = vsel %vm3733_vm0, %v3708_v27, %v5458_v34  ;;  %v3709_v43 = vsel %vm3700_vm15, %v8429_v46, %v5472_v37  ;;  %v3710_v1 = vsel %vm3700_vm15, %v8433_v21, %v5473_v48 }
 0x430   : > { %v3769_v25 = vpack.c.bf16 %v3741_v41, %v3740_v54  ;;  %v3725_v38 = vsel %vm3700_vm15, %v8498_v10, %v5462_v2  ;;  %v3726_v42 = vsel %vm3700_vm15, %v8502_v63, %v5463_v4 }
 0x432   : > { %4187 = vmatmul.msk.bf16.gmra.mxu1 %vm3822_vm1, %v3768_v60 }
 0x433   : > { %v5486_v12 = vpop.permute.xlu2 %5485  ;;  %v5466_v47 = vpop.permute.xlu1 %5465 }
 0x434   : > { %v5468_v39 = vunpack.i.h.bf16 %v5466_v47  ;;  %v5467_v57 = vunpack.i.l.bf16 %v5466_v47  ;;  %v5488_v8 = vunpack.i.h.bf16 %v5486_v12  ;;  %v5487_v23 = vunpack.i.l.bf16 %v5486_v12 }
 0x435   : > { %v5476_v40 = vpop.permute.xlu0 %5475 }
 0x436   : > { %v5478_v20 = vunpack.i.h.bf16 %v5476_v40  ;;  %v5477_v7 = vunpack.i.l.bf16 %v5476_v40  ;;  %v3758_v13 = vsel %vm3733_vm0, %v3725_v38, %v5467_v57  ;;  %v3759_v28 = vsel %vm3733_vm0, %v3726_v42, %v5468_v39 }
 0x437   : > { %v3778_v15 = vpack.c.bf16 %v3759_v28, %v3758_v13 }
 0x438   : > { %v3742_v35 = vsel %vm3733_vm0, %v3709_v43, %v5477_v7  ;;  %v3743_v10 = vsel %vm3733_vm0, %v3710_v1, %v5478_v20 }
 0x439   : > { %v3770_v53 = vpack.c.bf16 %v3743_v10, %v3742_v35 }
 0x43b   : > { %v5501_v63 = vpop.permute.xlu2 %5500  ;;  %v5481_v29 = vpop.permute.xlu1 %5480  ;;  %4196 = vmatmul.msk.bf16.gmra.mxu2 %vm3822_vm1, %v3777_v26 }
 0x43c   : > { %v5483_v9 = vunpack.i.h.bf16 %v5481_v29  ;;  %v5482_v16 = vunpack.i.l.bf16 %v5481_v29  ;;  %v5503_v52 = vunpack.i.h.bf16 %v5501_v63  ;;  %v5502_v59 = vunpack.i.l.bf16 %v5501_v63 }
 0x43d   : > { %v5491_v61 = vpop.permute.xlu0 %5490 }
 0x43e   : > { %v3694_v46 = vsel %vm3667_vm14, %v8402_v62, %v5482_v16  ;;  %v3695_v21 = vsel %vm3667_vm14, %v8406_v22, %v5483_v9  ;;  %v5493_v11 = vunpack.i.h.bf16 %v5491_v61  ;;  %v5492_v19 = vunpack.i.l.bf16 %v5491_v61 }
 0x43f   : > { %v3727_v30 = vsel %vm3700_vm15, %v3694_v46, %v5487_v23  ;;  %v3728_v14 = vsel %vm3700_vm15, %v3695_v21, %v5488_v8 }
 0x440   : > { %v3760_v31 = vsel %vm3733_vm0, %v3727_v30, %v5492_v19  ;;  %v3761_v33 = vsel %vm3733_vm0, %v3728_v14, %v5493_v11 }
 0x441   : > { %v3779_v60 = vpack.c.bf16 %v3761_v33, %v3760_v31 }
 0x442   : > { %4188 = vmatmul.msk.bf16.gmra.mxu1 %vm3822_vm1, %v3769_v25 }
 0x443   : > { %v5496_v51 = vpop.permute.xlu1 %5495  ;;  %v5516_v5 = vpop.permute.xlu2 %5515 }
 0x444   : > { %v5498_v26 = vunpack.i.h.bf16 %v5496_v51  ;;  %v5497_v62 = vunpack.i.l.bf16 %v5496_v51  ;;  %v5518_v4 = vunpack.i.h.bf16 %v5516_v5  ;;  %v5517_v2 = vunpack.i.l.bf16 %v5516_v5 }
 0x445   : > { %v5506_v22 = vpop.permute.xlu0 %5505 }
 0x446   : > { %v3711_v24 = vsel %vm3700_vm15, %v8468_v36, %v5497_v62  ;;  %v3712_v49 = vsel %vm3700_vm15, %v8472_v56, %v5498_v26  ;;  %v5508_v3 = vunpack.i.h.bf16 %v5506_v22  ;;  %v5507_v27 = vunpack.i.l.bf16 %v5506_v22 }
 0x447   : > { %v3744_v34 = vsel %vm3733_vm0, %v3711_v24, %v5502_v59  ;;  %v3745_v17 = vsel %vm3733_vm0, %v3712_v49, %v5503_v52 }
 0x448   : > { %v3771_v55 = vpack.c.bf16 %v3745_v17, %v3744_v34  ;;  %v3696_v36 = vsel %vm3667_vm14, %v8369_v18, %v5507_v27  ;;  %v3697_v56 = vsel %vm3667_vm14, %v8373_v58, %v5508_v3 }
 0x44b   : > { %v5511_v54 = vpop.permute.xlu1 %5510  ;;  %4197 = vmatmul.msk.bf16.gmra.mxu2 %vm3822_vm1, %v3778_v15  ;;  %v5531_v37 = vpop.permute.xlu2 %5530 }
 0x44c   : > { %v5513_v41 = vunpack.i.h.bf16 %v5511_v54  ;;  %v5512_v25 = vunpack.i.l.bf16 %v5511_v54  ;;  %v5533_v15 = vunpack.i.h.bf16 %v5531_v37  ;;  %v5532_v35 = vunpack.i.l.bf16 %v5531_v37 }
 0x44d   : > { %v5521_v48 = vpop.permute.xlu0 %5520 }
 0x44e   : > { %v3729_v12 = vsel %vm3700_vm15, %v3696_v36, %v5512_v25  ;;  %v3730_v47 = vsel %vm3700_vm15, %v3697_v56, %v5513_v41  ;;  %v5523_v42 = vunpack.i.h.bf16 %v5521_v48  ;;  %v5522_v40 = vunpack.i.l.bf16 %v5521_v48 }
 0x44f   : > { %v3762_v39 = vsel %vm3733_vm0, %v3729_v12, %v5517_v2  ;;  %v3763_v57 = vsel %vm3733_vm0, %v3730_v47, %v5518_v4 }
 0x450   : > { %v3780_v38 = vpack.c.bf16 %v3763_v57, %v3762_v39  ;;  %v3713_v58 = vsel %vm3700_vm15, %v8479_v0, %v5522_v40  ;;  %v3714_v28 = vsel %vm3700_vm15, %v8483_v44, %v5523_v42  ;;  %v3698_v0 = vsel %vm3667_vm14, %v8410_v32, %v5532_v35 }
 0x451   : > { %v3699_v44 = vsel %vm3667_vm14, %v8414_v50, %v5533_v15 }
 0x452   : > { %4189 = vmatmul.msk.bf16.gmra.mxu1 %vm3822_vm1, %v3770_v53 }
 0x453   : > { %v5526_v20 = vpop.permute.xlu1 %5525  ;;  %v5546_v10 = vpop.permute.xlu2 %5545 }
 0x454   : > { %v5528_v18 = vunpack.i.h.bf16 %v5526_v20  ;;  %v5527_v7 = vunpack.i.l.bf16 %v5526_v20  ;;  %v5548_v9 = vunpack.i.h.bf16 %v5546_v10  ;;  %v5547_v16 = vunpack.i.l.bf16 %v5546_v10 }
 0x455   : > { %v5536_v13 = vpop.permute.xlu0 %5535 }
 0x456   : > { %v3746_v43 = vsel %vm3733_vm0, %v3713_v58, %v5527_v7  ;;  %v3747_v1 = vsel %vm3733_vm0, %v3714_v28, %v5528_v18  ;;  %v5538_v29 = vunpack.i.h.bf16 %v5536_v13  ;;  %v5537_v53 = vunpack.i.l.bf16 %v5536_v13 }
 0x457   : > { %v3772_v63 = vpack.c.bf16 %v3747_v1, %v3746_v43  ;;  %v3715_v33 = vsel %vm3700_vm15, %v8452_v45, %v5547_v16  ;;  %v3716_v32 = vsel %vm3700_vm15, %v8456_v6, %v5548_v9  ;;  %v8641_v45 = vld [vmem:[%s8711_s4] ss:$0 sm:$0xff] }
 0x458   : > { %v3731_v46 = vsel %vm3700_vm15, %v3698_v0, %v5537_v53  ;;  %v3732_v21 = vsel %vm3700_vm15, %v3699_v44, %v5538_v29 }
 0x45b   : > { %v5541_v8 = vpop.permute.xlu1 %5540  ;;  %4198 = vmatmul.msk.bf16.gmra.mxu2 %vm3822_vm1, %v3779_v60 }
 0x45c   : > { %v5543_v23 = vunpack.i.h.bf16 %v5541_v8  ;;  %v5542_v61 = vunpack.i.l.bf16 %v5541_v8 }
 0x45d   : > { %v5551_v11 = vpop.permute.xlu0 %5550 }
 0x45e   : > { %v5553_v19 = vunpack.i.h.bf16 %v5551_v11  ;;  %v5552_v30 = vunpack.i.l.bf16 %v5551_v11  ;;  %v3764_v14 = vsel %vm3733_vm0, %v3731_v46, %v5542_v61  ;;  %v3765_v31 = vsel %vm3733_vm0, %v3732_v21, %v5543_v23 }
 0x45f   : > { %v3781_v50 = vpack.c.bf16 %v3765_v31, %v3764_v14 }
 0x460   : > { %v3748_v60 = vsel %vm3733_vm0, %v3715_v33, %v5552_v30  ;;  %v3749_v51 = vsel %vm3733_vm0, %v3716_v32, %v5553_v19 }
 0x461   : > { %v3773_v5 = vpack.c.bf16 %v3749_v51, %v3748_v60 }
 0x462   : > { %4190 = vmatmul.msk.bf16.gmra.mxu1 %vm3822_vm1, %v3771_v55 }
 0x46b   : > { %4199 = vmatmul.msk.bf16.gmra.mxu2 %vm3822_vm1, %v3780_v38 }
 0x472   : > { %4191 = vmatmul.msk.bf16.gmra.mxu1 %vm3822_vm1, %v3772_v63 }
 0x47b   : > { %4200 = vmatmul.msk.bf16.gmra.mxu2 %vm3822_vm1, %v3781_v50 }
 0x482   : > { %4192 = vmatmul.msk.bf16.gmra.mxu1 %vm3822_vm1, %v3773_v5 }
 0x48e   : > { %v3924_v6 = vpop.f32.mrf.mxu2 }
 0x48f   : > { %v3925_v26 = vadd.f32 %v8641_v45, %v3924_v6  ;;  %v3884_v62 = vpop.f32.mrf.mxu1 }
 0x490   : > { %v3885_v52 = vadd.f32 %v8641_v45, %v3884_v62 }
 0x491   : > { %v3980_v59 = vmax.f32 %v3925_v26, 0.0 }
 0x492   : > { %v3964_v22 = vmax.f32 %v3885_v52, 0.0 }
 0x493   : > { %4028 = vxpose.xlu2.b32.start [1/16] (narrow) %v3980_v59, 8 }
 0x494   : > { %3996 = vxpose.xlu1.b32.start [1/16] (narrow) %v3964_v22, 8 }
 0x496   : > { %v3926_v24 = vpop.f32.mrf.mxu2 }
 0x497   : > { %v3927_v49 = vadd.f32 %v8641_v45, %v3926_v24  ;;  %v3886_v34 = vpop.f32.mrf.mxu1 }
 0x498   : > { %v3887_v17 = vadd.f32 %v8641_v45, %v3886_v34 }
 0x499   : > { %v3981_v55 = vmax.f32 %v3927_v49, 0.0 }
 0x49a   : > { %v3965_v3 = vmax.f32 %v3887_v17, 0.0 }
 0x49b   : > { %4029 = vxpose.xlu2.b32.cont [2/16] (narrow) %v3981_v55, 8 }
 0x49c   : > { %3997 = vxpose.xlu1.b32.cont [2/16] (narrow) %v3965_v3, 8 }
 0x49e   : > { %v3929_v27 = vpop.f32.mrf.mxu2 }
 0x49f   : > { %v3930_v54 = vadd.f32 %v8641_v45, %v3929_v27  ;;  %v3889_v41 = vpop.f32.mrf.mxu1 }
 0x4a0   : > { %v3890_v25 = vadd.f32 %v8641_v45, %v3889_v41 }
 0x4a1   : > { %v3982_v4 = vmax.f32 %v3930_v54, 0.0 }
 0x4a2   : > { %v3966_v2 = vmax.f32 %v3890_v25, 0.0 }
 0x4a3   : > { %4030 = vxpose.xlu2.b32.cont [3/16] (narrow) %v3982_v4, 8 }
 0x4a4   : > { %3998 = vxpose.xlu1.b32.cont [3/16] (narrow) %v3966_v2, 8 }
 0x4a6   : > { %v3931_v36 = vpop.f32.mrf.mxu2 }
 0x4a7   : > { %v3932_v56 = vadd.f32 %v8641_v45, %v3931_v36  ;;  %v3891_v48 = vpop.f32.mrf.mxu1 }
 0x4a8   : > { %v3892_v37 = vadd.f32 %v8641_v45, %v3891_v48 }
 0x4a9   : > { %v3983_v12 = vmax.f32 %v3932_v56, 0.0 }
 0x4aa   : > { %v3967_v47 = vmax.f32 %v3892_v37, 0.0 }
 0x4ab   : > { %4031 = vxpose.xlu2.b32.cont [4/16] (narrow) %v3983_v12, 8 }
 0x4ac   : > { %3999 = vxpose.xlu1.b32.cont [4/16] (narrow) %v3967_v47, 8 }
 0x4ae   : > { %v3934_v39 = vpop.f32.mrf.mxu2 }
 0x4af   : > { %v3935_v57 = vadd.f32 %v8641_v45, %v3934_v39  ;;  %v3894_v38 = vpop.f32.mrf.mxu1 }
 0x4b0   : > { %v3895_v42 = vadd.f32 %v8641_v45, %v3894_v38 }
 0x4b1   : > { %v3984_v40 = vmax.f32 %v3935_v57, 0.0 }
 0x4b2   : > { %v3968_v20 = vmax.f32 %v3895_v42, 0.0 }
 0x4b3   : > { %4032 = vxpose.xlu2.b32.cont [5/16] (narrow) %v3984_v40, 8 }
 0x4b4   : > { %4000 = vxpose.xlu1.b32.cont [5/16] (narrow) %v3968_v20, 8 }
 0x4b6   : > { %v3936_v18 = vpop.f32.mrf.mxu2 }
 0x4b7   : > { %v3937_v7 = vadd.f32 %v8641_v45, %v3936_v18  ;;  %v3896_v13 = vpop.f32.mrf.mxu1 }
 0x4b8   : > { %v3897_v58 = vadd.f32 %v8641_v45, %v3896_v13 }
 0x4b9   : > { %v3985_v28 = vmax.f32 %v3937_v7, 0.0 }
 0x4ba   : > { %v3969_v43 = vmax.f32 %v3897_v58, 0.0 }
 0x4bb   : > { %4033 = vxpose.xlu2.b32.cont [6/16] (narrow) %v3985_v28, 8 }
 0x4bc   : > { %4001 = vxpose.xlu1.b32.cont [6/16] (narrow) %v3969_v43, 8 }
 0x4be   : > { %v3939_v1 = vpop.f32.mrf.mxu2 }
 0x4bf   : > { %v3940_v15 = vadd.f32 %v8641_v45, %v3939_v1  ;;  %v3899_v35 = vpop.f32.mrf.mxu1 }
 0x4c0   : > { %v3900_v10 = vadd.f32 %v8641_v45, %v3899_v35 }
 0x4c1   : > { %v3986_v63 = vmax.f32 %v3940_v15, 0.0 }
 0x4c2   : > { %v3970_v29 = vmax.f32 %v3900_v10, 0.0 }
 0x4c3   : > { %4034 = vxpose.xlu2.b32.cont [7/16] (narrow) %v3986_v63, 8 }
 0x4c4   : > { %4002 = vxpose.xlu1.b32.cont [7/16] (narrow) %v3970_v29, 8 }
 0x4c6   : > { %v3941_v53 = vpop.f32.mrf.mxu2 }
 0x4c7   : > { %v3942_v9 = vadd.f32 %v8641_v45, %v3941_v53  ;;  %v3901_v16 = vpop.f32.mrf.mxu1 }
 0x4c8   : > { %v3902_v8 = vadd.f32 %v8641_v45, %v3901_v16 }
 0x4c9   : > { %v3987_v0 = vmax.f32 %v3942_v9, 0.0 }
 0x4ca   : > { %v3971_v44 = vmax.f32 %v3902_v8, 0.0 }
 0x4cb   : > { %4035 = vxpose.xlu2.b32.cont [8/16] (narrow) %v3987_v0, 8 }
 0x4cc   : > { %4003 = vxpose.xlu1.b32.cont [8/16] (narrow) %v3971_v44, 8 }
 0x4ce   : > { %v3944_v23 = vpop.f32.mrf.mxu2 }
 0x4cf   : > { %v3945_v61 = vadd.f32 %v8641_v45, %v3944_v23  ;;  %v3904_v46 = vpop.f32.mrf.mxu1 }
 0x4d0   : > { %v3905_v21 = vadd.f32 %v8641_v45, %v3904_v46 }
 0x4d1   : > { %v3988_v11 = vmax.f32 %v3945_v61, 0.0 }
 0x4d2   : > { %v3972_v19 = vmax.f32 %v3905_v21, 0.0 }
 0x4d3   : > { %4036 = vxpose.xlu2.b32.cont [9/16] (narrow) %v3988_v11, 8 }
 0x4d4   : > { %4004 = vxpose.xlu1.b32.cont [9/16] (narrow) %v3972_v19, 8 }
 0x4d6   : > { %v3946_v30 = vpop.f32.mrf.mxu2 }
 0x4d7   : > { %v3947_v14 = vadd.f32 %v8641_v45, %v3946_v30  ;;  %v3906_v31 = vpop.f32.mrf.mxu1 }
 0x4d8   : > { %v3907_v33 = vadd.f32 %v8641_v45, %v3906_v31 }
 0x4d9   : > { %v3989_v32 = vmax.f32 %v3947_v14, 0.0 }
 0x4da   : > { %v3973_v50 = vmax.f32 %v3907_v33, 0.0 }
 0x4db   : > { %4037 = vxpose.xlu2.b32.cont [10/16] (narrow) %v3989_v32, 8 }
 0x4dc   : > { %4005 = vxpose.xlu1.b32.cont [10/16] (narrow) %v3973_v50, 8 }
 0x4de   : > { %v3949_v60 = vpop.f32.mrf.mxu2 }
 0x4df   : > { %v3950_v51 = vadd.f32 %v8641_v45, %v3949_v60  ;;  %v3909_v5 = vpop.f32.mrf.mxu1 }
 0x4e0   : > { %v3910_v6 = vadd.f32 %v8641_v45, %v3909_v5 }
 0x4e1   : > { %v3990_v26 = vmax.f32 %v3950_v51, 0.0 }
 0x4e2   : > { %v3974_v62 = vmax.f32 %v3910_v6, 0.0 }
 0x4e3   : > { %4038 = vxpose.xlu2.b32.cont [11/16] (narrow) %v3990_v26, 8 }
 0x4e4   : > { %4006 = vxpose.xlu1.b32.cont [11/16] (narrow) %v3974_v62, 8 }
 0x4e6   : > { %v3951_v52 = vpop.f32.mrf.mxu2 }
 0x4e7   : > { %v3952_v59 = vadd.f32 %v8641_v45, %v3951_v52  ;;  %v3911_v22 = vpop.f32.mrf.mxu1 }
 0x4e8   : > { %v3912_v24 = vadd.f32 %v8641_v45, %v3911_v22 }
 0x4e9   : > { %v3991_v49 = vmax.f32 %v3952_v59, 0.0 }
 0x4ea   : > { %v3975_v34 = vmax.f32 %v3912_v24, 0.0 }
 0x4eb   : > { %4039 = vxpose.xlu2.b32.cont [12/16] (narrow) %v3991_v49, 8 }
 0x4ec   : > { %4007 = vxpose.xlu1.b32.cont [12/16] (narrow) %v3975_v34, 8 }
 0x4ee   : > { %v3954_v17 = vpop.f32.mrf.mxu2 }
 0x4ef   : > { %v3955_v55 = vadd.f32 %v8641_v45, %v3954_v17  ;;  %v3914_v3 = vpop.f32.mrf.mxu1 }
 0x4f0   : > { %v3915_v27 = vadd.f32 %v8641_v45, %v3914_v3 }
 0x4f1   : > { %v3992_v54 = vmax.f32 %v3955_v55, 0.0 }
 0x4f2   : > { %v3976_v41 = vmax.f32 %v3915_v27, 0.0 }
 0x4f3   : > { %4040 = vxpose.xlu2.b32.cont [13/16] (narrow) %v3992_v54, 8 }
 0x4f4   : > { %4008 = vxpose.xlu1.b32.cont [13/16] (narrow) %v3976_v41, 8 }
 0x4f6   : > { %v3956_v25 = vpop.f32.mrf.mxu2 }
 0x4f7   : > { %v3957_v4 = vadd.f32 %v8641_v45, %v3956_v25  ;;  %v3916_v2 = vpop.f32.mrf.mxu1 }
 0x4f8   : > { %v3917_v36 = vadd.f32 %v8641_v45, %v3916_v2 }
 0x4f9   : > { %v3993_v56 = vmax.f32 %v3957_v4, 0.0 }
 0x4fa   : > { %v3977_v48 = vmax.f32 %v3917_v36, 0.0 }
 0x4fb   : > { %4041 = vxpose.xlu2.b32.cont [14/16] (narrow) %v3993_v56, 8 }
 0x4fc   : > { %4009 = vxpose.xlu1.b32.cont [14/16] (narrow) %v3977_v48, 8 }
 0x4fe   : > { %v3959_v37 = vpop.f32.mrf.mxu2 }
 0x4ff   : > { %v3960_v12 = vadd.f32 %v8641_v45, %v3959_v37  ;;  %v3919_v47 = vpop.f32.mrf.mxu1 }
 0x500   : > { %v3920_v39 = vadd.f32 %v8641_v45, %v3919_v47 }
 0x501   : > { %v3994_v57 = vmax.f32 %v3960_v12, 0.0 }
 0x502   : > { %v3978_v38 = vmax.f32 %v3920_v39, 0.0 }
 0x503   : > { %4042 = vxpose.xlu2.b32.cont [15/16] (narrow) %v3994_v57, 8 }
 0x504   : > { %4010 = vxpose.xlu1.b32.cont [15/16] (narrow) %v3978_v38, 8 }
 0x506   : > { %v3961_v42 = vpop.f32.mrf.mxu2 }
 0x507   : > { %v3962_v40 = vadd.f32 %v8641_v45, %v3961_v42  ;;  %v3921_v20 = vpop.f32.mrf.mxu1 }
 0x508   : > { %v3922_v18 = vadd.f32 %v8641_v45, %v3921_v20 }
 0x509   : > { %v3995_v7 = vmax.f32 %v3962_v40, 0.0 }
 0x50a   : > { %v3979_v13 = vmax.f32 %v3922_v18, 0.0 }
 0x50b   : > { %4043 = vxpose.xlu2.b32.end [16/16] (narrow) %v3995_v7, 8 }
 0x50c   : > { %4011 = vxpose.xlu1.b32.end [16/16] (narrow) %v3979_v13, 8 }
 0x52c   : > { %v4044_v58 = vpop.trf.xlu2 }
 0x52d   : > { %4061 = vst [vmem:[%s217_s12 + $0x8] sm:$0xff] %v4044_v58 }
 0x538   : > { %v4012_v45 = vpop.trf.xlu1 }
 0x539   : > { %4060 = vst [vmem:[%s217_s12] sm:$0xff] %v4012_v45 }
 0x53a   : > { %5585 = shalt.err (!%p5582_p3)
}
 0x53b   : > { %4222 = dma.vmem_to_hbm [thread:$0]  (%p5703_p5), %s4077_s17, 256, %s4079_s23, %s4063_s25  }
 0x53c PF: > { %p4228_p4 = scmp.ge.s32.totalorder %s5620_s21, 2  ;;  %s4090_s10 = sand.u32 1, %s5608_s18  }
 0x53d   : > { %s4091_s11 = scalar_lea.sflag [#allocation5], %s4090_s10 }
 0x53e   : > { %p4225_p7 = pnand %p4228_p4, %p5707_p6 }
 0x540   : > { %p4226_p8 = pneg %p4225_p7 }
 0x542   : > { %5603 = dma.done.wait (%p4226_p8), %s4091_s11, 256  }
 0x543   : > { %5605 = vsyncadd (%p4226_p8), %s4091_s11, 4294967040  ;;  %p15_p9 = scmp.ge.s32.totalorder %s5690_s24, 4   ;;  %s9046_s18 = smov %s5612_s19 }
 0x544   : > { %s9047_s19 = smov %s5616_s20  ;;  %s9048_s20 = smov %s5701_s27 }
 0x545   : > { %s9049_s21 = smov %s5690_s24  ;;  %17 = sbr.rel (!%p15_p9) target bundleno = 3 (0x3), region = 81 }
 0x54a   :  { %4097 = vsyncpa [#allocation5], 1 }
 0x54b   :  { %4099 = vsyncpa [#allocation5 + $0x1], 1 }

</bundles_post_ra>
